<compile_context>
chip_gen: v7x
topology: tpu7x:2x2x1
jax: 0.10.0
libtpu: 0.0.40
codegen_flags: <defaults>
</compile_context>

<pallas_src>
import math

import jax
import jax.numpy as jnp
import numpy as np
from jax.experimental import pallas as pl
from jax.experimental.pallas import tpu as pltpu


def sinpos_pallas(reference_points, w1, b1, w2, b2, *,
                  num_pos_feats, temperature,
                  max_tile_pix=4096,
                  mxu_dtype=jnp.bfloat16,
                  out_dtype=jnp.bfloat16,
                  sin_dtype=jnp.float32):
    """Fused SinPos forward.

    reference_points: (bs, n_points, H, W) NCHW, float.
    w1: (n_points*num_pos_feats, hidden)   -- 1x1 conv #1 weight as (in, out)
    b1: (hidden,)
    w2: (hidden, out_dim)                  -- 1x1 conv #2 weight as (in, out)
    b2: (out_dim,)
    Returns (bs, out_dim, H, W) in out_dtype (bf16 by default).
    """
    bs, n_points, H, W = reference_points.shape
    npf = num_pos_feats
    assert npf % 2 == 0
    c_in = n_points * npf
    c_half = c_in // 2
    assert w1.shape[0] == c_in
    hidden = w1.shape[1]
    out_dim = w2.shape[1]
    scale = 2.0 * math.pi
    nph = npf // 2  # frequencies per point

    # ---- host/trace-time glue (all tiny) -----------------------------------
    # PyTorch channel layout after cat(dim=3)+view:  c = p*npf + 2*f + s,
    #   s==0 -> sin(ref_p*scale*dim_t[2f]),  s==1 -> cos(ref_p*scale*dim_t[2f+1]),
    #   dim_t[2f] == dim_t[2f+1] = 1 / T^(2f/npf)  -> only c_half unique angles.
    freq = 1.0 / (float(temperature) **
                  ((2.0 * np.arange(nph, dtype=np.float64)) / npf))
    # internal angle-row order: r = p*nph + f  ->  coef[r] = scale * freq[f]
    coef = jnp.asarray(np.tile(scale * freq, n_points)
                       .reshape(c_half, 1).astype(np.float32))

    # permute conv1 weight rows into [all-sin | all-cos] internal channel order
    q = np.arange(c_half)
    p_id = q // nph
    f_id = q % nph
    sin_rows = p_id * npf + 2 * f_id           # original sin channels
    cos_rows = sin_rows + 1                    # original cos channels
    perm = np.concatenate([sin_rows, cos_rows])
    w1p = jnp.asarray(w1)[perm, :].T.astype(mxu_dtype)    # (hidden, c_in)
    w2t = jnp.asarray(w2).T.astype(mxu_dtype)             # (out_dim, hidden)
    b1c = jnp.asarray(b1).reshape(hidden, 1).astype(jnp.float32)
    b2c = jnp.asarray(b2).reshape(out_dim, 1).astype(jnp.float32)

    # ---- channels-first pixel flattening (no transpose, no sublane pad) ----
    hw = H * W
    refs = reference_points.reshape(bs, n_points, hw).astype(jnp.float32)
    n_tiles = pl.cdiv(hw, max_tile_pix)
    # v7x has 2 TensorCores fed only via "parallel" grid axes: keep >=2 steps.
    if bs * n_tiles < 2 and hw > 128:
        n_tiles = min(2, pl.cdiv(hw, 128))
    tile_pix = ((pl.cdiv(hw, n_tiles) + 127) // 128) * 128   # lane-dense tile
    hw_pad = n_tiles * tile_pix
    if hw_pad != hw:
        # NOTE: padded pixel columns produce garbage (cos(0)=1 + biases); they
        # are sliced off below and must never be consumed from the padded buf.
        refs = jnp.pad(refs, ((0, 0), (0, 0), (0, hw_pad - hw)))

    # ---- kernel (closure over static shape constants) ----------------------
    def kernel(ref_ref, coef_ref, w1_ref, b1_ref, w2_ref, b2_ref, out_ref):
        refs_t = ref_ref[...]                                    # (n_points, T) f32
        # sublane-broadcast each point's row to nph rows -> (c_half, T)
        rep = jnp.concatenate(
            [jnp.broadcast_to(refs_t[p:p + 1, :], (nph, tile_pix))
             for p in range(n_points)], axis=0)
        angle = (rep * coef_ref[...]).astype(sin_dtype)          # (c_half, T)
        sc = jnp.concatenate([jnp.sin(angle), jnp.cos(angle)], axis=0)  # (c_in, T)
        h = jnp.dot(w1_ref[...], sc.astype(mxu_dtype),
                    preferred_element_type=jnp.float32) + b1_ref[...]   # conv #1
        h = jnp.maximum(h, 0.0)                                  # ReLU
        o = jnp.dot(w2_ref[...], h.astype(mxu_dtype),
                    preferred_element_type=jnp.float32) + b2_ref[...]   # conv #2
        out_ref[...] = o.astype(out_ref.dtype)

    out = pl.pallas_call(
        kernel,
        out_shape=jax.ShapeDtypeStruct((bs, out_dim, hw_pad), out_dtype),
        grid=(bs, n_tiles),
        in_specs=[
            pl.BlockSpec((None, n_points, tile_pix), lambda b, i: (b, 0, i)),  # refs
            pl.BlockSpec((c_half, 1), lambda b, i: (0, 0)),                    # angle coeffs
            pl.BlockSpec((hidden, c_in), lambda b, i: (0, 0)),                 # conv1 weight (permuted, ^T)
            pl.BlockSpec((hidden, 1), lambda b, i: (0, 0)),                    # conv1 bias
            pl.BlockSpec((out_dim, hidden), lambda b, i: (0, 0)),              # conv2 weight (^T)
            pl.BlockSpec((out_dim, 1), lambda b, i: (0, 0)),                   # conv2 bias
        ],
        out_specs=pl.BlockSpec((None, out_dim, tile_pix), lambda b, i: (b, 0, i)),
        compiler_params=pltpu.CompilerParams(
            dimension_semantics=("parallel", "parallel"),
            vmem_limit_bytes=48 * 1024 * 1024),
    )(refs, coef, w1p, b1c, w2t, b2c)

    if hw_pad != hw:
        out = out[:, :, :hw]
    return out.reshape(bs, out_dim, H, W)          # NCHW, no transpose needed


def sinpos_reference(reference_points, w1, b1, w2, b2, *, num_pos_feats, temperature):
    """Pure-JAX transcription of the PyTorch forward (NCHW), full f32."""
    bs, n_points, H, W = reference_points.shape
    scale = 2.0 * math.pi
    d = jnp.arange(num_pos_feats, dtype=jnp.float32)
    dim_t = 1.0 / (temperature ** (2.0 * jnp.floor(d / 2.0) / num_pos_feats))
    rp = reference_points[:, :, None] * scale                             # (bs,np,1,H,W)
    xywh_pos = rp * dim_t[None, None, :, None, None]                      # (bs,np,npf,H,W)
    pos_x = jnp.concatenate(
        [jnp.sin(xywh_pos[:, :, 0::2]), jnp.cos(xywh_pos[:, :, 1::2])], axis=3)
    out = pos_x.reshape(bs, -1, H, W)                                     # (bs, np*npf, H, W)
    h = jnp.einsum('bchw,cd->bdhw', out, w1,
                   precision=jax.lax.Precision.HIGHEST) + b1[None, :, None, None]
    h = jnp.maximum(h, 0.0)
    o = jnp.einsum('bdhw,do->bohw', h, w2,
                   precision=jax.lax.Precision.HIGHEST) + b2[None, :, None, None]
    return o


if __name__ == "__main__":
    # small shapes consistent with the module: n_points * num_pos_feats == in_dim
    bs, n_points, H, W = 2, 4, 16, 16
    num_pos_feats, temperature = 32, 20
    in_dim = n_points * num_pos_feats      # 128
    hidden_dim = 128
    out_dim = 128

    key = jax.random.PRNGKey(0)
    k_ref, k_w1, k_b1, k_w2, k_b2 = jax.random.split(key, 5)

    reference_points = jax.random.uniform(k_ref, (bs, n_points, H, W), jnp.float32)
    # deterministic synthetic 1x1-conv weights (channel matmuls, (in, out) layout)
    w1 = jax.random.normal(k_w1, (in_dim, hidden_dim), jnp.float32) * 0.05
    b1 = jax.random.normal(k_b1, (hidden_dim,), jnp.float32) * 0.01
    w2 = jax.random.normal(k_w2, (hidden_dim, out_dim), jnp.float32) * 0.05
    b2 = jax.random.normal(k_b2, (out_dim,), jnp.float32) * 0.01

    out = sinpos_pallas(reference_points, w1, b1, w2, b2,
                        num_pos_feats=num_pos_feats, temperature=temperature)
    out = jax.block_until_ready(out)

    ref = sinpos_reference(reference_points, w1, b1, w2, b2,
                           num_pos_feats=num_pos_feats, temperature=temperature)
    # bf16 MXU operands + bf16 output (f32 accumulation) vs full-f32 reference
    np.testing.assert_allclose(np.asarray(out).astype(np.float32), np.asarray(ref),
                               rtol=2.5e-2, atol=2.5e-2)

    print("KERNEL_OK")
</pallas_src>

<mosaic_0001>
module attributes {stable_mosaic.version = 11 : i64} {
  func.func @kernel(%arg0: i32, %arg1: i32, %arg2: memref<1x4x256xf32, #tpu.memory_space<vmem>>, %arg3: memref<64x1xf32, #tpu.memory_space<vmem>>, %arg4: memref<128x128xbf16, #tpu.memory_space<vmem>>, %arg5: memref<128x1xf32, #tpu.memory_space<vmem>>, %arg6: memref<128x128xbf16, #tpu.memory_space<vmem>>, %arg7: memref<128x1xf32, #tpu.memory_space<vmem>>, %arg8: memref<1x128x256xbf16, #tpu.memory_space<vmem>>) attributes {dimension_semantics = [#tpu.dimension_semantics<parallel>, #tpu.dimension_semantics<parallel>], iteration_bounds = array<i64: 2, 1>, scalar_prefetch = 0 : i64, scratch_operands = 0 : i64, tpu.core_type = #tpu.core_type<tc>, window_params = [{transform_indices = @transform_0, window_bounds = array<i64: 1, 4, 256>}, {pipeline_mode = #tpu.pipeline_mode<synchronous>, transform_indices = @transform_1, window_bounds = array<i64: 64, 1>}, {pipeline_mode = #tpu.pipeline_mode<synchronous>, transform_indices = @transform_2, window_bounds = array<i64: 128, 128>}, {pipeline_mode = #tpu.pipeline_mode<synchronous>, transform_indices = @transform_3, window_bounds = array<i64: 128, 1>}, {pipeline_mode = #tpu.pipeline_mode<synchronous>, transform_indices = @transform_4, window_bounds = array<i64: 128, 128>}, {pipeline_mode = #tpu.pipeline_mode<synchronous>, transform_indices = @transform_5, window_bounds = array<i64: 128, 1>}, {transform_indices = @transform_6, window_bounds = array<i64: 1, 128, 256>}]} {
    %c0 = arith.constant 0 : index
    %c0_0 = arith.constant 0 : index
    %c0_1 = arith.constant 0 : index
    %0 = vector.load %arg2[%c0, %c0_0, %c0_1] : memref<1x4x256xf32, #tpu.memory_space<vmem>>, vector<1x4x256xf32>
    %1 = vector.shape_cast %0 : vector<1x4x256xf32> to vector<4x256xf32>
    %2 = vector.extract_strided_slice %1 {offsets = [0, 0], sizes = [1, 256], strides = [1, 1]} : vector<4x256xf32> to vector<1x256xf32>
    %3 = vector.shape_cast %2 : vector<1x256xf32> to vector<1x256xf32>
    %4 = vector.broadcast %3 : vector<1x256xf32> to vector<16x256xf32>
    %5 = vector.extract_strided_slice %1 {offsets = [1, 0], sizes = [1, 256], strides = [1, 1]} : vector<4x256xf32> to vector<1x256xf32>
    %6 = vector.shape_cast %5 : vector<1x256xf32> to vector<1x256xf32>
    %7 = vector.broadcast %6 : vector<1x256xf32> to vector<16x256xf32>
    %8 = vector.extract_strided_slice %1 {offsets = [2, 0], sizes = [1, 256], strides = [1, 1]} : vector<4x256xf32> to vector<1x256xf32>
    %9 = vector.shape_cast %8 : vector<1x256xf32> to vector<1x256xf32>
    %10 = vector.broadcast %9 : vector<1x256xf32> to vector<16x256xf32>
    %11 = vector.extract_strided_slice %1 {offsets = [3, 0], sizes = [1, 256], strides = [1, 1]} : vector<4x256xf32> to vector<1x256xf32>
    %12 = vector.shape_cast %11 : vector<1x256xf32> to vector<1x256xf32>
    %13 = vector.broadcast %12 : vector<1x256xf32> to vector<16x256xf32>
    %14 = tpu.concatenate %4, %7, %10, %13 in 0 : vector<16x256xf32>, vector<16x256xf32>, vector<16x256xf32>, vector<16x256xf32> -> vector<64x256xf32>
    %c0_2 = arith.constant 0 : index
    %c0_3 = arith.constant 0 : index
    %15 = vector.load %arg3[%c0_2, %c0_3] : memref<64x1xf32, #tpu.memory_space<vmem>>, vector<64x1xf32>
    %16 = vector.broadcast %15 : vector<64x1xf32> to vector<64x256xf32>
    %17 = arith.mulf %14, %16 : vector<64x256xf32>
    %18 = math.sin %17 : vector<64x256xf32>
    %19 = math.cos %17 : vector<64x256xf32>
    %20 = tpu.concatenate %18, %19 in 0 : vector<64x256xf32>, vector<64x256xf32> -> vector<128x256xf32>
    %c0_4 = arith.constant 0 : index
    %c0_5 = arith.constant 0 : index
    %21 = vector.load %arg4[%c0_4, %c0_5] : memref<128x128xbf16, #tpu.memory_space<vmem>>, vector<128x128xbf16>
    %22 = arith.truncf %20 : vector<128x256xf32> to vector<128x256xbf16>
    %cst = arith.constant dense<0.000000e+00> : vector<128x256xf32>
    %23 = tpu.matmul %21, %22, %cst {dimension_numbers = #tpu.dot_dimension_numbers<[1], [0], [0], [1], [0, 0, 1, 1], [], []>} : vector<128x128xbf16>, vector<128x256xbf16>, vector<128x256xf32> -> vector<128x256xf32>
    %c0_6 = arith.constant 0 : index
    %c0_7 = arith.constant 0 : index
    %24 = vector.load %arg5[%c0_6, %c0_7] : memref<128x1xf32, #tpu.memory_space<vmem>>, vector<128x1xf32>
    %25 = vector.broadcast %24 : vector<128x1xf32> to vector<128x256xf32>
    %26 = arith.addf %23, %25 : vector<128x256xf32>
    %cst_8 = arith.constant 0.000000e+00 : f32
    %27 = vector.broadcast %cst_8 : f32 to vector<128x256xf32>
    %28 = arith.maximumf %26, %27 : vector<128x256xf32>
    %c0_9 = arith.constant 0 : index
    %c0_10 = arith.constant 0 : index
    %29 = vector.load %arg6[%c0_9, %c0_10] : memref<128x128xbf16, #tpu.memory_space<vmem>>, vector<128x128xbf16>
    %30 = arith.truncf %28 : vector<128x256xf32> to vector<128x256xbf16>
    %cst_11 = arith.constant dense<0.000000e+00> : vector<128x256xf32>
    %31 = tpu.matmul %29, %30, %cst_11 {dimension_numbers = #tpu.dot_dimension_numbers<[1], [0], [0], [1], [0, 0, 1, 1], [], []>} : vector<128x128xbf16>, vector<128x256xbf16>, vector<128x256xf32> -> vector<128x256xf32>
    %c0_12 = arith.constant 0 : index
    %c0_13 = arith.constant 0 : index
    %32 = vector.load %arg7[%c0_12, %c0_13] : memref<128x1xf32, #tpu.memory_space<vmem>>, vector<128x1xf32>
    %33 = vector.broadcast %32 : vector<128x1xf32> to vector<128x256xf32>
    %34 = arith.addf %31, %33 : vector<128x256xf32>
    %35 = arith.truncf %34 : vector<128x256xf32> to vector<128x256xbf16>
    %c0_14 = arith.constant 0 : index
    %c0_15 = arith.constant 0 : index
    %c0_16 = arith.constant 0 : index
    %36 = vector.load %arg8[%c0_14, %c0_15, %c0_16] : memref<1x128x256xbf16, #tpu.memory_space<vmem>>, vector<1x128x256xbf16>
    %37 = vector.shape_cast %36 : vector<1x128x256xbf16> to vector<128x256xbf16>
    %38 = vector.shape_cast %35 : vector<128x256xbf16> to vector<1x128x256xbf16>
    tpu.vector_store %arg8[%c0_14, %c0_15, %c0_16], %38 {strides = array<i32>} : memref<1x128x256xbf16, #tpu.memory_space<vmem>>, vector<1x128x256xbf16>,
    return
  }
  func.func @transform_0(%arg0: i32, %arg1: i32) -> (i32, i32, i32) {
    %c0_i32 = arith.constant 0 : i32
    %c0_i32_0 = arith.constant 0 : i32
    return %arg0, %c0_i32, %arg1 : i32, i32, i32
  }
  func.func @transform_1(%arg0: i32, %arg1: i32) -> (i32, i32) {
    %c0_i32 = arith.constant 0 : i32
    %c0_i32_0 = arith.constant 0 : i32
    %c0_i32_1 = arith.constant 0 : i32
    return %c0_i32, %c0_i32_0 : i32, i32
  }
  func.func @transform_2(%arg0: i32, %arg1: i32) -> (i32, i32) {
    %c0_i32 = arith.constant 0 : i32
    %c0_i32_0 = arith.constant 0 : i32
    %c0_i32_1 = arith.constant 0 : i32
    return %c0_i32, %c0_i32_0 : i32, i32
  }
  func.func @transform_3(%arg0: i32, %arg1: i32) -> (i32, i32) {
    %c0_i32 = arith.constant 0 : i32
    %c0_i32_0 = arith.constant 0 : i32
    %c0_i32_1 = arith.constant 0 : i32
    return %c0_i32, %c0_i32_0 : i32, i32
  }
  func.func @transform_4(%arg0: i32, %arg1: i32) -> (i32, i32) {
    %c0_i32 = arith.constant 0 : i32
    %c0_i32_0 = arith.constant 0 : i32
    %c0_i32_1 = arith.constant 0 : i32
    return %c0_i32, %c0_i32_0 : i32, i32
  }
  func.func @transform_5(%arg0: i32, %arg1: i32) -> (i32, i32) {
    %c0_i32 = arith.constant 0 : i32
    %c0_i32_0 = arith.constant 0 : i32
    %c0_i32_1 = arith.constant 0 : i32
    return %c0_i32, %c0_i32_0 : i32, i32
  }
  func.func @transform_6(%arg0: i32, %arg1: i32) -> (i32, i32, i32) {
    %c0_i32 = arith.constant 0 : i32
    %c0_i32_0 = arith.constant 0 : i32
    return %arg0, %c0_i32, %arg1 : i32, i32, i32
  }
}

</mosaic_0001>

<bundles_post_ra>
// kernel: tpu_custom_call.1
= control target key start
LH: loop header
LB: loop body
LE: loop exit
PB: predicated region body
PF: predicated region fallthrough
CT: control target
= control target key end

     0   :  { %11 = vsyncpa [#allocation3], 0  ;;  %s7264_s0 = inlined_call_operand.vmem [shape: f32[2,4,256], index: 0, kind: input, shape index: {}]   ;;  %s7265_s1 = inlined_call_operand.vmem [shape: f32[64,1], index: 1, kind: input, shape index: {}]   ;;  %s7266_s2 = inlined_call_operand.vmem [shape: bf16[128,128], index: 2, kind: input, shape index: {}]   ;;  %s7267_s3 = inlined_call_operand.vmem [shape: f32[128,1], index: 3, kind: input, shape index: {}]   ;;  %s7268_s4 = inlined_call_operand.vmem [shape: bf16[128,128], index: 4, kind: input, shape index: {}]   ;;  %s7269_s5 = inlined_call_operand.vmem [shape: f32[128,1], index: 5, kind: input, shape index: {}]   ;;  %s7270_s6 = inlined_call_operand.hbm [shape: bf16[2,128,256], index: 6, kind: output, shape index: {}]  }
   0x1   :  { %13 = vsyncpa [#allocation3 + $0x1], 0  ;;  %s5076_s21 = smov 0   ;;  %s5078_s22 = smov 0  }
   0x2   :  { %s5080_s23 = smov 0   ;;  %s5082_s24 = smov 0  }
   0x3   :  { %s5084_s25 = smov 0   ;;  %s5086_s26 = smov 0  }
   0x4 LB: > { %s4549_s27 = sadd.s32 4294967295, %s5029_s26   ;;  %s4550_s28 = sadd.s32 4294967294, %s5029_s26   ;;  %s5029_s26 = sphi %s5086_s26, %s19_s26   ;;  %s5025_s25 = sphi %s5084_s25, %s7651_s25   ;;  %s5021_s24 = sphi %s5082_s24, %s7650_s24   ;;  %s5017_s23 = sphi %s5080_s23, %s7649_s23   ;;  %s5013_s22 = sphi %s5078_s22, %s7648_s22   ;;  %s5009_s21 = sphi %s5076_s21, %s7647_s21  }
   0x5   : > { %s31_s29 = sadd.s32 1, %s5025_s25  ;;  %s173_s30 = sadd.s32 1, %s5017_s23 }
   0x6   : > { %p33_p0 = scmp.ge.s32.totalorder %s31_s29, 2  ;;  %p183_p1 = scmp.ne.s32.totalorder %s5017_s23, %s5013_s22 }
   0x7   : > { %p184_p2 = scmp.eq.s32.totalorder %s4549_s27, 1  ;;  %p189_p3 = scmp.ne.s32.totalorder %s5013_s22, %s5009_s21 }
   0x8   : > { %s7653_s29 = smov (%p33_p0, %s31_s29), 0  ;;  %p190_p5 = scmp.eq.s32.totalorder %s4550_s28, 1 }
   0x9   : > { %p5116_p4 = por %p184_p2, %p183_p1  ;;  %s168_s8 = ssub.s32 %s5025_s25, %s7653_s29 }
   0xa   : > { %p4553_p6 = scmp.ge.s32.totalorder %s5029_s26, 1  ;;  %p171_p7 = scmp.eq.s32.totalorder %s168_s8, 0 }
   0xb   : > { %p5123_p8 = por %p190_p5, %p189_p3  ;;  %p236_p9 = scmp.lt.s32.totalorder %s5029_s26, 3 }
   0xc   : > { %s5129_s10 = scalar_select %p171_p7, %s5017_s23, %s173_s30  }
   0xd   : > { %p237_p10 = pnand %p4553_p6, %p236_p9 }
   0xf   : > { %240 = sbr.rel (%p237_p10) target bundleno = 1194 (0x4aa), region = 44 }
  0x16   : > { %v358_v0 = vld [vmem:[%s7265_s1 + $0x10] sm:$0xff]  ;;  %v356_v1 = vld [vmem:[%s7265_s1] sm:$0xff]  ;;  %v7271_v2 = vmov 0   ;;  %v359_v3 = vld [vmem:[%s7265_s1 + $0x18] sm:$0xff]  ;;  %p271_p11 = scmp.lt.s32.totalorder %s5021_s24, 1  ;;  %v284_v41 = vlaneseq  ;;  %s267_s16 = sand.u32 1, %s5013_s22  }
  0x17   : > { %4869 = vset.pattern.permute.xlu1 %v7271_v2  ;;  %4868 = vset.pattern.permute.xlu0 %v7271_v2  ;;  %v357_v4 = vld [vmem:[%s7265_s1 + $0x8] sm:$0xff]  ;;  %v360_v6 = vld [vmem:[%s7265_s1 + $0x20] sm:$0xff]  ;;  %v363_v7 = vld [vmem:[%s7265_s1 + $0x38] sm:$0xff]  ;;  %s4554_s17 = sshll.u32 %s267_s16, 7  ;;  %s4739_s19 = sshll.u32 %s5021_s24, 11 }
  0x18   : > { %376 = vperm.xlu1 %4869, %v358_v0   ;;  %366 = vperm.xlu0 %4868, %v356_v1   ;;  %v361_v5 = vld [vmem:[%s7265_s1 + $0x28] sm:$0xff]  ;;  %v362_v8 = vld [vmem:[%s7265_s1 + $0x30] sm:$0xff]  ;;  %v3764_v10 = vld [vmem:[%s7267_s3] sm:$0xff]  ;;  %s272_s27 = scalar_select %p271_p11, %s5021_s24, 1  ;;  %v5257_v42 = vshrl.u32 %v284_v41, 7 }
  0x19   : > { %3940 = vmatprep.mubr.bf16.mxu0 %v7271_v2  ;;  %4261 = vmatprep.mubr.bf16.mxu1 %v7271_v2  ;;  %v3765_v9 = vld [vmem:[%s7267_s3 + $0x8] sm:$0xff]  ;;  %v3767_v11 = vld [vmem:[%s7267_s3 + $0x18] sm:$0xff]  ;;  %v3766_v12 = vld [vmem:[%s7267_s3 + $0x10] sm:$0xff]  ;;  %s7189_s18 = scalar_lea.vmem [#allocation2], %s4554_s17  ;;  %s7210_s30 = scalar_lea.hbm %s7270_s6, %s4739_s19 }
  0x1a   : > { %v3769_v13 = vld [vmem:[%s7267_s3 + $0x28] sm:$0xff]  ;;  %v3768_v14 = vld [vmem:[%s7267_s3 + $0x20] sm:$0xff]  ;;  %v3771_v15 = vld [vmem:[%s7267_s3 + $0x38] sm:$0xff]  ;;  %s4722_s28 = sshll.u32 %s272_s27, 3  ;;  %v304_v43 = vsub.s32 1, %v5257_v42  ;;  %v308_v44 = vsub.s32 5, %v5257_v42 }
  0x1b   : > { %v3770_v16 = vld [vmem:[%s7267_s3 + $0x30] sm:$0xff]  ;;  %v3773_v17 = vld [vmem:[%s7267_s3 + $0x48] sm:$0xff]  ;;  %v3772_v18 = vld [vmem:[%s7267_s3 + $0x40] sm:$0xff]  ;;  %s5262_s11 = scalar_lea.vmem %s7264_s0, %s4722_s28  ;;  %v286_v45 = vsub.s32 0, %v5257_v42  ;;  %v290_v55 = vsub.s32 4, %v5257_v42  ;;  %s4470_s20 = sshll.u32 %s7189_s18, 4  ;;  %s7212_s20 = int_to_ptr.vmem [resolvable:$true] %s4470_s20 }
  0x1c   : > { %381 = vperm.xlu1 %4869, %v359_v3   ;;  %371 = vperm.xlu0 %4868, %v357_v4   ;;  %v3775_v19 = vld [vmem:[%s7267_s3 + $0x58] sm:$0xff]  ;;  %v3774_v20 = vld [vmem:[%s7267_s3 + $0x50] sm:$0xff]  ;;  %v3777_v21 = vld [vmem:[%s7267_s3 + $0x68] sm:$0xff]  ;;  %s7218_s24 = scalar_lea.sflag [#allocation3], %s267_s16  ;;  %s4951_s8 = scalar_lea.vmem %s7212_s20, 2048 }
  0x1d   : > { %v3776_v22 = vld [vmem:[%s7267_s3 + $0x60] sm:$0xff]  ;;  %v3779_v23 = vld [vmem:[%s7267_s3 + $0x78] sm:$0xff]  ;;  %v3778_v24 = vld [vmem:[%s7267_s3 + $0x70] sm:$0xff]  ;;  %p4952_p12 = scmp.ne.s32.totalorder %s7212_s20, %s4951_s8 }
  0x1e   : > { %v4086_v25 = vld [vmem:[%s7269_s5 + $0x8] sm:$0xff]  ;;  %v4085_v26 = vld [vmem:[%s7269_s5] sm:$0xff]  ;;  %v4088_v27 = vld [vmem:[%s7269_s5 + $0x18] sm:$0xff] }
  0x1f   : > { %v4087_v28 = vld [vmem:[%s7269_s5 + $0x10] sm:$0xff]  ;;  %v4090_v29 = vld [vmem:[%s7269_s5 + $0x28] sm:$0xff]  ;;  %v4089_v30 = vld [vmem:[%s7269_s5 + $0x20] sm:$0xff]  ;;  %p4953_p13 = pnand %p4952_p12, %p5116_p4 }
  0x20   : > { %391 = vperm.xlu1 %4869, %v361_v5   ;;  %386 = vperm.xlu0 %4868, %v360_v6   ;;  %v4092_v31 = vld [vmem:[%s7269_s5 + $0x38] sm:$0xff]  ;;  %v4091_v32 = vld [vmem:[%s7269_s5 + $0x30] sm:$0xff]  ;;  %v4094_v33 = vld [vmem:[%s7269_s5 + $0x48] sm:$0xff] }
  0x21   : > { %v4093_v34 = vld [vmem:[%s7269_s5 + $0x40] sm:$0xff]  ;;  %v4096_v35 = vld [vmem:[%s7269_s5 + $0x58] sm:$0xff]  ;;  %v4095_v36 = vld [vmem:[%s7269_s5 + $0x50] sm:$0xff]  ;;  %p4954_p0 = pneg %p4953_p13 }
  0x22   : > { %v4098_v37 = vld [vmem:[%s7269_s5 + $0x68] sm:$0xff]  ;;  %v4097_v38 = vld [vmem:[%s7269_s5 + $0x60] sm:$0xff]  ;;  %v4100_v39 = vld [vmem:[%s7269_s5 + $0x78] sm:$0xff] }
  0x23   : > { %v4099_v40 = vld [vmem:[%s7269_s5 + $0x70] sm:$0xff]  ;;  %v5268_v46 = vld [vmem:[%s5262_s11] sm:$0xff] }
  0x24   : > { %401 = vperm.xlu1 %4869, %v363_v7   ;;  %396 = vperm.xlu0 %4868, %v362_v8   ;;  %v305_v47 = vrot.slane %v5268_v46, %v304_v43  ;;  %v309_v48 = vrot.slane %v5268_v46, %v308_v44  ;;  %v287_v49 = vrot.slane %v5268_v46, %v286_v45 }
  0x25   : > { %v291_v63 = vrot.slane %v5268_v46, %v290_v55 }
  0x26   : > { %v5273_v50 = vrot.slane %v305_v47, %v304_v43  ;;  %v5275_v51 = vrot.slane %v309_v48, %v304_v43  ;;  %v5277_v52 = vrot.slane %v287_v49, %v286_v45  ;;  %v7283_v47 = vmov 1326507024  }
  0x28   : > { %3787 = vperm.xlu1 %4869, %v3765_v9   ;;  %3782 = vperm.xlu0 %4868, %v3764_v10  }
  0x2c   : > { %3797 = vperm.xlu1 %4869, %v3767_v11   ;;  %3792 = vperm.xlu0 %4868, %v3766_v12   ;;  %v5300_v11 = vrot.slane %v291_v63, %v286_v45 }
  0x30   : > { %3807 = vperm.xlu1 %4869, %v3769_v13   ;;  %3802 = vperm.xlu0 %4868, %v3768_v14  }
  0x34   : > { %3817 = vperm.xlu1 %4869, %v3771_v15   ;;  %3812 = vperm.xlu0 %4868, %v3770_v16  }
  0x38   : > { %3827 = vperm.xlu1 %4869, %v3773_v17   ;;  %3822 = vperm.xlu0 %4868, %v3772_v18  }
  0x3c   : > { %3837 = vperm.xlu1 %4869, %v3775_v19   ;;  %3832 = vperm.xlu0 %4868, %v3774_v20  }
  0x40   : > { %3847 = vperm.xlu1 %4869, %v3777_v21   ;;  %3842 = vperm.xlu0 %4868, %v3776_v22  }
  0x44   : > { %3857 = vperm.xlu1 %4869, %v3779_v23   ;;  %3852 = vperm.xlu0 %4868, %v3778_v24  }
  0x48   : > { %4108 = vperm.xlu1 %4869, %v4086_v25   ;;  %4103 = vperm.xlu0 %4868, %v4085_v26  }
  0x4c   : > { %4118 = vperm.xlu1 %4869, %v4088_v27   ;;  %4113 = vperm.xlu0 %4868, %v4087_v28  }
  0x50   : > { %4128 = vperm.xlu1 %4869, %v4090_v29   ;;  %4123 = vperm.xlu0 %4868, %v4089_v30   ;;  %v7287_v29 = vmov 683565275  }
  0x54   : > { %4138 = vperm.xlu1 %4869, %v4092_v31   ;;  %4133 = vperm.xlu0 %4868, %v4091_v32   ;;  %v7285_v31 = vmov 2475754826  }
  0x58   : > { %4148 = vperm.xlu1 %4869, %v4094_v33   ;;  %4143 = vperm.xlu0 %4868, %v4093_v34   ;;  %v7280_v33 = vmov 2131351028  }
  0x5c   : > { %4158 = vperm.xlu1 %4869, %v4096_v35   ;;  %4153 = vperm.xlu0 %4868, %v4095_v36   ;;  %v7278_v35 = vmov 2102212464  }
  0x60   : > { %4168 = vperm.xlu1 %4869, %v4098_v37   ;;  %4163 = vperm.xlu0 %4868, %v4097_v38   ;;  %v7295_v37 = vmov 920167782  }
  0x64   : > { %4178 = vperm.xlu1 %4869, %v4100_v39   ;;  %4173 = vperm.xlu0 %4868, %v4099_v40  }
  0x97   : > { %v377_v53 = vpop.permute.xlu1 %376  ;;  %v367_v54 = vpop.permute.xlu0 %366 }
  0x98   : > { %v5281_v56 = vmul.f32 %v377_v53, %v5273_v50  ;;  %v5284_v57 = vmul.f32 %v377_v53, %v5275_v51  ;;  %v5287_v58 = vmul.f32 %v367_v54, %v5277_v52  ;;  %v5309_v20 = vmul.f32 %v367_v54, %v5300_v11 }
  0x9a   : > { %7414 = vst [vmem:[#allocation5_spill] sm:$0xff] %v5281_v56  ;;  %7415 = vst [vmem:[#allocation6_spill] sm:$0xff] %v5284_v57  ;;  %v7277_v59 = vand.u32 2147483647, %v5281_v56  ;;  %v839_v60 = vand.u32 2139095040, %v5281_v56  ;;  %v943_v62 = vand.u32 2139095040, %v5284_v57 }
  0x9b   : > { %7416 = vst [vmem:[#allocation7_spill] sm:$0xff] %v5287_v58  ;;  %v7276_v61 = vand.u32 2147483647, %v5284_v57  ;;  %v423_v3 = vand.u32 2139095040, %v5287_v58  ;;  %v7273_v6 = vand.u32 2147483647, %v5287_v58 }
  0x9c   : > { %v840_v0 = vshrl.u32 %v839_v60, 23  ;;  %v843_v1 = vand.u32 8388607, %v7277_v59  ;;  %v944_v4 = vshrl.u32 %v943_v62, 23 }
  0x9d   : > { %v947_v5 = vand.u32 8388607, %v7276_v61  ;;  %v424_v8 = vshrl.u32 %v423_v3, 23  ;;  %v5304_v16 = vand.u32 8388607, %v7273_v6  ;;  %v5510_v6 = vpop.permute.xlu0 %371 }
  0x9e   : > { %v4573_v7 = vadd.s32 4294967169, %v840_v0  ;;  %v844_v9 = vor.u32 8388608, %v843_v1  ;;  %v4577_v10 = vadd.s32 4294967169, %v944_v4 }
  0x9f   : > { %v4557_v13 = vadd.s32 4294967169, %v424_v8  ;;  %v948_v14 = vor.u32 8388608, %v947_v5  ;;  %v428_v27 = vor.u32 8388608, %v5304_v16 }
  0xa0   : > { %v846_v12 = vadd.s32 1, %v4573_v7  ;;  %v950_v15 = vadd.s32 1, %v4577_v10  ;;  %v5306_v19 = vshll.u32 %v844_v9, 8 }
  0xa1   : > { %v430_v17 = vadd.s32 1, %v4557_v13  ;;  %v5313_v26 = vshll.u32 %v948_v14, 8 }
  0xa2   : > { %vm847_vm0 = vcmp.gt.s32.totalorder %v846_v12, 0  ;;  %vm951_vm1 = vcmp.gt.s32.totalorder %v950_v15, 0 }
  0xa3   : > { %v848_v18 = vsel %vm847_vm0, %v846_v12, 0  ;;  %v952_v23 = vsel %vm951_vm1, %v950_v15, 0  ;;  %vm431_vm2 = vcmp.gt.s32.totalorder %v430_v17, 0 }
  0xa4   : > { %v849_v21 = vshrl.u32 %v848_v18, 5  ;;  %v850_v22 = vand.u32 31, %v848_v18  ;;  %v5311_v24 = vshrl.u32 %v952_v23, 5  ;;  %v954_v25 = vand.u32 31, %v952_v23 }
  0xa5   : > { %v5322_v39 = vsel %vm431_vm2, %v430_v17, 0 }
  0xa6   : > { %v851_v28 = vsub.s32 32, %v850_v22  ;;  %v853_v30 = vshll.u32 %v7287_v29, %v850_v22  ;;  %v856_v32 = vshll.u32 %v7285_v31, %v850_v22  ;;  %v859_v34 = vshll.u32 %v7280_v33, %v850_v22 }
  0xa7   : > { %v862_v36 = vshll.u32 %v7278_v35, %v850_v22  ;;  %v865_v38 = vshll.u32 %v7295_v37, %v850_v22  ;;  %vm868_vm3 = vcmp.lt.s32.totalorder %v849_v21, 1  ;;  %vm869_vm4 = vcmp.lt.s32.totalorder %v849_v21, 2 }
  0xa8   : > { %v852_v40 = vshrl.u32 %v7287_v29, %v851_v28  ;;  %v854_v41 = vshrl.u32 %v7285_v31, %v851_v28  ;;  %v857_v43 = vshrl.u32 %v7280_v33, %v851_v28  ;;  %v860_v44 = vshrl.u32 %v7278_v35, %v851_v28 }
  0xa9   : > { %v863_v45 = vshrl.u32 %v7295_v37, %v851_v28  ;;  %v866_v48 = vshrl.u32 %v7283_v47, %v851_v28  ;;  %vm870_vm5 = vcmp.lt.s32.totalorder %v849_v21, 3  ;;  %v955_v55 = vsub.s32 32, %v954_v25 }
  0xaa   : > { %v855_v49 = vor.u32 %v854_v41, %v853_v30  ;;  %v858_v53 = vor.u32 %v857_v43, %v856_v32  ;;  %v861_v54 = vor.u32 %v860_v44, %v859_v34  ;;  %vm871_vm6 = vcmp.lt.s32.totalorder %v849_v21, 4 }
  0xab   : > { %v864_v60 = vor.u32 %v863_v45, %v862_v36  ;;  %v867_v62 = vor.u32 %v866_v48, %v865_v38  ;;  %v957_v63 = vshll.u32 %v7287_v29, %v954_v25  ;;  %v960_v9 = vshll.u32 %v7285_v31, %v954_v25 }
  0xac   : > { %v872_v0 = vsel %vm868_vm3, %v852_v40, %v855_v49  ;;  %v873_v1 = vsel %vm871_vm6, %v861_v54, 2102212464  ;;  %v876_v3 = vsel %vm868_vm3, %v855_v49, %v858_v53  ;;  %v880_v4 = vsel %vm868_vm3, %v858_v53, %v861_v54 }
  0xad   : > { %v874_v5 = vsel %vm870_vm5, %v858_v53, %v873_v1  ;;  %v877_v7 = vsel %vm871_vm6, %v864_v60, 920167782  ;;  %v881_v8 = vsel %vm871_vm6, %v867_v62, 1326507024  ;;  %v956_v13 = vshrl.u32 %v7287_v29, %v955_v55 }
  0xae   : > { %v878_v10 = vsel %vm870_vm5, %v861_v54, %v877_v7  ;;  %v882_v12 = vsel %vm870_vm5, %v864_v60, %v881_v8  ;;  %v958_v14 = vshrl.u32 %v7285_v31, %v955_v55  ;;  %v875_v15 = vsel %vm869_vm4, %v872_v0, %v874_v5 }
  0xaf   : > { %v879_v17 = vsel %vm869_vm4, %v876_v3, %v878_v10  ;;  %v883_v18 = vsel %vm869_vm4, %v880_v4, %v882_v12  ;;  %v961_v22 = vshrl.u32 %v7280_v33, %v955_v55  ;;  %v963_v38 = vshll.u32 %v7280_v33, %v954_v25 }
  0xb0   : > { %v5345_v23 = vmul.u32.u64.low %v5306_v19, %v883_v18  ;;  %v5346_v28 = vmul.u32.u64.high %v5306_v19, %v883_v18, %v5345_v23  ;;  %v5349_v30 = vmul.u32.u64.low %v5306_v19, %v879_v17  ;;  %v5350_v32 = vmul.u32.u64.high %v5306_v19, %v879_v17, %v5349_v30 }
  0xb1   : > { %v959_v34 = vor.u32 %v958_v14, %v957_v63  ;;  %v962_v36 = vor.u32 %v961_v22, %v960_v9  ;;  %v964_v40 = vshrl.u32 %v7278_v35, %v955_v55  ;;  %v966_v21 = vshll.u32 %v7278_v35, %v954_v25  ;;  %v5372_v9 = vpop.permute.xlu1 %381 }
  0xb2   : > { %v967_v41 = vshrl.u32 %v7295_v37, %v955_v55  ;;  %v969_v43 = vshll.u32 %v7295_v37, %v954_v25  ;;  %v970_v44 = vshrl.u32 %v7283_v47, %v955_v55  ;;  %v891_v45 = vmul.u32 %v5306_v19, %v875_v15 }
  0xb3   : > { %v965_v48 = vor.u32 %v964_v40, %v963_v38  ;;  %vm972_vm7 = vcmp.lt.s32.totalorder %v5311_v24, 1  ;;  %vm973_vm8 = vcmp.lt.s32.totalorder %v5311_v24, 2  ;;  %vm893_vm9 = vc.u32 %v5346_v28, %v5349_v30 }
  0xb4   : > { %v894_v49 = vadd.s32 1, %v5350_v32  ;;  %v968_v53 = vor.u32 %v967_v41, %v966_v21  ;;  %vm974_vm10 = vcmp.lt.s32.totalorder %v5311_v24, 3  ;;  %v971_v54 = vor.u32 %v970_v44, %v969_v43 }
  0xb5   : > { %vm975_vm11 = vcmp.lt.s32.totalorder %v5311_v24, 4  ;;  %v976_v25 = vsel %vm972_vm7, %v956_v13, %v959_v34  ;;  %v980_v55 = vsel %vm972_vm7, %v959_v34, %v962_v36  ;;  %v984_v63 = vsel %vm972_vm7, %v962_v36, %v965_v48 }
  0xb6   : > { %v895_v19 = vsel %vm893_vm9, %v894_v49, %v5350_v32  ;;  %v977_v60 = vsel %vm975_vm11, %v965_v48, 2102212464  ;;  %v981_v62 = vsel %vm975_vm11, %v968_v53, 920167782  ;;  %v985_v4 = vsel %vm975_vm11, %v971_v54, 1326507024 }
  0xb7   : > { %v896_v0 = vadd.s32 %v895_v19, %v891_v45  ;;  %v978_v1 = vsel %vm974_vm10, %v962_v36, %v977_v60  ;;  %v982_v3 = vsel %vm974_vm10, %v965_v48, %v981_v62  ;;  %v986_v8 = vsel %vm974_vm10, %v968_v53, %v985_v4 }
  0xb8   : > { %v979_v5 = vsel %vm973_vm8, %v976_v25, %v978_v1  ;;  %v983_v7 = vsel %vm973_vm8, %v980_v55, %v982_v3  ;;  %v987_v12 = vsel %vm973_vm8, %v984_v63, %v986_v8  ;;  %v434_v18 = vand.u32 31, %v5322_v39 }
  0xb9   : > { %v897_v10 = vadd.s32 536870912, %v896_v0  ;;  %v5377_v13 = vmul.u32.u64.low %v5313_v26, %v983_v7  ;;  %v5378_v14 = vmul.u32.u64.high %v5313_v26, %v983_v7, %v5377_v13  ;;  %v5390_v23 = vshll.u32 %v428_v27, 8 }
  0xba   : > { %v5382_v15 = vmul.u32.u64.low %v5313_v26, %v987_v12  ;;  %v5383_v17 = vmul.u32.u64.high %v5313_v26, %v987_v12, %v5382_v15  ;;  %v527_v24 = vand.u32 2139095040, %v5309_v20  ;;  %v5395_v32 = vmul.f32 %v5372_v9, %v5273_v50 }
  0xbb   : > { %v5386_v22 = vshrl.u32 %v897_v10, 30  ;;  %v995_v34 = vmul.u32 %v5313_v26, %v979_v5  ;;  %v433_v36 = vshrl.u32 %v5322_v39, 5  ;;  %v435_v38 = vsub.s32 32, %v434_v18 }
  0xbc   : > { %7418 = vst [vmem:[#allocation9_spill] sm:$0xff] %v5395_v32  ;;  %v437_v40 = vshll.u32 %v7287_v29, %v434_v18  ;;  %v998_v41 = vadd.s32 1, %v5378_v14  ;;  %v440_v16 = vshll.u32 %v7285_v31, %v434_v18  ;;  %v443_v27 = vshll.u32 %v7280_v33, %v434_v18 }
  0xbd   : > { %7417 = vst [vmem:[#allocation8_spill] sm:$0xff] %v5386_v22  ;;  %v899_v21 = vshll.u32 %v5386_v22, 30  ;;  %vm997_vm12 = vc.u32 %v5383_v17, %v5377_v13  ;;  %v438_v50 = vshrl.u32 %v7285_v31, %v435_v38  ;;  %v446_v26 = vshll.u32 %v7278_v35, %v434_v18 }
  0xbe   : > { %v449_v39 = vshll.u32 %v7295_v37, %v434_v18  ;;  %v999_v44 = vsel %vm997_vm12, %v998_v41, %v5378_v14  ;;  %v441_v45 = vshrl.u32 %v7280_v33, %v435_v38  ;;  %v444_v48 = vshrl.u32 %v7278_v35, %v435_v38 }
  0xbf   : > { %v5409_v43 = vsub.s32 %v896_v0, %v899_v21  ;;  %v1000_v49 = vadd.s32 %v999_v44, %v995_v34  ;;  %v439_v53 = vor.u32 %v438_v50, %v437_v40  ;;  %v447_v54 = vshrl.u32 %v7295_v37, %v435_v38 }
  0xc0   : > { %v450_v25 = vshrl.u32 %v7283_v47, %v435_v38  ;;  %v442_v19 = vor.u32 %v441_v45, %v440_v16  ;;  %v445_v60 = vor.u32 %v444_v48, %v443_v27  ;;  %vm452_vm13 = vcmp.lt.s32.totalorder %v433_v36, 1 }
  0xc1   : > { %v902_v55 = vsub.s32 0, %v5409_v43  ;;  %v1001_v62 = vadd.s32 536870912, %v1000_v49  ;;  %v448_v63 = vor.u32 %v447_v54, %v446_v26  ;;  %vm455_vm14 = vcmp.lt.s32.totalorder %v433_v36, 4 }
  0xc2   : > { %v451_v0 = vor.u32 %v450_v25, %v449_v39  ;;  %v457_v3 = vsel %vm455_vm14, %v445_v60, 2102212464  ;;  %v460_v4 = vsel %vm452_vm13, %v439_v53, %v442_v19  ;;  %v464_v5 = vsel %vm452_vm13, %v442_v19, %v445_v60 }
  0xc3   : > { %v4574_v1 = vmin.u32 %v902_v55, %v5409_v43  ;;  %v5420_v7 = vshrl.u32 %v1001_v62, 30  ;;  %vm454_vm15 = vcmp.lt.s32.totalorder %v433_v36, 3  ;;  %v461_v8 = vsel %vm455_vm14, %v448_v63, 920167782 }
  0xc4   : > { %v465_v10 = vsel %vm455_vm14, %v451_v0, 1326507024  ;;  %v436_v12 = vshrl.u32 %v7287_v29, %v435_v38  ;;  %vm453_vm0 = vcmp.lt.s32.totalorder %v433_v36, 2  ;;  %v462_v14 = vsel %vm454_vm15, %v445_v60, %v461_v8 }
  0xc5   : > { %7419 = vst [vmem:[#allocation10_spill] sm:$0xff] %v5420_v7  ;;  %v466_v15 = vsel %vm454_vm15, %v448_v63, %v465_v10  ;;  %v904_v18 = vclz %v4574_v1  ;;  %v1003_v34 = vshll.u32 %v5420_v7, 30  ;;  %v463_v40 = vsel %vm453_vm0, %v460_v4, %v462_v14 }
  0xc6   : > { %v467_v21 = vsel %vm453_vm0, %v464_v5, %v466_v15  ;;  %v456_v41 = vsel %vm452_vm13, %v436_v12, %v439_v53  ;;  %v458_v16 = vsel %vm454_vm15, %v442_v19, %v457_v3  ;;  %v528_v44 = vshrl.u32 %v527_v24, 23 }
  0xc7   : > { %v5428_v27 = vmul.u32.u64.low %v5390_v23, %v467_v21  ;;  %v5429_v50 = vmul.u32.u64.high %v5390_v23, %v467_v21, %v5428_v27  ;;  %v5431_v26 = vsub.s32 %v1000_v49, %v1003_v34  ;;  %v4575_v45 = vadd.s32 4294967294, %v904_v18 }
  0xc8   : > { %v5434_v38 = vmul.u32.u64.low %v5390_v23, %v463_v40  ;;  %v5435_v39 = vmul.u32.u64.high %v5390_v23, %v463_v40, %v5434_v38  ;;  %v459_v54 = vsel %vm453_vm0, %v456_v41, %v458_v16  ;;  %v1047_v53 = vand.u32 2139095040, %v5395_v32 }
  0xc9   : > { %v1006_v48 = vsub.s32 0, %v5431_v26  ;;  %v4561_v55 = vadd.s32 4294967169, %v528_v44  ;;  %v475_v19 = vmul.u32 %v5390_v23, %v459_v54  ;;  %vm4576_vm2 = vcmp.lt.s32.totalorder %v4575_v45, 0 }
  0xca   : > { %vm477_vm1 = vc.u32 %v5429_v50, %v5434_v38  ;;  %v478_v49 = vadd.s32 1, %v5435_v39  ;;  %v1048_v63 = vshrl.u32 %v1047_v53, 23  ;;  %v322_v0 = vsub.s32 2, %v5257_v42 }
  0xcb   : > { %v4578_v25 = vmin.u32 %v1006_v48, %v5431_v26  ;;  %v534_v36 = vadd.s32 1, %v4561_v55  ;;  %v907_v1 = vsel %vm4576_vm2, 0, %v4575_v45  ;;  %v326_v8 = vsub.s32 6, %v5257_v42 }
  0xcc   : > { %v479_v24 = vsel %vm477_vm1, %v478_v49, %v5435_v39  ;;  %v4581_v5 = vadd.s32 4294967169, %v1048_v63  ;;  %v912_v14 = vsub.s32 4294967266, %v907_v1  ;;  %v7275_v23 = vand.u32 2147483647, %v5395_v32 }
  0xcd   : > { %v1008_v60 = vclz %v4578_v25  ;;  %v480_v62 = vadd.s32 %v479_v24, %v475_v19  ;;  %vm535_vm3 = vcmp.gt.s32.totalorder %v534_v36, 0  ;;  %v323_v18 = vrot.slane %v5268_v46, %v322_v0 }
  0xce   : > { %v1054_v12 = vadd.s32 1, %v4581_v5  ;;  %v327_v40 = vrot.slane %v5268_v46, %v326_v8  ;;  %v536_v41 = vsel %vm535_vm3, %v534_v36, 0  ;;  %v908_v27 = vsub.s32 32, %v907_v1 }
  0xcf   : > { %v4579_v3 = vadd.s32 4294967294, %v1008_v60  ;;  %v481_v4 = vadd.s32 536870912, %v480_v62  ;;  %v913_v39 = vadd.s32 127, %v912_v14  ;;  %v1051_v45 = vand.u32 8388607, %v7275_v23 }
  0xd0   : > { %vm1055_vm5 = vcmp.gt.s32.totalorder %v1054_v12, 0  ;;  %v5464_v54 = vmul.f32 %v5372_v9, %v5275_v51  ;;  %v5466_v25 = vrot.slane %v323_v18, %v322_v0  ;;  %v892_v46 = vadd.s32 %v5349_v30, %v5346_v28 }
  0xd1   : > { %v5449_v10 = vshrl.u32 %v481_v4, 30  ;;  %vm4580_vm4 = vcmp.lt.s32.totalorder %v4579_v3, 0  ;;  %v1056_v34 = vsel %vm1055_vm5, %v1054_v12, 0  ;;  %v996_v49 = vadd.s32 %v5377_v13, %v5383_v17 }
  0xd2   : > { %v1058_v16 = vand.u32 31, %v1056_v34  ;;  %v5457_v44 = vsel %vm4580_vm4, 0, %v4579_v3  ;;  %7421 = vst [vmem:[#allocation12_spill] sm:$0xff] %v5464_v54  ;;  %v5472_v55 = vshrl.u32 %v536_v41, 5  ;;  %v5474_v19 = vrot.slane %v327_v40, %v322_v0 }
  0xd3   : > { %7420 = vst [vmem:[#allocation11_spill] sm:$0xff] %v5449_v10  ;;  %v483_v15 = vshll.u32 %v5449_v10, 30  ;;  %v909_v60 = vshll.u32 %v5409_v43, %v907_v1  ;;  %v1016_v24 = vsub.s32 4294967266, %v5457_v44  ;;  %v910_v9 = vshrl.u32 %v892_v46, %v908_v27 }
  0xd4   : > { %v1059_v53 = vsub.s32 32, %v1058_v16  ;;  %v914_v63 = vshll.u32 %v913_v39, 23  ;;  %v1052_v36 = vor.u32 8388608, %v1051_v45  ;;  %v1061_v13 = vshll.u32 %v7287_v29, %v1058_v16 }
  0xd5   : > { %v5455_v21 = vsub.s32 %v480_v62, %v483_v15  ;;  %v5478_v62 = vand.u32 31, %v536_v41  ;;  %v7274_v0 = vand.u32 2147483647, %v5464_v54  ;;  %v1064_v43 = vshll.u32 %v7285_v31, %v1058_v16 }
  0xd6   : > { %v1062_v51 = vshrl.u32 %v7285_v31, %v1059_v53  ;;  %v1065_v28 = vshrl.u32 %v7280_v33, %v1059_v53  ;;  %v1068_v17 = vshrl.u32 %v7278_v35, %v1059_v53  ;;  %v1067_v1 = vshll.u32 %v7280_v33, %v1058_v16 }
  0xd7   : > { %v486_v48 = vsub.s32 0, %v5455_v21  ;;  %7422 = vst [vmem:[#allocation13_spill] sm:$0xff] %v5478_v62  ;;  %v1070_v3 = vshll.u32 %v7278_v35, %v1058_v16  ;;  %v1071_v4 = vshrl.u32 %v7295_v37, %v1059_v53  ;;  %v1017_v5 = vadd.s32 127, %v1016_v24 }
  0xd8   : > { %v1057_v8 = vshrl.u32 %v1056_v34, 5  ;;  %v1063_v12 = vor.u32 %v1062_v51, %v1061_v13  ;;  %v1074_v14 = vshrl.u32 %v7283_v47, %v1059_v53  ;;  %v1066_v15 = vor.u32 %v1065_v28, %v1064_v43 }
  0xd9   : > { %v4558_v30 = vmin.u32 %v486_v48, %v5455_v21  ;;  %v1069_v18 = vor.u32 %v1068_v17, %v1067_v1  ;;  %v1072_v40 = vor.u32 %v1071_v4, %v1070_v3  ;;  %v1073_v41 = vshll.u32 %v7295_v37, %v1058_v16 }
  0xda   : > { %v911_v27 = vor.u32 %v910_v9, %v909_v60  ;;  %v5494_v39 = vadd.s32 %v5434_v38, %v5429_v50  ;;  %v5497_v48 = vsub.s32 32, %v5478_v62  ;;  %v915_v46 = vor.u32 4788187, %v914_v63 }
  0xdb   : > { %v488_v45 = vclz %v4558_v30  ;;  %v1075_v24 = vor.u32 %v1074_v14, %v1073_v41  ;;  %v1092_v34 = vshll.u32 %v1052_v36, 8  ;;  %v1151_v51 = vand.u32 2139095040, %v5464_v54 }
  0xdc   : > { %v1012_v28 = vsub.s32 32, %v5457_v44  ;;  %v1018_v13 = vshll.u32 %v1017_v5, 23  ;;  %vm1076_vm6 = vcmp.lt.s32.totalorder %v1057_v8, 1  ;;  %vm1079_vm7 = vcmp.lt.s32.totalorder %v1057_v8, 4 }
  0xdd   : > { %v1081_v16 = vsel %vm1079_vm7, %v1069_v18, 2102212464  ;;  %v1084_v60 = vsel %vm1076_vm6, %v1063_v12, %v1066_v15  ;;  %v1085_v9 = vsel %vm1079_vm7, %v1072_v40, 920167782  ;;  %v1155_v50 = vand.u32 8388607, %v7274_v0 }
  0xde   : > { %v4559_v38 = vadd.s32 4294967294, %v488_v45  ;;  %v1060_v30 = vshrl.u32 %v7287_v29, %v1059_v53  ;;  %vm1078_vm8 = vcmp.lt.s32.totalorder %v1057_v8, 3  ;;  %v1088_v63 = vsel %vm1076_vm6, %v1066_v15, %v1069_v18 }
  0xdf   : > { %vm1077_vm9 = vcmp.lt.s32.totalorder %v1057_v8, 2  ;;  %v1086_v36 = vsel %vm1078_vm8, %v1069_v18, %v1085_v9  ;;  %v1089_v17 = vsel %vm1079_vm7, %v1075_v24, 1326507024  ;;  %v1152_v43 = vshrl.u32 %v1151_v51, 23 }
  0xe0   : > { %v1080_v1 = vsel %vm1076_vm6, %v1060_v30, %v1063_v12  ;;  %v1082_v3 = vsel %vm1078_vm8, %v1066_v15, %v1081_v16  ;;  %v1087_v4 = vsel %vm1077_vm9, %v1084_v60, %v1086_v36  ;;  %v1090_v5 = vsel %vm1078_vm8, %v1072_v40, %v1089_v17 }
  0xe1   : > { %v1091_v14 = vsel %vm1077_vm9, %v1088_v63, %v1090_v5  ;;  %v5506_v41 = vmul.u32.u64.low %v1092_v34, %v1087_v4  ;;  %v5507_v2 = vmul.u32.u64.high %v1092_v34, %v1087_v4, %v5506_v41  ;;  %v4585_v45 = vadd.s32 4294967169, %v1152_v43 }
  0xe2   : > { %v916_v53 = vand.u32 2147483647, %v915_v46  ;;  %vm4560_vm10 = vcmp.lt.s32.totalorder %v4559_v38, 0  ;;  %v5512_v0 = vmul.u32.u64.low %v1092_v34, %v1091_v14  ;;  %v5513_v18 = vmul.u32.u64.high %v1092_v34, %v1091_v14, %v5512_v0 }
  0xe3   : > { %v1014_v24 = vshrl.u32 %v996_v49, %v1012_v28  ;;  %v5515_v12 = vor.u32 4788187, %v1018_v13  ;;  %v1083_v15 = vsel %vm1077_vm9, %v1080_v1, %v1082_v3  ;;  %v1158_v40 = vadd.s32 1, %v4585_v45 }
  0xe4   : > { %v918_v51 = vcvt.s32.f32 %v911_v27  ;;  %v5520_v16 = vshll.u32 %v7278_v35, %v5478_v62  ;;  %v1156_v60 = vor.u32 8388608, %v1155_v50  ;;  %v5524_v9 = vmul.f32 %v5510_v6, %v5277_v52 }
  0xe5   : > { %v1013_v46 = vshll.u32 %v5431_v26, %v5457_v44  ;;  %v5528_v0 = vsel %vm4560_vm10, 0, %v4559_v38  ;;  %v1102_v49 = vadd.s32 1, %v5507_v2  ;;  %vm1159_vm11 = vcmp.gt.s32.totalorder %v1158_v40, 0 }
  0xe6   : > { %7423 = vst [vmem:[#allocation14_spill] sm:$0xff] %v5524_v9  ;;  %v5531_v8 = vmul.f32 %v918_v51, %v916_v53  ;;  %v1099_v27 = vmul.u32 %v1092_v34, %v1083_v15  ;;  %vm1101_vm12 = vc.u32 %v5513_v18, %v5506_v41  ;;  %v1160_v28 = vsel %vm1159_vm11, %v1158_v40, 0 }
  0xe7   : > { %v5535_v13 = vor.u32 %v1014_v24, %v1013_v46  ;;  %v1020_v52 = vand.u32 2147483647, %v5515_v12  ;;  %v1103_v50 = vsel %vm1101_vm12, %v1102_v49, %v5507_v2  ;;  %v1162_v30 = vand.u32 31, %v1160_v28 }
  0xe8   : > { %v496_v26 = vsub.s32 4294967266, %v5528_v0  ;;  %v1104_v44 = vadd.s32 %v1103_v50, %v1099_v27  ;;  %v5540_v38 = vshll.u32 %v1156_v60, 8  ;;  %v7282_v63 = vand.u32 2147483647, %v5524_v9 }
  0xe9   : > { %v1161_v36 = vshrl.u32 %v1160_v28, 5  ;;  %v1163_v34 = vsub.s32 32, %v1162_v30  ;;  %v1165_v17 = vshll.u32 %v7287_v29, %v1162_v30  ;;  %v631_v43 = vand.u32 2139095040, %v5524_v9 }
  0xea   : > { %v1105_v1 = vadd.s32 536870912, %v1104_v44  ;;  %v1168_v3 = vshll.u32 %v7285_v31, %v1162_v30  ;;  %v1171_v4 = vshll.u32 %v7280_v33, %v1162_v30  ;;  %v1174_v2 = vshll.u32 %v7278_v35, %v1162_v30 }
  0xeb   : > { %v1166_v5 = vshrl.u32 %v7285_v31, %v1163_v34  ;;  %v1169_v14 = vshrl.u32 %v7280_v33, %v1163_v34  ;;  %v1172_v45 = vshrl.u32 %v7278_v35, %v1163_v34  ;;  %v1177_v53 = vshll.u32 %v7295_v37, %v1162_v30 }
  0xec   : > { %v5552_v24 = vshrl.u32 %v1105_v1, 30  ;;  %v1164_v15 = vshrl.u32 %v7287_v29, %v1163_v34  ;;  %v1175_v40 = vshrl.u32 %v7295_v37, %v1163_v34  ;;  %v1178_v51 = vshrl.u32 %v7283_v47, %v1163_v34 }
  0xed   : > { %v1167_v60 = vor.u32 %v1166_v5, %v1165_v17  ;;  %v1170_v46 = vor.u32 %v1169_v14, %v1168_v3  ;;  %v1173_v49 = vor.u32 %v1172_v45, %v1171_v4  ;;  %vm1180_vm13 = vcmp.lt.s32.totalorder %v1161_v36, 1  ;;  %v5564_v45 = vpop.permute.xlu1 %391 }
  0xee   : > { %7424 = vst [vmem:[#allocation15_spill] sm:$0xff] %v5552_v24  ;;  %v1107_v27 = vshll.u32 %v5552_v24, 30  ;;  %v1176_v28 = vor.u32 %v1175_v40, %v1174_v2  ;;  %v1179_v50 = vor.u32 %v1178_v51, %v1177_v53  ;;  %vm1181_vm14 = vcmp.lt.s32.totalorder %v1161_v36, 2 }
  0xef   : > { %vm1182_vm15 = vcmp.lt.s32.totalorder %v1161_v36, 3  ;;  %vm1183_vm0 = vcmp.lt.s32.totalorder %v1161_v36, 4  ;;  %v1188_v30 = vsel %vm1180_vm13, %v1167_v60, %v1170_v46  ;;  %v1192_v1 = vsel %vm1180_vm13, %v1170_v46, %v1173_v49 }
  0xf0   : > { %v5558_v23 = vsub.s32 %v1104_v44, %v1107_v27  ;;  %v1185_v61 = vsel %vm1183_vm0, %v1173_v49, 2102212464  ;;  %v1189_v59 = vsel %vm1183_vm0, %v1176_v28, 920167782  ;;  %v1193_v35 = vsel %vm1183_vm0, %v1179_v50, 1326507024 }
  0xf1   : > { %v1184_v33 = vsel %vm1180_vm13, %v1164_v15, %v1167_v60  ;;  %v1190_v34 = vsel %vm1182_vm15, %v1173_v49, %v1189_v59  ;;  %v1194_v17 = vsel %vm1182_vm15, %v1176_v28, %v1193_v35  ;;  %v632_v3 = vshrl.u32 %v631_v43, 23 }
  0xf2   : > { %vm7345_vm1 = vcmp.lt.s32.totalorder %v5281_v56, 0  ;;  %v1110_v4 = vsub.s32 0, %v5558_v23  ;;  %v1186_v2 = vsel %vm1182_vm15, %v1170_v46, %v1185_v61  ;;  %v1191_v5 = vsel %vm1181_vm14, %v1188_v30, %v1190_v34 }
  0xf3   : > { %v1195_v14 = vsel %vm1181_vm14, %v1192_v1, %v1194_v17  ;;  %v5571_v15 = vmul.u32.u64.low %v5540_v38, %v1191_v5  ;;  %v5572_v59 = vmul.u32.u64.high %v5540_v38, %v1191_v5, %v5571_v15  ;;  %v551_v35 = vshrl.u32 %v7295_v37, %v5497_v48 }
  0xf4   : > { %v5567_v44 = vmul.u32.u64.low %v5540_v38, %v1195_v14  ;;  %v5568_v53 = vmul.u32.u64.high %v5540_v38, %v1195_v14, %v5567_v44  ;;  %v5579_v61 = vshll.u32 %v7295_v37, %v5478_v62  ;;  %v4582_v43 = vmin.u32 %v1110_v4, %v5558_v23 }
  0xf5   : > { %v4565_v40 = vadd.s32 4294967169, %v632_v3  ;;  %v1022_v51 = vcvt.s32.f32 %v5535_v13  ;;  %v1187_v60 = vsel %vm1181_vm14, %v1184_v33, %v1186_v2  ;;  %v635_v46 = vand.u32 8388607, %v7282_v63 }
  0xf6   : > { %v5588_v49 = vmul.f32 %v5564_v45, %v5466_v25  ;;  %v920_v27 = vxor.u32 2147483648, %v5531_v8  ;;  %v5593_v28 = vshrl.u32 %v7283_v47, %v5497_v48  ;;  %v1112_v50 = vclz %v4582_v43 }
  0xf7   : > { %v638_v30 = vadd.s32 1, %v4565_v40  ;;  %v5597_v13 = vmul.f32 %v1022_v51, %v1020_v52  ;;  %v5601_v33 = vadd.s32 127, %v496_v26  ;;  %vm1205_vm2 = vc.u32 %v5568_v53, %v5571_v15 }
  0xf8   : > { %7425 = vst [vmem:[#allocation16_spill] sm:$0xff] %v5588_v49  ;;  %v1206_v36 = vadd.s32 1, %v5572_v59  ;;  %v4583_v1 = vadd.s32 4294967294, %v1112_v50  ;;  %v1203_v34 = vmul.u32 %v5540_v38, %v1187_v60  ;;  %v5609_v17 = vmul.f32 %v5510_v6, %v5300_v11 }
  0xf9   : > { %vm639_vm3 = vcmp.gt.s32.totalorder %v638_v30, 0  ;;  %v636_v52 = vor.u32 8388608, %v635_v46  ;;  %v1463_v26 = vand.u32 2139095040, %v5588_v49  ;;  %v5614_v4 = vor.u32 %v551_v35, %v5520_v16 }
  0xfa   : > { %7426 = vst [vmem:[#allocation17_spill] sm:$0xff] %v5609_v17  ;;  %v1207_v12 = vsel %vm1205_vm2, %v1206_v36, %v5572_v59  ;;  %v640_v3 = vsel %vm639_vm3, %v638_v30, 0  ;;  %vm4584_vm4 = vcmp.lt.s32.totalorder %v4583_v1, 0  ;;  %v5619_v38 = vsel %vm7345_vm1, %v920_v27, %v5531_v8 }
  0xfb   : > { %v1208_v2 = vadd.s32 %v1207_v12, %v1203_v34  ;;  %v642_v5 = vand.u32 31, %v640_v3  ;;  %v492_v11 = vsub.s32 32, %v5528_v0  ;;  %v5623_v14 = vsel %vm4584_vm4, 0, %v4583_v1 }
  0xfc   : > { %v1100_v16 = vadd.s32 %v5506_v41, %v5513_v18  ;;  %v1120_v59 = vsub.s32 4294967266, %v5623_v14  ;;  %v5629_v40 = vshll.u32 %v636_v52, 8  ;;  %v735_v8 = vand.u32 2139095040, %v5609_v17 }
  0xfd   : > { %v1209_v35 = vadd.s32 536870912, %v1208_v2  ;;  %v643_v43 = vsub.s32 32, %v642_v5  ;;  %v1464_v51 = vshrl.u32 %v1463_v26, 23  ;;  %v641_v46 = vshrl.u32 %v640_v3, 5 }
  0xfe   : > { %v645_v27 = vshll.u32 %v7287_v29, %v642_v5  ;;  %v648_v50 = vshll.u32 %v7285_v31, %v642_v5  ;;  %v7428_v36 = vmov 2131351028   ;;  %v7429_v1 = vmov 2102212464  }
  0xff   : > { %v5632_v60 = vshrl.u32 %v1209_v35, 30  ;;  %v646_v30 = vshrl.u32 %v7285_v31, %v643_v43  ;;  %v649_v41 = vshrl.u32 %v7428_v36, %v643_v43  ;;  %v651_v18 = vshll.u32 %v7428_v36, %v642_v5 }
 0x100   : > { %v652_v34 = vshrl.u32 %v7429_v1, %v643_v43  ;;  %v1121_v12 = vadd.s32 127, %v1120_v59  ;;  %v654_v26 = vshll.u32 %v7429_v1, %v642_v5  ;;  %v655_v35 = vshrl.u32 %v7295_v37, %v643_v43 }
 0x101   : > { %7427 = vst [vmem:[#allocation18_spill] sm:$0xff] %v5632_v60  ;;  %v1211_v52 = vshll.u32 %v5632_v60, 30  ;;  %v647_v3 = vor.u32 %v646_v30, %v645_v27  ;;  %v650_v63 = vor.u32 %v649_v41, %v648_v50  ;;  %v736_v6 = vshrl.u32 %v735_v8, 23 }
 0x102   : > { %v4597_v44 = vadd.s32 4294967169, %v1464_v51  ;;  %v7430_v47 = vand.u32 2147483647, %v5281_v56  ;;  %v7431_v31 = vmov 0  ;;  %v1116_v29 = vsub.s32 32, %v5623_v14 }
 0x103   : > { %v5650_v24 = vsub.s32 %v1208_v2, %v1211_v52  ;;  %v653_v59 = vor.u32 %v652_v34, %v651_v18  ;;  %v656_v22 = vor.u32 %v655_v35, %v654_v26  ;;  %v1117_v60 = vshll.u32 %v5558_v23, %v5623_v14 }
 0x104   : > { %vm5645_vm5 = vcmp.le.f32.partialorder %v7430_v47, 0.7853982  ;;  %v7434_v37 = vmov 683565275   ;;  %v7435_v50 = vmov 920167782   ;;  %v1118_v52 = vshrl.u32 %v1100_v16, %v1116_v29 }
 0x105   : > { %v7432_v31 = vsel %vm5645_vm5, 4294967295, %v7431_v31  ;;  %v644_v27 = vshrl.u32 %v7434_v37, %v643_v43  ;;  %v657_v8 = vshll.u32 %v7435_v50, %v642_v5  ;;  %v7436_v51 = vmov 1326507024  }
 0x106   : > { %7433 = vst [vmem:[#allocation19_spill] sm:$0xff] %v7432_v31  ;;  %v658_v30 = vshrl.u32 %v7436_v51, %v643_v43  ;;  %vm7373_vm6 = vcmp.lt.s32.totalorder %v5284_v57, 0  ;;  %v1122_v47 = vshll.u32 %v1121_v12, 23  ;;  %v1214_v41 = vsub.s32 0, %v5650_v24 }
 0x107   : > { %vm660_vm7 = vcmp.lt.s32.totalorder %v641_v46, 1  ;;  %vm663_vm8 = vcmp.lt.s32.totalorder %v641_v46, 4  ;;  %vm559_vm9 = vcmp.lt.s32.totalorder %v5472_v55, 4  ;;  %vm662_vm10 = vcmp.lt.s32.totalorder %v641_v46, 3 }
 0x108   : > { %v659_v2 = vor.u32 %v658_v30, %v657_v8  ;;  %v668_v18 = vsel %vm660_vm7, %v647_v3, %v650_v63  ;;  %v669_v23 = vsel %vm663_vm8, %v656_v22, 920167782  ;;  %v4586_v14 = vmin.u32 %v1214_v41, %v5650_v24 }
 0x109   : > { %vm661_vm11 = vcmp.lt.s32.totalorder %v641_v46, 2  ;;  %v665_v5 = vsel %vm663_vm8, %v653_v59, 2102212464  ;;  %v670_v43 = vsel %vm662_vm10, %v653_v59, %v669_v23  ;;  %v7437_v34 = vand.u32 2147483647, %v5284_v57 }
 0x10a   : > { %v7438_v12 = vmov 0  ;;  %v671_v26 = vsel %vm661_vm11, %v668_v18, %v670_v43  ;;  %v672_v35 = vsel %vm660_vm7, %v650_v63, %v653_v59  ;;  %v673_v8 = vsel %vm663_vm8, %v659_v2, 1326507024 }
 0x10b   : > { %vm5665_vm12 = vcmp.le.f32.partialorder %v7437_v34, 0.7853982  ;;  %v1123_v30 = vor.u32 4788187, %v1122_v47  ;;  %v1216_v7 = vclz %v4586_v14  ;;  %v664_v41 = vsel %vm660_vm7, %v644_v27, %v647_v3 }
 0x10c   : > { %v7439_v12 = vsel %vm5665_vm12, 4294967295, %v7438_v12  ;;  %v674_v10 = vsel %vm662_vm10, %v656_v22, %v673_v8  ;;  %v666_v23 = vsel %vm662_vm10, %v650_v63, %v665_v5  ;;  %v494_v29 = vshrl.u32 %v5494_v39, %v492_v11 }
 0x10d   : > { %7440 = vst [vmem:[#allocation20_spill] sm:$0xff] %v7439_v12  ;;  %v675_v17 = vsel %vm661_vm11, %v672_v35, %v674_v10  ;;  %v5676_v34 = vmul.u32.u64.low %v5629_v40, %v671_v26  ;;  %v5677_v62 = vmul.u32.u64.high %v5629_v40, %v671_v26, %v5676_v34  ;;  %v555_v16 = vor.u32 %v5593_v28, %v5579_v61 }
 0x10e   : > { %v5684_v59 = vmul.u32.u64.low %v5629_v40, %v675_v17  ;;  %v5685_v47 = vmul.u32.u64.high %v5629_v40, %v675_v17, %v5684_v59  ;;  %v924_v22 = vsel %vm5645_vm5, %v5281_v56, %v5619_v38  ;;  %v1119_v10 = vor.u32 %v1118_v52, %v1117_v60 }
 0x10f   : > { %v4587_v63 = vadd.s32 4294967294, %v1216_v7  ;;  %v1470_v3 = vadd.s32 1, %v4597_v44  ;;  %v493_v27 = vshll.u32 %v5455_v21, %v5528_v0  ;;  %v7441_v39 = vshll.u32 %v5601_v33, 23 }
 0x110   : > { %v667_v61 = vsel %vm661_vm11, %v664_v41, %v666_v23  ;;  %v7305_v28 = vand.u32 2147483647, %v5588_v49  ;;  %v7442_v17 = vxor.u32 2147483648, %v5597_v13  ;;  %v1124_v38 = vand.u32 2147483647, %v1123_v30 }
 0x111   : > { %v499_v11 = vor.u32 4788187, %v7441_v39  ;;  %v686_v7 = vadd.s32 1, %v5677_v62  ;;  %v4569_v44 = vadd.s32 4294967169, %v736_v6  ;;  %4886 = vcosq.f32 %v924_v22 }
 0x112   : > { %v1025_v2 = vsel %vm7373_vm6, %v7442_v17, %v5597_v13  ;;  %v495_v60 = vor.u32 %v494_v29, %v493_v27  ;;  %v5706_v21 = vsel %vm559_vm9, %v5614_v4, 920167782  ;;  %vm1471_vm13 = vcmp.gt.s32.totalorder %v1470_v3, 0 }
 0x113   : > { %v1126_v0 = vcvt.s32.f32 %v1119_v10  ;;  %vm4588_vm14 = vcmp.lt.s32.totalorder %v4587_v63, 0  ;;  %v683_v33 = vmul.u32 %v5629_v40, %v667_v61  ;;  %vm685_vm15 = vc.u32 %v5685_v47, %v5676_v34 }
 0x114   : > { %v5714_v13 = vsel %vm5665_vm12, %v5284_v57, %v1025_v2  ;;  %v500_v6 = vand.u32 2147483647, %v499_v11  ;;  %v687_v46 = vsel %vm685_vm15, %v686_v7, %v5677_v62  ;;  %v1467_v18 = vand.u32 8388607, %v7305_v28 }
 0x115   : > { %vm7344_vm0 = vcmp.lt.s32.totalorder %v5395_v32, 0  ;;  %v1127_v14 = vmul.f32 %v1126_v0, %v1124_v38  ;;  %v688_v5 = vadd.s32 %v687_v46, %v683_v33  ;;  %v742_v43 = vadd.s32 1, %v4569_v44 }
 0x116   : > { %v1472_v40 = vsel %vm1471_vm13, %v1470_v3, 0  ;;  %4888 = vsinq.f32 %v924_v22  ;;  %v502_v52 = vcvt.s32.f32 %v495_v60  ;;  %v5720_v26 = vsel %vm4588_vm14, 0, %v4587_v63 }
 0x117   : > { %v1474_v35 = vand.u32 31, %v1472_v40  ;;  %4890 = vcosq.f32 %v5714_v13  ;;  %v5725_v8 = vsel %vm559_vm9, %v555_v16, 1326507024  ;;  %v689_v62 = vadd.s32 536870912, %v688_v5 }
 0x118   : > { %v5729_v30 = vmul.f32 %v5564_v45, %v5474_v19  ;;  %v5731_v41 = vmul.f32 %v502_v52, %v500_v6  ;;  %v1204_v23 = vadd.s32 %v5571_v15, %v5568_v53  ;;  %v1468_v29 = vor.u32 8388608, %v1467_v18 }
 0x119   : > { %v1475_v59 = vsub.s32 32, %v1474_v35  ;;  %v1128_v22 = vxor.u32 2147483648, %v1127_v14  ;;  %v1224_v10 = vsub.s32 4294967266, %v5720_v26  ;;  %v5736_v63 = vshrl.u32 %v689_v62, 30 }
 0x11a   : > { %7443 = vst [vmem:[#allocation21_spill] sm:$0xff] %v5729_v30  ;;  %vm743_vm2 = vcmp.gt.s32.totalorder %v742_v43, 0  ;;  %v1477_v16 = vshll.u32 %v7434_v37, %v1474_v35  ;;  %v7445_v3 = vmov 2475754826   ;;  %v1473_v61 = vshrl.u32 %v1472_v40, 5 }
 0x11b   : > { %7444 = vst [vmem:[#allocation22_spill] sm:$0xff] %v5736_v63  ;;  %v1478_v27 = vshrl.u32 %v7445_v3, %v1475_v59  ;;  %v1480_v45 = vshll.u32 %v7445_v3, %v1474_v35  ;;  %v1481_v39 = vshrl.u32 %v7428_v36, %v1475_v59  ;;  %v691_v11 = vshll.u32 %v5736_v63, 30  ;;  %v5745_v17 = vpop.eup %4886 }
 0x11c   : > { %v1483_v53 = vshll.u32 %v7428_v36, %v1474_v35  ;;  %v1484_v15 = vshrl.u32 %v7429_v1, %v1475_v59  ;;  %7446 = vst [vmem:[#allocation23_spill] sm:$0xff] %v5745_v17  ;;  %v1486_v7 = vshll.u32 %v7429_v1, %v1474_v35  ;;  %v1487_v44 = vshrl.u32 %v7435_v50, %v1475_v59 }
 0x11d   : > { %v1479_v2 = vor.u32 %v1478_v27, %v1477_v16  ;;  %v1482_v38 = vor.u32 %v1481_v39, %v1480_v45  ;;  %v7447_v60 = vand.u32 2147483647, %v5395_v32  ;;  %v7448_v0 = vmov 0 }
 0x11e   : > { %v5755_v33 = vsub.s32 %v688_v5, %v691_v11  ;;  %v1485_v6 = vor.u32 %v1484_v15, %v1483_v53  ;;  %v1489_v46 = vshll.u32 %v7435_v50, %v1474_v35  ;;  %v1490_v18 = vshrl.u32 %v7436_v51, %v1475_v59 }
 0x11f   : > { %vm5751_vm3 = vcmp.le.f32.partialorder %v7447_v60, 0.7853982  ;;  %v1129_v40 = vsel %vm7344_vm0, %v1128_v22, %v1127_v14  ;;  %v1225_v52 = vadd.s32 127, %v1224_v10  ;;  %v744_v62 = vsel %vm743_vm2, %v742_v43, 0 }
 0x120   : > { %v7449_v0 = vsel %vm5751_vm3, 4294967295, %v7448_v0  ;;  %v1488_v16 = vor.u32 %v1487_v44, %v1486_v7  ;;  %v694_v27 = vsub.s32 0, %v5755_v33  ;;  %v1491_v45 = vor.u32 %v1490_v18, %v1489_v46  ;;  %v5763_v60 = vpop.eup %4888  ;;  %v5773_v7 = vpop.permute.xlu0 %386 }
 0x121   : > { %7450 = vst [vmem:[#allocation24_spill] sm:$0xff] %v7449_v0  ;;  %vm1492_vm4 = vcmp.lt.s32.totalorder %v1473_v61, 1  ;;  %v1508_v39 = vshll.u32 %v1468_v29, 8  ;;  %7451 = vst [vmem:[#allocation25_spill] sm:$0xff] %v5763_v60  ;;  %vm7375_vm7 = vcmp.lt.s32.totalorder %v5287_v58, 0  ;;  %v1220_v5 = vsub.s32 32, %v5720_v26  ;;  %v5769_v22 = vpop.eup %4890 }
 0x122   : > { %v1476_v35 = vshrl.u32 %v7434_v37, %v1475_v59  ;;  %vm1495_vm8 = vcmp.lt.s32.totalorder %v1473_v61, 4  ;;  %v1500_v14 = vsel %vm1492_vm4, %v1479_v2, %v1482_v38  ;;  %7452 = vst [vmem:[#allocation26_spill] sm:$0xff] %v5769_v22  ;;  %v4566_v43 = vmin.u32 %v694_v27, %v5755_v33 }
 0x123   : > { %vm1494_vm10 = vcmp.lt.s32.totalorder %v1473_v61, 3  ;;  %v1497_v10 = vsel %vm1495_vm8, %v1485_v6, 2102212464  ;;  %v1501_v11 = vsel %vm1495_vm8, %v1488_v16, 920167782  ;;  %v1226_v53 = vshll.u32 %v1225_v52, 23 }
 0x124   : > { %vm1493_vm11 = vcmp.lt.s32.totalorder %v1473_v61, 2  ;;  %v1502_v29 = vsel %vm1494_vm10, %v1485_v6, %v1501_v11  ;;  %v1504_v15 = vsel %vm1492_vm4, %v1482_v38, %v1485_v6  ;;  %v696_v44 = vclz %v4566_v43 }
 0x125   : > { %v1496_v59 = vsel %vm1492_vm4, %v1476_v35, %v1479_v2  ;;  %v1503_v46 = vsel %vm1493_vm11, %v1500_v14, %v1502_v29  ;;  %v1505_v18 = vsel %vm1495_vm8, %v1491_v45, 1326507024  ;;  %v1498_v28 = vsel %vm1494_vm10, %v1482_v38, %v1497_v10 }
 0x126   : > { %v1506_v17 = vsel %vm1494_vm10, %v1488_v16, %v1505_v18  ;;  %v5777_v60 = vmul.u32.u64.low %v1508_v39, %v1503_v46  ;;  %v5778_v27 = vmul.u32.u64.high %v1508_v39, %v1503_v46, %v5777_v60  ;;  %v504_v52 = vxor.u32 2147483648, %v5731_v41 }
 0x127   : > { %v1507_v11 = vsel %vm1493_vm11, %v1504_v15, %v1506_v17  ;;  %v1567_v6 = vand.u32 2139095040, %v5729_v30  ;;  %v5786_v43 = vmul.f32 %v5773_v7, %v5466_v25  ;;  %v1132_v2 = vsel %vm5751_vm3, %v5395_v32, %v1129_v40 }
 0x128   : > { %v1222_v38 = vshrl.u32 %v1204_v23, %v1220_v5  ;;  %v5791_v16 = vmul.u32.u64.low %v1508_v39, %v1507_v11  ;;  %v5792_v45 = vmul.u32.u64.high %v1508_v39, %v1507_v11, %v5791_v16  ;;  %v4567_v35 = vadd.s32 4294967294, %v696_v44 }
 0x129   : > { %7453 = vst [vmem:[#allocation27_spill] sm:$0xff] %v5786_v43  ;;  %v5794_v14 = vand.u32 31, %v744_v62  ;;  %v1499_v10 = vsel %vm1493_vm11, %v1496_v59, %v1498_v28  ;;  %v1568_v17 = vshrl.u32 %v1567_v6, 23  ;;  %v1221_v29 = vshll.u32 %v5650_v24, %v5720_v26 }
 0x12a   : > { %v1227_v15 = vor.u32 4788187, %v1226_v53  ;;  %v1518_v25 = vadd.s32 1, %v5778_v27  ;;  %v7308_v46 = vand.u32 2147483647, %v5729_v30  ;;  %4892 = vsinq.f32 %v5714_v13 }
 0x12b   : > { %7454 = vst [vmem:[#allocation28_spill] sm:$0xff] %v5794_v14  ;;  %v5805_v23 = vsel %vm7375_vm7, %v504_v52, %v5731_v41  ;;  %v4601_v40 = vadd.s32 4294967169, %v1568_v17  ;;  %v1255_v61 = vand.u32 2139095040, %v5786_v43  ;;  %4894 = vcosq.f32 %v1132_v2 }
 0x12c   : > { %7455 = vst [vmem:[#allocation29_spill] sm:$0xff] %v5805_v23  ;;  %v1223_v28 = vor.u32 %v1222_v38, %v1221_v29  ;;  %v1515_v5 = vmul.u32 %v1508_v39, %v1499_v10  ;;  %vm1517_vm13 = vc.u32 %v5792_v45, %v5777_v60  ;;  %vm4568_vm14 = vcmp.lt.s32.totalorder %v4567_v35, 0 }
 0x12d   : > { %v5811_v24 = vsub.s32 32, %v5794_v14  ;;  %v1519_v13 = vsel %vm1517_vm13, %v1518_v25, %v5778_v27  ;;  %v1574_v26 = vadd.s32 1, %v4601_v40  ;;  %v1228_v53 = vand.u32 2147483647, %v1227_v15 }
 0x12e   : > { %v5814_v44 = vshrl.u32 %v744_v62, 5  ;;  %v1520_v41 = vadd.s32 %v1519_v13, %v1515_v5  ;;  %v1571_v59 = vand.u32 8388607, %v7308_v46  ;;  %4896 = vsinq.f32 %v1132_v2 }
 0x12f   : > { %7456 = vst [vmem:[#allocation30_spill] sm:$0xff] %v5811_v24  ;;  %v5820_v39 = vadd.s32 %v5676_v34, %v5685_v47  ;;  %vm1575_vm15 = vcmp.gt.s32.totalorder %v1574_v26, 0  ;;  %v1256_v18 = vshrl.u32 %v1255_v61, 23  ;;  %v1230_v52 = vcvt.s32.f32 %v1223_v28 }
 0x130   : > { %v5822_v11 = vsel %vm4568_vm14, 0, %v4567_v35  ;;  %v1521_v6 = vadd.s32 536870912, %v1520_v41  ;;  %v1576_v27 = vsel %vm1575_vm15, %v1574_v26, 0  ;;  %v758_v62 = vshll.u32 %v7429_v1, %v5794_v14 }
 0x131   : > { %v759_v38 = vshrl.u32 %v7435_v50, %v5811_v24  ;;  %v5830_v2 = vshll.u32 %v7435_v50, %v5794_v14  ;;  %v1578_v16 = vand.u32 31, %v1576_v27  ;;  %v5832_v34 = vmul.f32 %v1230_v52, %v1228_v53 }
 0x132   : > { %v5834_v47 = vshrl.u32 %v1521_v6, 30  ;;  %v1572_v10 = vor.u32 8388608, %v1571_v59  ;;  %v704_v17 = vsub.s32 4294967266, %v5822_v11  ;;  %v1577_v29 = vshrl.u32 %v1576_v27, 5 }
 0x133   : > { %v1579_v15 = vsub.s32 32, %v1578_v16  ;;  %v4589_v25 = vadd.s32 4294967169, %v1256_v18  ;;  %v1581_v61 = vshll.u32 %v7434_v37, %v1578_v16  ;;  %v1584_v28 = vshll.u32 %v7445_v3, %v1578_v16 }
 0x134   : > { %7457 = vst [vmem:[#allocation31_spill] sm:$0xff] %v5834_v47  ;;  %v1523_v40 = vshll.u32 %v5834_v47, 30  ;;  %v1587_v5 = vshll.u32 %v7428_v36, %v1578_v16  ;;  %v5842_v13 = vpop.eup %4892  ;;  %v1590_v59 = vshll.u32 %v7429_v1, %v1578_v16  ;;  %v1593_v52 = vshll.u32 %v7435_v50, %v1578_v16 }
 0x135   : > { %7458 = vst [vmem:[#allocation32_spill] sm:$0xff] %v5842_v13  ;;  %v1582_v26 = vshrl.u32 %v7445_v3, %v1579_v15  ;;  %v1585_v53 = vshrl.u32 %v7428_v36, %v1579_v15  ;;  %v5848_v6 = vpop.eup %4894  ;;  %v1588_v27 = vshrl.u32 %v7429_v1, %v1579_v15  ;;  %v1591_v46 = vshrl.u32 %v7435_v50, %v1579_v15 }
 0x136   : > { %7459 = vst [vmem:[#allocation33_spill] sm:$0xff] %v5848_v6  ;;  %v5850_v18 = vsub.s32 %v1520_v41, %v1523_v40  ;;  %v1594_v35 = vshrl.u32 %v7436_v51, %v1579_v15  ;;  %v1612_v32 = vshll.u32 %v1572_v10, 8  ;;  %v1262_v31 = vadd.s32 1, %v4589_v25 }
 0x137   : > { %v1583_v47 = vor.u32 %v1582_v26, %v1581_v61  ;;  %v1586_v0 = vor.u32 %v1585_v53, %v1584_v28  ;;  %v1589_v22 = vor.u32 %v1588_v27, %v1587_v5  ;;  %v1592_v13 = vor.u32 %v1591_v46, %v1590_v59 }
 0x138   : > { %v1526_v56 = vsub.s32 0, %v5850_v18  ;;  %v1595_v12 = vor.u32 %v1594_v35, %v1593_v52  ;;  %v5856_v16 = vpop.eup %4896  ;;  %v1580_v41 = vshrl.u32 %v7434_v37, %v1579_v15  ;;  %vm1596_vm2 = vcmp.lt.s32.totalorder %v1577_v29, 1 }
 0x139   : > { %7460 = vst [vmem:[#allocation34_spill] sm:$0xff] %v5856_v16  ;;  %vm1597_vm4 = vcmp.lt.s32.totalorder %v1577_v29, 2  ;;  %vm1599_vm8 = vcmp.lt.s32.totalorder %v1577_v29, 4  ;;  %vm1598_vm10 = vcmp.lt.s32.totalorder %v1577_v29, 3  ;;  %v1604_v61 = vsel %vm1596_vm2, %v1583_v47, %v1586_v0 }
 0x13a   : > { %v4598_v40 = vmin.u32 %v1526_v56, %v5850_v18  ;;  %v1601_v6 = vsel %vm1599_vm8, %v1589_v22, 2102212464  ;;  %v1600_v28 = vsel %vm1596_vm2, %v1580_v41, %v1583_v47  ;;  %v1605_v10 = vsel %vm1599_vm8, %v1592_v13, 920167782 }
 0x13b   : > { %v1608_v25 = vsel %vm1596_vm2, %v1586_v0, %v1589_v22  ;;  %v1609_v26 = vsel %vm1599_vm8, %v1595_v12, 1326507024  ;;  %v1602_v5 = vsel %vm1598_vm10, %v1586_v0, %v1601_v6  ;;  %v1606_v46 = vsel %vm1598_vm10, %v1589_v22, %v1605_v10 }
 0x13c   : > { %v1528_v53 = vclz %v4598_v40  ;;  %v1610_v35 = vsel %vm1598_vm10, %v1592_v13, %v1609_v26  ;;  %v1607_v59 = vsel %vm1597_vm4, %v1604_v61, %v1606_v46  ;;  %v7461_v52 = vand.u32 2147483647, %v5786_v43 }
 0x13d   : > { %v1611_v15 = vsel %vm1597_vm4, %v1608_v25, %v1610_v35  ;;  %vm1263_vm11 = vcmp.gt.s32.totalorder %v1262_v31, 0  ;;  %v1603_v41 = vsel %vm1597_vm4, %v1600_v28, %v1602_v5  ;;  %v5873_v13 = vor.u32 %v759_v38, %v758_v62 }
 0x13e   : > { %v1259_v27 = vand.u32 8388607, %v7461_v52  ;;  %v4599_v56 = vadd.s32 4294967294, %v1528_v53  ;;  %v5864_v16 = vmul.u32.u64.low %v1612_v32, %v1611_v15  ;;  %v5865_v57 = vmul.u32.u64.high %v1612_v32, %v1611_v15, %v5864_v16 }
 0x13f   : > { %v1264_v47 = vsel %vm1263_vm11, %v1262_v31, 0  ;;  %v5868_v12 = vmul.u32.u64.low %v1612_v32, %v1607_v59  ;;  %v5869_v40 = vmul.u32.u64.high %v1612_v32, %v1607_v59, %v5868_v12  ;;  %v5877_v6 = vshrl.u32 %v7436_v51, %v5811_v24 }
 0x140   : > { %v1266_v0 = vand.u32 31, %v1264_v47  ;;  %vm4600_vm13 = vcmp.lt.s32.totalorder %v4599_v56, 0  ;;  %v5884_v31 = vmul.f32 %v5773_v7, %v5474_v19  ;;  %v5886_v28 = vadd.s32 127, %v704_v17 }
 0x141   : > { %v5880_v16 = vsel %vm4600_vm13, 0, %v4599_v56  ;;  %v1516_v62 = vadd.s32 %v5777_v60, %v5792_v45  ;;  %v1619_v38 = vmul.u32 %v1612_v32, %v1603_v41  ;;  %v1260_v10 = vor.u32 8388608, %v1259_v27 }
 0x142   : > { %v1267_v29 = vsub.s32 32, %v1266_v0  ;;  %vm1621_vm14 = vc.u32 %v5865_v57, %v5868_v12  ;;  %v1622_v25 = vadd.s32 1, %v5869_v40  ;;  %v1265_v26 = vshrl.u32 %v1264_v47, 5 }
 0x143   : > { %v1532_v5 = vsub.s32 32, %v5880_v16  ;;  %v1269_v19 = vshll.u32 %v7434_v37, %v1266_v0  ;;  %v1272_v7 = vshll.u32 %v7445_v3, %v1266_v0  ;;  %v1536_v60 = vsub.s32 4294967266, %v5880_v16 }
 0x144   : > { %v1270_v53 = vshrl.u32 %v7445_v3, %v1267_v29  ;;  %v1273_v17 = vshrl.u32 %v7428_v36, %v1267_v29  ;;  %v1623_v32 = vsel %vm1621_vm14, %v1622_v25, %v5869_v40  ;;  %v1275_v45 = vshll.u32 %v7428_v36, %v1266_v0 }
 0x145   : > { %v1276_v46 = vshrl.u32 %v7429_v1, %v1267_v29  ;;  %v1624_v35 = vadd.s32 %v1623_v32, %v1619_v38  ;;  %v1278_v52 = vshll.u32 %v7429_v1, %v1266_v0  ;;  %v1279_v56 = vshrl.u32 %v7435_v50, %v1267_v29 }
 0x146   : > { %v1271_v59 = vor.u32 %v1270_v53, %v1269_v19  ;;  %v1274_v15 = vor.u32 %v1273_v17, %v1272_v7  ;;  %v1281_v47 = vshll.u32 %v7435_v50, %v1266_v0  ;;  %v1282_v41 = vshrl.u32 %v7436_v51, %v1267_v29 }
 0x147   : > { %v1277_v27 = vor.u32 %v1276_v46, %v1275_v45  ;;  %v1625_v22 = vadd.s32 536870912, %v1624_v35  ;;  %v1300_v61 = vshll.u32 %v1260_v10, 8  ;;  %v1359_v25 = vand.u32 2139095040, %v5884_v31 }
 0x148   : > { %v1537_v63 = vadd.s32 127, %v1536_v60  ;;  %v1268_v38 = vshrl.u32 %v7434_v37, %v1267_v29  ;;  %v1280_v53 = vor.u32 %v1279_v56, %v1278_v52  ;;  %v1283_v19 = vor.u32 %v1282_v41, %v1281_v47 }
 0x149   : > { %v1534_v7 = vshrl.u32 %v1516_v62, %v1532_v5  ;;  %v5909_v17 = vshrl.u32 %v1625_v22, 30  ;;  %vm1284_vm15 = vcmp.lt.s32.totalorder %v1265_v26, 1  ;;  %vm1287_vm2 = vcmp.lt.s32.totalorder %v1265_v26, 4 }
 0x14a   : > { %vm1286_vm4 = vcmp.lt.s32.totalorder %v1265_v26, 3  ;;  %v1289_v0 = vsel %vm1287_vm2, %v1277_v27, 2102212464  ;;  %v1292_v32 = vsel %vm1284_vm15, %v1271_v59, %v1274_v15  ;;  %v1293_v45 = vsel %vm1287_vm2, %v1280_v53, 920167782 }
 0x14b   : > { %7462 = vst [vmem:[#allocation35_spill] sm:$0xff] %v5909_v17  ;;  %v1627_v10 = vshll.u32 %v5909_v17, 30  ;;  %vm1285_vm8 = vcmp.lt.s32.totalorder %v1265_v26, 2  ;;  %v1294_v46 = vsel %vm1286_vm4, %v1277_v27, %v1293_v45  ;;  %v1296_v40 = vsel %vm1284_vm15, %v1274_v15, %v1277_v27 }
 0x14c   : > { %v1538_v23 = vshll.u32 %v1537_v63, 23  ;;  %v1295_v60 = vsel %vm1285_vm8, %v1292_v32, %v1294_v46  ;;  %v1297_v29 = vsel %vm1287_vm2, %v1283_v19, 1326507024  ;;  %v1360_v52 = vshrl.u32 %v1359_v25, 23 }
 0x14d   : > { %v5913_v56 = vsub.s32 %v1624_v35, %v1627_v10  ;;  %v1288_v22 = vsel %vm1284_vm15, %v1268_v38, %v1271_v59  ;;  %v1290_v62 = vsel %vm1286_vm4, %v1274_v15, %v1289_v0  ;;  %v1298_v5 = vsel %vm1286_vm4, %v1280_v53, %v1297_v29 }
 0x14e   : > { %v1299_v47 = vsel %vm1285_vm8, %v1296_v40, %v1298_v5  ;;  %v5916_v41 = vmul.u32.u64.low %v1300_v61, %v1295_v60  ;;  %v5917_v58 = vmul.u32.u64.high %v1300_v61, %v1295_v60, %v5916_v41  ;;  %v4593_v17 = vadd.s32 4294967169, %v1360_v52  ;;  %v4950_v5 = vld [vmem:[%s5262_s11] sm:$0xff]  ;;  %s5038_s11 = smov [#allocation2]  }
 0x14f   : > { %v1533_v27 = vshll.u32 %v5850_v18, %v5880_v16  ;;  %v1630_v63 = vsub.s32 0, %v5913_v56  ;;  %v5923_v32 = vmul.u32.u64.low %v1300_v61, %v1299_v47  ;;  %v5924_v19 = vmul.u32.u64.high %v1300_v61, %v1299_v47, %v5923_v32  ;;  %s4955_s12 = sshll.u32 %s5038_s11, 4  ;;  %s4956_s12 = int_to_ptr.vmem [resolvable:$false] %s4955_s12 }
 0x150   : > { %v7463_v35 = vsub.s32 32, %v5822_v11  ;;  %v706_v15 = vshll.u32 %v5886_v28, 23  ;;  %v1291_v40 = vsel %vm1285_vm8, %v1288_v22, %v1290_v62  ;;  %v1366_v25 = vadd.s32 1, %v4593_v17  ;;  %s4957_s13 = scalar_lea.vmem %s4956_s12, 4096  ;;  %p4958_p1 = scmp.lt.s32.totalorder %s7212_s20, %s4956_s12 }
 0x151   : > { %v701_v38 = vshll.u32 %v5755_v33, %v5822_v11  ;;  %v1535_v53 = vor.u32 %v1534_v7, %v1533_v27  ;;  %v4602_v18 = vmin.u32 %v1630_v63, %v5913_v56  ;;  %v7464_v16 = vand.u32 2147483647, %v5884_v31  ;;  %p4959_p2 = scmp.lt.s32.totalorder %s4957_s13, %s4951_s8 }
 0x152   : > { %v702_v59 = vshrl.u32 %v5820_v39, %v7463_v35  ;;  %v1539_v45 = vor.u32 4788187, %v1538_v23  ;;  %v1310_v10 = vadd.s32 1, %v5917_v58  ;;  %vm1367_vm10 = vcmp.gt.s32.totalorder %v1366_v25, 0 }
 0x153   : > { %v1363_v0 = vand.u32 8388607, %v7464_v16  ;;  %v5938_v39 = vsub.s32 3, %v5257_v42  ;;  %v1632_v28 = vclz %v4602_v18  ;;  %v1307_v26 = vmul.u32 %v1300_v61, %v1291_v40  ;;  %p4960_p3 = por %p4959_p2, %p4958_p1 }
 0x154   : > { %vm1309_vm11 = vc.u32 %v5924_v19, %v5916_v41  ;;  %v1368_v33 = vsel %vm1367_vm10, %v1366_v25, 0  ;;  %v5942_v11 = vor.u32 %v702_v59, %v701_v38  ;;  %v5944_v7 = vor.u32 4788187, %v706_v15 }
 0x155   : > { %v1311_v17 = vsel %vm1309_vm11, %v1310_v10, %v5917_v58  ;;  %v1370_v23 = vand.u32 31, %v1368_v33  ;;  %v1542_v46 = vcvt.s32.f32 %v1535_v53  ;;  %v1620_v60 = vadd.s32 %v5868_v12, %v5865_v57  ;;  %p4961_p5 = pnand %p4960_p3, %p4954_p0 }
 0x156   : > { %v4603_v29 = vadd.s32 4294967294, %v1632_v28  ;;  %v1312_v52 = vadd.s32 %v1311_v17, %v1307_v26  ;;  %v1540_v22 = vand.u32 2147483647, %v1539_v45  ;;  %v1364_v62 = vor.u32 8388608, %v1363_v0 }
 0x157   : > { %v1371_v61 = vsub.s32 32, %v1370_v23  ;;  %v341_v47 = vrot.slane %v4950_v5, %v5938_v39  ;;  %v5951_v63 = vshrl.u32 %v1368_v33, 5  ;;  %v344_v32 = vsub.s32 7, %v5257_v42 }
 0x158   : > { %vm4604_vm13 = vcmp.lt.s32.totalorder %v4603_v29, 0  ;;  %v1313_v27 = vadd.s32 536870912, %v1312_v52  ;;  %v1373_v35 = vshll.u32 %v7434_v37, %v1370_v23  ;;  %v1376_v15 = vshll.u32 %v7445_v3, %v1370_v23 }
 0x159   : > { %v1635_v58 = vsel %vm4604_vm13, 0, %v4603_v29  ;;  %v1374_v59 = vshrl.u32 %v7445_v3, %v1371_v61  ;;  %v1377_v57 = vshrl.u32 %v7428_v36, %v1371_v61  ;;  %v1379_v40 = vshll.u32 %v7428_v36, %v1370_v23 }
 0x15a   : > { %v5957_v12 = vshrl.u32 %v1313_v27, 30  ;;  %v1382_v25 = vshll.u32 %v7429_v1, %v1370_v23  ;;  %v1640_v38 = vsub.s32 4294967266, %v1635_v58  ;;  %v1380_v53 = vshrl.u32 %v7429_v1, %v1371_v61 }
 0x15b   : > { %v1383_v42 = vshrl.u32 %v7435_v50, %v1371_v61  ;;  %v1385_v18 = vshll.u32 %v7435_v50, %v1370_v23  ;;  %v1375_v0 = vor.u32 %v1374_v59, %v1373_v35  ;;  %v1378_v45 = vor.u32 %v1377_v57, %v1376_v15 }
 0x15c   : > { %7465 = vst [vmem:[#allocation36_spill] sm:$0xff] %v5957_v12  ;;  %v1315_v16 = vshll.u32 %v5957_v12, 30  ;;  %v1386_v10 = vshrl.u32 %v7436_v51, %v1371_v61  ;;  %v5967_v28 = vmul.f32 %v1542_v46, %v1540_v22  ;;  %v1381_v26 = vor.u32 %v1380_v53, %v1379_v40 }
 0x15d   : > { %v1384_v33 = vor.u32 %v1383_v42, %v1382_v25  ;;  %v5969_v17 = vshll.u32 %v1364_v62, 8  ;;  %vm7346_vm14 = vcmp.lt.s32.totalorder %v5464_v54, 0  ;;  %v1636_v29 = vsub.s32 32, %v1635_v58 }
 0x15e   : > { %v5972_v27 = vsub.s32 %v1312_v52, %v1315_v16  ;;  %v1387_v14 = vor.u32 %v1386_v10, %v1385_v18  ;;  %v345_v24 = vrot.slane %v4950_v5, %v344_v32  ;;  %v1641_v23 = vadd.s32 127, %v1640_v38  ;;  %v402_v32 = vpop.permute.xlu1 %401 }
 0x15f   : > { %v1372_v12 = vshrl.u32 %v7434_v37, %v1371_v61  ;;  %vm1388_vm15 = vcmp.lt.s32.totalorder %v5951_v63, 1  ;;  %v5977_v35 = vrot.slane %v341_v47, %v5938_v39  ;;  %v1637_v46 = vshll.u32 %v5913_v56, %v1635_v58 }
 0x160   : > { %v1318_v22 = vsub.s32 0, %v5972_v27  ;;  %vm1391_vm2 = vcmp.lt.s32.totalorder %v5951_v63, 4  ;;  %v1396_v52 = vsel %vm1388_vm15, %v1375_v0, %v1378_v45  ;;  %vm1390_vm4 = vcmp.lt.s32.totalorder %v5951_v63, 3 }
 0x161   : > { %v1397_v62 = vsel %vm1391_vm2, %v1384_v33, 920167782  ;;  %v1400_v61 = vsel %vm1388_vm15, %v1378_v45, %v1381_v26  ;;  %v1401_v5 = vsel %vm1391_vm2, %v1387_v14, 1326507024  ;;  %v1638_v59 = vshrl.u32 %v1620_v60, %v1636_v29 }
 0x162   : > { %v4590_v47 = vmin.u32 %v1318_v22, %v5972_v27  ;;  %vm1389_vm8 = vcmp.lt.s32.totalorder %v5951_v63, 2  ;;  %v1398_v56 = vsel %vm1390_vm4, %v1381_v26, %v1397_v62  ;;  %v1642_v58 = vshll.u32 %v1641_v23, 23 }
 0x163   : > { %v1393_v57 = vsel %vm1391_vm2, %v1381_v26, 2102212464  ;;  %v1399_v15 = vsel %vm1389_vm8, %v1396_v52, %v1398_v56  ;;  %v1402_v40 = vsel %vm1390_vm4, %v1384_v33, %v1401_v5  ;;  %v5998_v60 = vrot.slane %v345_v24, %v5938_v39 }
 0x164   : > { %v1320_v25 = vclz %v4590_v47  ;;  %v1403_v14 = vsel %vm1389_vm8, %v1400_v61, %v1402_v40  ;;  %v6001_v38 = vmul.f32 %v402_v32, %v5977_v35  ;;  %v7466_v53 = vand.u32 2147483647, %v5464_v54 }
 0x165   : > { %v7467_v42 = vmov 0  ;;  %v6010_v18 = vmul.u32.u64.low %v5969_v17, %v1403_v14  ;;  %v6011_v16 = vmul.u32.u64.high %v5969_v17, %v1403_v14, %v6010_v18  ;;  %vm767_vm11 = vcmp.lt.s32.totalorder %v5814_v44, 4 }
 0x166   : > { %vm6005_vm10 = vcmp.le.f32.partialorder %v7466_v53, 0.7853982  ;;  %v6014_v10 = vmul.u32.u64.low %v5969_v17, %v1399_v15  ;;  %v6015_v26 = vmul.u32.u64.high %v5969_v17, %v1399_v15, %v6014_v10  ;;  %vm7343_vm13 = vcmp.lt.s32.totalorder %v5588_v49, 0 }
 0x167   : > { %v7468_v42 = vsel %vm6005_vm10, 4294967295, %v7467_v42  ;;  %v4591_v39 = vadd.s32 4294967294, %v1320_v25  ;;  %v1392_v33 = vsel %vm1388_vm15, %v1372_v12, %v1375_v0  ;;  %v1394_v29 = vsel %vm1390_vm4, %v1378_v45, %v1393_v57 }
 0x168   : > { %7469 = vst [vmem:[#allocation37_spill] sm:$0xff] %v7468_v42  ;;  %v7470_v23 = vxor.u32 2147483648, %v5832_v34  ;;  %v1639_v52 = vor.u32 %v1638_v59, %v1637_v46  ;;  %v1643_v62 = vor.u32 4788187, %v1642_v58  ;;  %v1879_v61 = vand.u32 2139095040, %v6001_v38 }
 0x169   : > { %v708_v5 = vand.u32 2147483647, %v5944_v7  ;;  %v710_v47 = vcvt.s32.f32 %v5942_v11  ;;  %vm4592_vm2 = vcmp.lt.s32.totalorder %v4591_v39, 0  ;;  %v7337_v12 = vand.u32 2147483647, %v6001_v38 }
 0x16a   : > { %v1233_v22 = vsel %vm7346_vm14, %v7470_v23, %v5832_v34  ;;  %v1544_v0 = vxor.u32 2147483648, %v5967_v28  ;;  %v1323_v45 = vsel %vm4592_vm2, 0, %v4591_v39  ;;  %v1395_v56 = vsel %vm1389_vm8, %v1392_v33, %v1394_v29 }
 0x16b   : > { %v6039_v57 = vmul.f32 %v402_v32, %v5998_v60  ;;  %v7471_v34 = vand.u32 2147483647, %v5588_v49  ;;  %v7472_v46 = vmov 0  ;;  %v1308_v11 = vadd.s32 %v5916_v41, %v5924_v19 }
 0x16c   : > { %v1324_v7 = vsub.s32 32, %v1323_v45  ;;  %v1328_v59 = vsub.s32 4294967266, %v1323_v45  ;;  %vm1413_vm4 = vc.u32 %v6011_v16, %v6014_v10  ;;  %v1644_v58 = vand.u32 2147483647, %v1643_v62 }
 0x16d   : > { %vm6043_vm15 = vcmp.le.f32.partialorder %v7471_v34, 0.7853982  ;;  %v1646_v63 = vcvt.s32.f32 %v1639_v52  ;;  %v1414_v15 = vadd.s32 1, %v6015_v26  ;;  %v1880_v32 = vshrl.u32 %v1879_v61, 23  ;;  %v6076_v34 = vpop.permute.xlu0 %396 }
 0x16e   : > { %v7473_v46 = vsel %vm6043_vm15, 4294967295, %v7472_v46  ;;  %v1326_v40 = vshrl.u32 %v1308_v11, %v1324_v7  ;;  %v1329_v25 = vadd.s32 127, %v1328_v59  ;;  %v1411_v14 = vmul.u32 %v5969_v17, %v1395_v56 }
 0x16f   : > { %7474 = vst [vmem:[#allocation38_spill] sm:$0xff] %v7473_v46  ;;  %v1883_v53 = vand.u32 8388607, %v7337_v12  ;;  %v1415_v18 = vsel %vm1413_vm4, %v1414_v15, %v6015_v26  ;;  %v4613_v41 = vadd.s32 4294967169, %v1880_v32  ;;  %v7336_v19 = vand.u32 2147483647, %v6039_v57 }
 0x170   : > { %v1983_v39 = vand.u32 2139095040, %v6039_v57  ;;  %v1236_v33 = vsel %vm6005_vm10, %v5464_v54, %v1233_v22  ;;  %v6061_v29 = vmul.f32 %v710_v47, %v708_v5  ;;  %v1325_v23 = vshll.u32 %v5972_v27, %v1323_v45 }
 0x171   : > { %v1416_v52 = vadd.s32 %v1415_v18, %v1411_v14  ;;  %v6067_v17 = vsel %vm767_vm11, %v5873_v13, 920167782  ;;  %v1545_v26 = vsel %vm7343_vm13, %v1544_v0, %v5967_v28  ;;  %v6072_v62 = vmul.f32 %v1646_v63, %v1644_v58 }
 0x172   : > { %v1886_v61 = vadd.s32 1, %v4613_v41  ;;  %v6074_v56 = vor.u32 %v1326_v40, %v1325_v23  ;;  %v1330_v22 = vshll.u32 %v1329_v25, 23  ;;  %v1884_v47 = vor.u32 8388608, %v1883_v53 }
 0x173   : > { %v1417_v5 = vadd.s32 536870912, %v1416_v52  ;;  %4898 = vcosq.f32 %v1236_v33  ;;  %v1984_v27 = vshrl.u32 %v1983_v39, 23  ;;  %v6080_v45 = vand.u32 8388607, %v7336_v19 }
 0x174   : > { %vm1887_vm8 = vcmp.gt.s32.totalorder %v1886_v61, 0  ;;  %4900 = vsinq.f32 %v1236_v33  ;;  %v6088_v7 = vsel %vm6043_vm15, %v5588_v49, %v1545_v26  ;;  %v6093_v63 = vmul.f32 %v6076_v34, %v5977_v35 }
 0x175   : > { %v6083_v0 = vshrl.u32 %v1417_v5, 30  ;;  %v1888_v11 = vsel %vm1887_vm8, %v1886_v61, 0  ;;  %v1331_v15 = vor.u32 4788187, %v1330_v22  ;;  %v1334_v32 = vcvt.s32.f32 %v6074_v56 }
 0x176   : > { %v1890_v58 = vand.u32 31, %v1888_v11  ;;  %v6097_v25 = vshll.u32 %v1884_v47, 8  ;;  %v1889_v14 = vshrl.u32 %v1888_v11, 5  ;;  %v4617_v18 = vadd.s32 4294967169, %v1984_v27 }
 0x177   : > { %7475 = vst [vmem:[#allocation39_spill] sm:$0xff] %v6083_v0  ;;  %v1419_v40 = vshll.u32 %v6083_v0, 30  ;;  %v1988_v41 = vor.u32 8388608, %v6080_v45  ;;  %v1332_v45 = vand.u32 2147483647, %v1331_v15  ;;  %vm7349_vm2 = vcmp.lt.s32.totalorder %v5729_v30, 0 }
 0x178   : > { %v1891_v53 = vsub.s32 32, %v1890_v58  ;;  %v1893_v33 = vshll.u32 %v7434_v37, %v1890_v58  ;;  %v1896_v23 = vshll.u32 %v7445_v3, %v1890_v58  ;;  %v1899_v35 = vshll.u32 %v7428_v36, %v1890_v58 }
 0x179   : > { %v6100_v39 = vsub.s32 %v1416_v52, %v1419_v40  ;;  %v1902_v22 = vshll.u32 %v7429_v1, %v1890_v58  ;;  %v1905_v52 = vshll.u32 %v7435_v50, %v1890_v58  ;;  %v1671_v59 = vand.u32 2139095040, %v6093_v63 }
 0x17a   : > { %v1894_v26 = vshrl.u32 %v7445_v3, %v1891_v53  ;;  %v1897_v61 = vshrl.u32 %v7428_v36, %v1891_v53  ;;  %v1900_v56 = vshrl.u32 %v7429_v1, %v1891_v53  ;;  %v1903_v47 = vshrl.u32 %v7435_v50, %v1891_v53 }
 0x17b   : > { %v1422_v5 = vsub.s32 0, %v6100_v39  ;;  %v1906_v27 = vshrl.u32 %v7436_v51, %v1891_v53  ;;  %v1892_v49 = vshrl.u32 %v7434_v37, %v1891_v53  ;;  %vm1908_vm4 = vcmp.lt.s32.totalorder %v1889_v14, 1 }
 0x17c   : > { %v1895_v11 = vor.u32 %v1894_v26, %v1893_v33  ;;  %v1898_v40 = vor.u32 %v1897_v61, %v1896_v23  ;;  %v1901_v19 = vor.u32 %v1900_v56, %v1899_v35  ;;  %v1904_v24 = vor.u32 %v1903_v47, %v1902_v22 }
 0x17d   : > { %v4594_v12 = vmin.u32 %v1422_v5, %v6100_v39  ;;  %v1907_v28 = vor.u32 %v1906_v27, %v1905_v52  ;;  %v6116_v46 = vpop.eup %4898  ;;  %vm1909_vm8 = vcmp.lt.s32.totalorder %v1889_v14, 2  ;;  %v1990_v58 = vadd.s32 1, %v4617_v18 }
 0x17e   : > { %7476 = vst [vmem:[#allocation40_spill] sm:$0xff] %v6116_v46  ;;  %v6119_v0 = vpop.eup %4900  ;;  %vm1910_vm13 = vcmp.lt.s32.totalorder %v1889_v14, 3  ;;  %vm1911_vm0 = vcmp.lt.s32.totalorder %v1889_v14, 4  ;;  %v1916_v33 = vsel %vm1908_vm4, %v1895_v11, %v1898_v40  ;;  %v1920_v26 = vsel %vm1908_vm4, %v1898_v40, %v1901_v19 }
 0x17f   : > { %7477 = vst [vmem:[#allocation41_spill] sm:$0xff] %v6119_v0  ;;  %v1424_v15 = vclz %v4594_v12  ;;  %v1913_v23 = vsel %vm1911_vm0, %v1901_v19, 2102212464  ;;  %v1917_v35 = vsel %vm1911_vm0, %v1904_v24, 920167782  ;;  %v1912_v22 = vsel %vm1908_vm4, %v1892_v49, %v1895_v11 }
 0x180   : > { %v1921_v61 = vsel %vm1911_vm0, %v1907_v28, 1326507024  ;;  %v1918_v5 = vsel %vm1910_vm13, %v1901_v19, %v1917_v35  ;;  %v1914_v52 = vsel %vm1910_vm13, %v1898_v40, %v1913_v23  ;;  %vm1991_vm1 = vcmp.gt.s32.totalorder %v1990_v58, 0 }
 0x181   : > { %v4595_v56 = vadd.s32 4294967294, %v1424_v15  ;;  %v1922_v47 = vsel %vm1910_vm13, %v1904_v24, %v1921_v61  ;;  %v1919_v53 = vsel %vm1909_vm8, %v1916_v33, %v1918_v5  ;;  %v6123_v18 = vmul.f32 %v1334_v32, %v1332_v45 }
 0x182   : > { %v1923_v27 = vsel %vm1909_vm8, %v1920_v26, %v1922_v47  ;;  %v6130_v28 = vmul.u32.u64.low %v6097_v25, %v1919_v53  ;;  %v6131_v15 = vmul.u32.u64.high %v6097_v25, %v1919_v53, %v6130_v28  ;;  %v1992_v49 = vsel %vm1991_vm1, %v1990_v58, 0 }
 0x183   : > { %vm4596_vm14 = vcmp.lt.s32.totalorder %v4595_v56, 0  ;;  %v6126_v12 = vmul.u32.u64.low %v6097_v25, %v1923_v27  ;;  %v6127_v46 = vmul.u32.u64.high %v6097_v25, %v1923_v27, %v6126_v12  ;;  %4902 = vcosq.f32 %v6088_v7 }
 0x184   : > { %v1427_v0 = vsel %vm4596_vm14, 0, %v4595_v56  ;;  %v1915_v11 = vsel %vm1909_vm8, %v1912_v22, %v1914_v52  ;;  %v7478_v32 = vxor.u32 2147483648, %v6072_v62  ;;  %v1412_v40 = vadd.s32 %v6014_v10, %v6011_v16 }
 0x185   : > { %v1428_v24 = vsub.s32 32, %v1427_v0  ;;  %v1432_v19 = vsub.s32 4294967266, %v1427_v0  ;;  %v1994_v33 = vand.u32 31, %v1992_v49  ;;  %vm1933_vm1 = vc.u32 %v6127_v46, %v6130_v28 }
 0x186   : > { %v6141_v45 = vsel %vm7349_vm2, %v7478_v32, %v6072_v62  ;;  %v6148_v35 = vshll.u32 %v1988_v41, 8  ;;  %v1672_v14 = vshrl.u32 %v1671_v59, 23  ;;  %v1931_v61 = vmul.u32 %v6097_v25, %v1915_v11 }
 0x187   : > { %v1433_v58 = vadd.s32 127, %v1432_v19  ;;  %v1934_v62 = vadd.s32 1, %v6131_v15  ;;  %v1995_v56 = vsub.s32 32, %v1994_v33  ;;  %v1429_v22 = vshll.u32 %v6100_v39, %v1427_v0 }
 0x188   : > { %v1430_v16 = vshrl.u32 %v1412_v40, %v1428_v24  ;;  %v1997_v10 = vshll.u32 %v7434_v37, %v1994_v33  ;;  %v2000_v5 = vshll.u32 %v7445_v3, %v1994_v33  ;;  %v1993_v27 = vshrl.u32 %v1992_v49, 5 }
 0x189   : > { %v1434_v47 = vshll.u32 %v1433_v58, 23  ;;  %v1935_v52 = vsel %vm1933_vm1, %v1934_v62, %v6131_v15  ;;  %v1998_v41 = vshrl.u32 %v7445_v3, %v1995_v56  ;;  %v2001_v59 = vshrl.u32 %v7428_v36, %v1995_v56 }
 0x18a   : > { %v1936_v53 = vadd.s32 %v1935_v52, %v1931_v61  ;;  %v2003_v25 = vshll.u32 %v7428_v36, %v1994_v33  ;;  %v2004_v12 = vshrl.u32 %v7429_v1, %v1995_v56  ;;  %v2006_v39 = vshll.u32 %v7429_v1, %v1994_v33 }
 0x18b   : > { %v1999_v19 = vor.u32 %v1998_v41, %v1997_v10  ;;  %v2002_v0 = vor.u32 %v2001_v59, %v2000_v5  ;;  %v2007_v24 = vshrl.u32 %v7435_v50, %v1995_v56  ;;  %v2009_v15 = vshll.u32 %v7435_v50, %v1994_v33 }
 0x18c   : > { %v1937_v11 = vadd.s32 536870912, %v1936_v53  ;;  %v2005_v32 = vor.u32 %v2004_v12, %v2003_v25  ;;  %v2010_v40 = vshrl.u32 %v7436_v51, %v1995_v56  ;;  %vm7360_vm0 = vcmp.lt.s32.totalorder %v5786_v43, 0 }
 0x18d   : > { %v1431_v58 = vor.u32 %v1430_v16, %v1429_v22  ;;  %v1435_v49 = vor.u32 4788187, %v1434_v47  ;;  %v2008_v61 = vor.u32 %v2007_v24, %v2006_v39  ;;  %v4605_v62 = vadd.s32 4294967169, %v1672_v14  ;;  %v6166_v52 = vpop.eup %4902 }
 0x18e   : > { %7479 = vst [vmem:[#allocation42_spill] sm:$0xff] %v6166_v52  ;;  %v7480_v10 = vand.u32 2147483647, %v5729_v30  ;;  %v7481_v5 = vmov 0  ;;  %v6174_v41 = vshrl.u32 %v1937_v11, 30  ;;  %v2011_v59 = vor.u32 %v2010_v40, %v2009_v15 }
 0x18f   : > { %vm2012_vm13 = vcmp.lt.s32.totalorder %v1993_v27, 1  ;;  %vm2015_vm4 = vcmp.lt.s32.totalorder %v1993_v27, 4  ;;  %vm2014_vm8 = vcmp.lt.s32.totalorder %v1993_v27, 3  ;;  %v7485_v14 = vand.u32 2147483647, %v5786_v43 }
 0x190   : > { %vm6170_vm14 = vcmp.le.f32.partialorder %v7480_v10, 0.7853982  ;;  %7484 = vst [vmem:[#allocation44_spill] sm:$0xff] %v6174_v41  ;;  %v2017_v33 = vsel %vm2015_vm4, %v2005_v32, 2102212464  ;;  %v2020_v22 = vsel %vm2012_vm13, %v1999_v19, %v2002_v0  ;;  %v7486_v47 = vmov 0 }
 0x191   : > { %v7482_v5 = vsel %vm6170_vm14, 4294967295, %v7481_v5  ;;  %v2021_v16 = vsel %vm2015_vm4, %v2008_v61, 920167782  ;;  %vm6179_vm1 = vcmp.le.f32.partialorder %v7485_v14, 0.7853982  ;;  %v1939_v25 = vshll.u32 %v6174_v41, 30 }
 0x192   : > { %7483 = vst [vmem:[#allocation43_spill] sm:$0xff] %v7482_v5  ;;  %v7487_v47 = vsel %vm6179_vm1, 4294967295, %v7486_v47  ;;  %v1996_v12 = vshrl.u32 %v7434_v37, %v1995_v56  ;;  %vm2013_vm2 = vcmp.lt.s32.totalorder %v1993_v27, 2  ;;  %v2022_v39 = vsel %vm2014_vm8, %v2005_v32, %v2021_v16 }
 0x193   : > { %7488 = vst [vmem:[#allocation45_spill] sm:$0xff] %v7487_v47  ;;  %v1436_v24 = vand.u32 2147483647, %v1435_v49  ;;  %v2023_v11 = vsel %vm2013_vm2, %v2020_v22, %v2022_v39  ;;  %v2024_v15 = vsel %vm2012_vm13, %v2002_v0, %v2005_v32  ;;  %v2025_v40 = vsel %vm2015_vm4, %v2011_v59, 1326507024 }
 0x194   : > { %v6188_v10 = vsub.s32 %v1936_v53, %v1939_v25  ;;  %v2016_v14 = vsel %vm2012_vm13, %v1996_v12, %v1999_v19  ;;  %v2018_v26 = vsel %vm2014_vm8, %v2002_v0, %v2017_v33  ;;  %v2026_v23 = vsel %vm2014_vm8, %v2008_v61, %v2025_v40 }
 0x195   : > { %v2027_v41 = vsel %vm2013_vm2, %v2024_v15, %v2026_v23  ;;  %v6195_v56 = vmul.u32.u64.low %v6148_v35, %v2023_v11  ;;  %v6196_v52 = vmul.u32.u64.high %v6148_v35, %v2023_v11, %v6195_v56  ;;  %v7489_v49 = vand.u32 2147483647, %v6093_v63 }
 0x196   : > { %v1438_v32 = vcvt.s32.f32 %v1431_v58  ;;  %v1942_v53 = vsub.s32 0, %v6188_v10  ;;  %v6203_v59 = vmul.u32.u64.low %v6148_v35, %v2027_v41  ;;  %v6204_v19 = vmul.u32.u64.high %v6148_v35, %v2027_v41, %v6203_v59 }
 0x197   : > { %v1675_v22 = vand.u32 8388607, %v7489_v49  ;;  %v2019_v0 = vsel %vm2013_vm2, %v2016_v14, %v2018_v26  ;;  %v6209_v23 = vmul.f32 %v6076_v34, %v5998_v60  ;;  %v1678_v61 = vadd.s32 1, %v4605_v62 }
 0x198   : > { %4904 = vsinq.f32 %v6088_v7  ;;  %v7491_v58 = vxor.u32 2147483648, %v6123_v18  ;;  %v6218_v25 = vmul.f32 %v1438_v32, %v1436_v24  ;;  %v4614_v27 = vmin.u32 %v1942_v53, %v6188_v10 }
 0x199   : > { %7490 = vst [vmem:[#allocation46_spill] sm:$0xff] %v6209_v23  ;;  %v6225_v60 = vsel %vm6170_vm14, %v5729_v30, %v6141_v45  ;;  %v2038_v34 = vadd.s32 1, %v6196_v52  ;;  %v1676_v26 = vor.u32 8388608, %v1675_v22  ;;  %vm1679_vm2 = vcmp.gt.s32.totalorder %v1678_v61, 0 }
 0x19a   : > { %v1337_v16 = vsel %vm7360_vm0, %v7491_v58, %v6123_v18  ;;  %v1944_v7 = vclz %v4614_v27  ;;  %v2035_v62 = vmul.u32 %v6148_v35, %v2019_v0  ;;  %vm2037_vm13 = vc.u32 %v6204_v19, %v6195_v56 }
 0x19b   : > { %v1680_v18 = vsel %vm1679_vm2, %v1678_v61, 0  ;;  %v6234_v41 = vsel %vm6179_vm1, %v5786_v43, %v1337_v16  ;;  %v2039_v12 = vsel %vm2037_vm13, %v2038_v34, %v6196_v52  ;;  %v1932_v11 = vadd.s32 %v6130_v28, %v6127_v46 }
 0x19c   : > { %v1682_v45 = vand.u32 31, %v1680_v18  ;;  %v4615_v35 = vadd.s32 4294967294, %v1944_v7  ;;  %v2040_v15 = vadd.s32 %v2039_v12, %v2035_v62  ;;  %v6241_v40 = vshrl.u32 %v1680_v18, 5 }
 0x19d   : > { %v6243_v49 = vshll.u32 %v1676_v26, 8  ;;  %v1775_v22 = vand.u32 2139095040, %v6209_v23  ;;  %v7494_v43 = vand.u32 2147483647, %v6209_v23  ;;  %vm7374_vm13 = vcmp.lt.s32.totalorder %v5524_v9, 0 }
 0x19e   : > { %v1683_v14 = vsub.s32 32, %v1682_v45  ;;  %vm4616_vm4 = vcmp.lt.s32.totalorder %v4615_v35, 0  ;;  %v2041_v32 = vadd.s32 536870912, %v2040_v15  ;;  %v1685_v52 = vshll.u32 %v7434_v37, %v1682_v45 }
 0x19f   : > { %v1688_v53 = vshll.u32 %v7445_v3, %v1682_v45  ;;  %v1947_v59 = vsel %vm4616_vm4, 0, %v4615_v35  ;;  %v1691_v28 = vshll.u32 %v7428_v36, %v1682_v45  ;;  %v1694_v27 = vshll.u32 %v7429_v1, %v1682_v45 }
 0x1a0   : > { %v1686_v0 = vshrl.u32 %v7445_v3, %v1683_v14  ;;  %v1689_v46 = vshrl.u32 %v7428_v36, %v1683_v14  ;;  %v1948_v61 = vsub.s32 32, %v1947_v59  ;;  %v1952_v58 = vsub.s32 4294967266, %v1947_v59 }
 0x1a1   : > { %v6251_v16 = vshrl.u32 %v2041_v32, 30  ;;  %v1692_v26 = vshrl.u32 %v7429_v1, %v1683_v14  ;;  %v1695_v7 = vshrl.u32 %v7435_v50, %v1683_v14  ;;  %v1697_v62 = vshll.u32 %v7435_v50, %v1682_v45 }
 0x1a2   : > { %v1687_v34 = vor.u32 %v1686_v0, %v1685_v52  ;;  %v6257_v18 = vpop.eup %4904  ;;  %v1953_v12 = vadd.s32 127, %v1952_v58  ;;  %v1690_v24 = vor.u32 %v1689_v46, %v1688_v53  ;;  %v1698_v33 = vshrl.u32 %v7436_v51, %v1683_v14 }
 0x1a3   : > { %7492 = vst [vmem:[#allocation47_spill] sm:$0xff] %v6251_v16  ;;  %7493 = vst [vmem:[#allocation48_spill] sm:$0xff] %v6257_v18  ;;  %v2043_v35 = vshll.u32 %v6251_v16, 30  ;;  %v1693_v39 = vor.u32 %v1692_v26, %v1691_v28  ;;  %v1696_v32 = vor.u32 %v1695_v7, %v1694_v27  ;;  %v1776_v47 = vshrl.u32 %v1775_v22, 23 }
 0x1a4   : > { %v1779_v52 = vand.u32 8388607, %v7494_v43  ;;  %v1950_v0 = vshrl.u32 %v1932_v11, %v1948_v61  ;;  %v1954_v5 = vshll.u32 %v1953_v12, 23  ;;  %v1699_v42 = vor.u32 %v1698_v33, %v1697_v62 }
 0x1a5   : > { %v6263_v30 = vsub.s32 %v2040_v15, %v2043_v35  ;;  %v1949_v45 = vshll.u32 %v6188_v10, %v1947_v59  ;;  %v1684_v58 = vshrl.u32 %v7434_v37, %v1683_v14  ;;  %vm1700_vm8 = vcmp.lt.s32.totalorder %v6241_v40, 1 }
 0x1a6   : > { %vm1702_vm2 = vcmp.lt.s32.totalorder %v6241_v40, 3  ;;  %v1955_v53 = vor.u32 4788187, %v1954_v5  ;;  %vm1703_vm4 = vcmp.lt.s32.totalorder %v6241_v40, 4  ;;  %v1708_v43 = vsel %vm1700_vm8, %v1687_v34, %v1690_v24 }
 0x1a7   : > { %v2046_v22 = vsub.s32 0, %v6263_v30  ;;  %v1705_v11 = vsel %vm1703_vm4, %v1693_v39, 2102212464  ;;  %v1709_v15 = vsel %vm1703_vm4, %v1696_v32, 920167782  ;;  %v1712_v46 = vsel %vm1700_vm8, %v1690_v24, %v1693_v39 }
 0x1a8   : > { %v1713_v33 = vsel %vm1703_vm4, %v1699_v42, 1326507024  ;;  %v1951_v28 = vor.u32 %v1950_v0, %v1949_v45  ;;  %vm1701_vm0 = vcmp.lt.s32.totalorder %v6241_v40, 2  ;;  %v1710_v14 = vsel %vm1702_vm2, %v1693_v39, %v1709_v15 }
 0x1a9   : > { %v4618_v10 = vmin.u32 %v2046_v22, %v6263_v30  ;;  %v1704_v59 = vsel %vm1700_vm8, %v1684_v58, %v1687_v34  ;;  %v1711_v5 = vsel %vm1701_vm0, %v1708_v43, %v1710_v14  ;;  %v1714_v61 = vsel %vm1702_vm2, %v1696_v32, %v1713_v33 }
 0x1aa   : > { %v4609_v27 = vadd.s32 4294967169, %v1776_v47  ;;  %v1956_v26 = vand.u32 2147483647, %v1955_v53  ;;  %v1706_v42 = vsel %vm1702_vm2, %v1690_v24, %v1705_v11  ;;  %v1715_v62 = vsel %vm1701_vm0, %v1712_v46, %v1714_v61 }
 0x1ab   : > { %v2048_v7 = vclz %v4618_v10  ;;  %v6285_v12 = vmul.u32.u64.low %v6243_v49, %v1715_v62  ;;  %v6286_v35 = vmul.u32.u64.high %v6243_v49, %v1715_v62, %v6285_v12  ;;  %v1958_v0 = vcvt.s32.f32 %v1951_v28 }
 0x1ac   : > { %v6289_v39 = vmul.u32.u64.low %v6243_v49, %v1711_v5  ;;  %v6290_v34 = vmul.u32.u64.high %v6243_v49, %v1711_v5, %v6289_v39  ;;  %v1782_v47 = vadd.s32 1, %v4609_v27  ;;  %v7495_v45 = vand.u32 2147483647, %v5309_v20 }
 0x1ad   : > { %v4619_v32 = vadd.s32 4294967294, %v2048_v7  ;;  %4906 = vcosq.f32 %v6225_v60  ;;  %vm7372_vm8 = vcmp.lt.s32.totalorder %v5884_v31, 0  ;;  %v1707_v24 = vsel %vm1701_vm0, %v1704_v59, %v1706_v42 }
 0x1ae   : > { %v6295_v58 = vand.u32 8388607, %v7495_v45  ;;  %v1780_v53 = vor.u32 8388608, %v1779_v52  ;;  %4908 = vsinq.f32 %v6225_v60  ;;  %v6302_v22 = vmul.f32 %v1958_v0, %v1956_v26 }
 0x1af   : > { %vm4620_vm2 = vcmp.lt.s32.totalorder %v4619_v32, 0  ;;  %vm1783_vm4 = vcmp.gt.s32.totalorder %v1782_v47, 0  ;;  %v7496_v43 = vxor.u32 2147483648, %v6061_v29  ;;  %v7498_v15 = vor.u32 %v5877_v6, %v5830_v2 }
 0x1b0   : > { %4910 = vcosq.f32 %v6234_v41  ;;  %v7499_v60 = vxor.u32 2147483648, %v6218_v25  ;;  %v1723_v46 = vmul.u32 %v6243_v49, %v1707_v24  ;;  %vm1725_vm0 = vc.u32 %v6286_v35, %v6289_v39 }
 0x1b1   : > { %v6309_v11 = vsel %vm7374_vm13, %v7496_v43, %v6061_v29  ;;  %v6316_v40 = vsel %vm767_vm11, %v7498_v15, 1326507024  ;;  %v2036_v29 = vadd.s32 %v6195_v56, %v6204_v19  ;;  %v2051_v6 = vsel %vm4620_vm2, 0, %v4619_v32  ;;  %v7500_v56 = vld [vmem:[#allocation13_spill] sm:$0xff] }
 0x1b2   : > { %7497 = vst [vmem:[#allocation49_spill] sm:$0xff] %v6309_v11  ;;  %v6324_v52 = vsel %vm7372_vm8, %v7499_v60, %v6218_v25  ;;  %v1726_v33 = vadd.s32 1, %v6290_v34  ;;  %v1784_v28 = vsel %vm1783_vm4, %v1782_v47, 0  ;;  %v6333_v10 = vshll.u32 %v1780_v53, 8 }
 0x1b3   : > { %v1786_v25 = vand.u32 31, %v1784_v28  ;;  %v6338_v59 = vshrl.u32 %v7434_v37, %v5497_v48  ;;  %v541_v19 = vshll.u32 %v7434_v37, %v7500_v56  ;;  %v542_v5 = vshrl.u32 %v7445_v3, %v5497_v48 }
 0x1b4   : > { %v1727_v49 = vsel %vm1725_vm0, %v1726_v33, %v6290_v34  ;;  %v544_v61 = vshll.u32 %v7445_v3, %v7500_v56  ;;  %v545_v27 = vshrl.u32 %v7428_v36, %v5497_v48  ;;  %v2052_v26 = vsub.s32 32, %v2051_v6 }
 0x1b5   : > { %v1728_v7 = vadd.s32 %v1727_v49, %v1723_v46  ;;  %v1787_v42 = vsub.s32 32, %v1786_v25  ;;  %v547_v62 = vshll.u32 %v7428_v36, %v7500_v56  ;;  %v2053_v12 = vshll.u32 %v6263_v30, %v2051_v6 }
 0x1b6   : > { %v2056_v0 = vsub.s32 4294967266, %v2051_v6  ;;  %v1785_v32 = vshrl.u32 %v1784_v28, 5  ;;  %v1789_v34 = vshll.u32 %v7434_v37, %v1786_v25  ;;  %v1792_v45 = vshll.u32 %v7445_v3, %v1786_v25 }
 0x1b7   : > { %v1729_v47 = vadd.s32 536870912, %v1728_v7  ;;  %v1795_v24 = vshll.u32 %v7428_v36, %v1786_v25  ;;  %v1798_v53 = vshll.u32 %v7429_v1, %v1786_v25  ;;  %v6356_v43 = vpop.eup %4906  ;;  %v1790_v15 = vshrl.u32 %v7445_v3, %v1787_v42 }
 0x1b8   : > { %7501 = vst [vmem:[#allocation13_spill] sm:$0xff] %v6356_v43  ;;  %v1793_v60 = vshrl.u32 %v7428_v36, %v1787_v42  ;;  %v1796_v46 = vshrl.u32 %v7429_v1, %v1787_v42  ;;  %v1799_v30 = vshrl.u32 %v7435_v50, %v1787_v42  ;;  %v6362_v6 = vpop.eup %4908  ;;  %v1801_v28 = vshll.u32 %v7435_v50, %v1786_v25 }
 0x1b9   : > { %7502 = vst [vmem:[#allocation50_spill] sm:$0xff] %v6362_v6  ;;  %v6364_v33 = vshrl.u32 %v1729_v47, 30  ;;  %v1802_v56 = vshrl.u32 %v7436_v51, %v1787_v42  ;;  %v543_v49 = vor.u32 %v542_v5, %v541_v19  ;;  %v1791_v2 = vor.u32 %v1790_v15, %v1789_v34 }
 0x1ba   : > { %v6368_v14 = vpop.eup %4910  ;;  %v1794_v16 = vor.u32 %v1793_v60, %v1792_v45  ;;  %v1797_v18 = vor.u32 %v1796_v46, %v1795_v24  ;;  %v1800_v43 = vor.u32 %v1799_v30, %v1798_v53  ;;  %v2054_v54 = vshrl.u32 %v2036_v29, %v2052_v26 }
 0x1bb   : > { %v2057_v11 = vadd.s32 127, %v2056_v0  ;;  %v1731_v9 = vshll.u32 %v6364_v33, 30  ;;  %v1803_v23 = vor.u32 %v1802_v56, %v1801_v28  ;;  %v1788_v6 = vshrl.u32 %v7434_v37, %v1787_v42 }
 0x1bc   : > { %vm1804_vm2 = vcmp.lt.s32.totalorder %v1785_v32, 1  ;;  %v546_v47 = vor.u32 %v545_v27, %v544_v61  ;;  %v548_v50 = vshrl.u32 %v7429_v1, %v5497_v48  ;;  %vm1806_vm4 = vcmp.lt.s32.totalorder %v1785_v32, 3 }
 0x1bd   : > { %v6374_v51 = vsub.s32 %v1728_v7, %v1731_v9  ;;  %vm1807_vm0 = vcmp.lt.s32.totalorder %v1785_v32, 4  ;;  %v1812_v25 = vsel %vm1804_vm2, %v1791_v2, %v1794_v16  ;;  %v1816_v29 = vsel %vm1804_vm2, %v1794_v16, %v1797_v18 }
 0x1be   : > { %v1809_v19 = vsel %vm1807_vm0, %v1797_v18, 2102212464  ;;  %v1813_v5 = vsel %vm1807_vm0, %v1800_v43, 920167782  ;;  %v1817_v26 = vsel %vm1807_vm0, %v1803_v23, 1326507024  ;;  %v2055_v27 = vor.u32 %v2054_v54, %v2053_v12 }
 0x1bf   : > { %v2058_v0 = vshll.u32 %v2057_v11, 23  ;;  %v1734_v34 = vsub.s32 0, %v6374_v51  ;;  %vm1805_vm8 = vcmp.lt.s32.totalorder %v1785_v32, 2  ;;  %v1814_v61 = vsel %vm1806_vm4, %v1797_v18, %v1813_v5 }
 0x1c0   : > { %v1808_v48 = vsel %vm1804_vm2, %v1788_v6, %v1791_v2  ;;  %v1815_v9 = vsel %vm1805_vm8, %v1812_v25, %v1814_v61  ;;  %v1818_v7 = vsel %vm1806_vm4, %v1800_v43, %v1817_v26  ;;  %v1810_v45 = vsel %vm1806_vm4, %v1794_v16, %v1809_v19 }
 0x1c1   : > { %v4606_v42 = vmin.u32 %v1734_v34, %v6374_v51  ;;  %v1819_v24 = vsel %vm1805_vm8, %v1816_v29, %v1818_v7  ;;  %v549_v23 = vor.u32 %v548_v50, %v547_v62  ;;  %v1724_v11 = vadd.s32 %v6289_v39, %v6286_v35 }
 0x1c2   : > { %v6389_v53 = vmul.u32.u64.low %v6333_v10, %v1819_v24  ;;  %v6390_v18 = vmul.u32.u64.high %v6333_v10, %v1819_v24, %v6389_v53  ;;  %vm556_vm2 = vcmp.lt.s32.totalorder %v5472_v55, 1  ;;  %v7503_v54 = vand.u32 2147483647, %v5884_v31 }
 0x1c3   : > { %v2059_v12 = vor.u32 4788187, %v2058_v0  ;;  %v1736_v16 = vclz %v4606_v42  ;;  %v6400_v43 = vmul.u32.u64.low %v6333_v10, %v1815_v9  ;;  %v6401_v62 = vmul.u32.u64.high %v6333_v10, %v1815_v9, %v6400_v43  ;;  %v7507_v9 = vld [vmem:[#allocation17_spill] sm:$0xff] }
 0x1c4   : > { %vm6395_vm0 = vcmp.le.f32.partialorder %v7503_v54, 0.7853982  ;;  %vm7376_vm4 = vcmp.lt.s32.totalorder %v6001_v38, 0  ;;  %v2062_v35 = vcvt.s32.f32 %v2055_v27  ;;  %v1811_v39 = vsel %vm1805_vm8, %v1808_v48, %v1810_v45  ;;  %v7509_v54 = vld [vmem:[#allocation30_spill] sm:$0xff] }
 0x1c5   : > { %vm558_vm6 = vcmp.lt.s32.totalorder %v5472_v55, 3  ;;  %v561_v15 = vsel %vm559_vm9, %v549_v23, 2102212464  ;;  %v4607_v60 = vadd.s32 4294967294, %v1736_v16  ;;  %v564_v46 = vsel %vm556_vm2, %v543_v49, %v546_v47 }
 0x1c6   : > { %v566_v30 = vsel %vm558_vm6, %v549_v23, %v5706_v21  ;;  %v568_v6 = vsel %vm556_vm2, %v546_v47, %v549_v23  ;;  %vm1829_vm13 = vc.u32 %v6390_v18, %v6400_v43  ;;  %vm557_vm7 = vcmp.lt.s32.totalorder %v5472_v55, 2 }
 0x1c7   : > { %v560_v32 = vsel %vm556_vm2, %v6338_v59, %v543_v49  ;;  %v570_v28 = vsel %vm558_vm6, %v5614_v4, %v5725_v8  ;;  %vm4608_vm9 = vcmp.lt.s32.totalorder %v4607_v60, 0  ;;  %v1830_v56 = vadd.s32 1, %v6401_v62 }
 0x1c8   : > { %v562_v50 = vsel %vm558_vm6, %v546_v47, %v561_v15  ;;  %v571_v21 = vsel %vm557_vm7, %v568_v6, %v570_v28  ;;  %v1739_v25 = vsel %vm4608_vm9, 0, %v4607_v60  ;;  %v1827_v19 = vmul.u32 %v6333_v10, %v1811_v39  ;;  %v7513_v15 = vld [vmem:[#allocation28_spill] sm:$0xff] }
 0x1c9   : > { %v567_v5 = vsel %vm557_vm7, %v564_v46, %v566_v30  ;;  %v7506_v29 = vor.u32 8388608, %v6295_v58  ;;  %v2060_v59 = vand.u32 2147483647, %v2059_v12  ;;  %v1740_v49 = vsub.s32 32, %v1739_v25 }
 0x1ca   : > { %v1744_v0 = vsub.s32 4294967266, %v1739_v25  ;;  %v1831_v4 = vsel %vm1829_vm13, %v1830_v56, %v6401_v62  ;;  %v563_v47 = vsel %vm557_vm7, %v560_v32, %v562_v50  ;;  %v732_v58 = vand.u32 2147483647, %v7507_v9 }
 0x1cb   : > { %v572_v26 = vshll.u32 %v7506_v29, 8  ;;  %v1832_v8 = vadd.s32 %v1831_v4, %v1827_v19  ;;  %4912 = vsinq.f32 %v6234_v41  ;;  %v6446_v7 = vsel %vm6395_vm0, %v5884_v31, %v6324_v52 }
 0x1cc   : > { %v1745_v27 = vadd.s32 127, %v1744_v0  ;;  %v1742_v55 = vshrl.u32 %v1724_v11, %v1740_v49  ;;  %v7508_v45 = vxor.u32 2147483648, %v6302_v22  ;;  %v2063_v23 = vmul.f32 %v2062_v35, %v2060_v59 }
 0x1cd   : > { %v6433_v34 = vmul.u32.u64.low %v572_v26, %v571_v21  ;;  %v6434_v61 = vmul.u32.u64.high %v572_v26, %v571_v21, %v6433_v34  ;;  %v6436_v10 = vmul.u32.u64.low %v572_v26, %v567_v5  ;;  %v6437_v48 = vmul.u32.u64.high %v572_v26, %v567_v5, %v6436_v10 }
 0x1ce   : > { %v1833_v42 = vadd.s32 536870912, %v1832_v8  ;;  %v1961_v24 = vsel %vm7376_vm4, %v7508_v45, %v6302_v22  ;;  %v1746_v53 = vshll.u32 %v1745_v27, 23  ;;  %v750_v12 = vshrl.u32 %v7445_v3, %v7509_v54 }
 0x1cf   : > { %v7510_v41 = vand.u32 2147483647, %v6001_v38  ;;  %v7511_v16 = vmov 0  ;;  %v1741_v52 = vshll.u32 %v6374_v51, %v1739_v25  ;;  %v579_v62 = vmul.u32 %v572_v26, %v563_v47 }
 0x1d0   : > { %v6462_v11 = vshrl.u32 %v1833_v42, 30  ;;  %vm581_vm7 = vc.u32 %v6434_v61, %v6436_v10  ;;  %v1747_v22 = vor.u32 4788187, %v1746_v53  ;;  %v582_v35 = vadd.s32 1, %v6437_v48 }
 0x1d1   : > { %vm6457_vm6 = vcmp.le.f32.partialorder %v7510_v41, 0.7853982  ;;  %v739_v39 = vand.u32 8388607, %v732_v58  ;;  %v749_v60 = vshll.u32 %v7434_v37, %v7513_v15  ;;  %v1743_v46 = vor.u32 %v1742_v55, %v1741_v52 }
 0x1d2   : > { %v7512_v16 = vsel %vm6457_vm6, 4294967295, %v7511_v16  ;;  %v1835_v30 = vshll.u32 %v6462_v11, 30  ;;  %v752_v51 = vshll.u32 %v7445_v3, %v7513_v15  ;;  %v753_v6 = vshrl.u32 %v7428_v36, %v7509_v54 }
 0x1d3   : > { %vm7377_vm13 = vcmp.lt.s32.totalorder %v6039_v57, 0  ;;  %v583_v32 = vsel %vm581_vm7, %v582_v35, %v6437_v48  ;;  %v751_v28 = vor.u32 %v750_v12, %v749_v60  ;;  %v755_v56 = vshll.u32 %v7428_v36, %v7513_v15 }
 0x1d4   : > { %v756_v50 = vshrl.u32 %v7429_v1, %v7509_v54  ;;  %v2064_v21 = vxor.u32 2147483648, %v2063_v23  ;;  %v6482_v25 = vsub.s32 %v1832_v8, %v1835_v30  ;;  %v584_v19 = vadd.s32 %v583_v32, %v579_v62 }
 0x1d5   : > { %v754_v5 = vor.u32 %v753_v6, %v752_v51  ;;  %v1748_v3 = vand.u32 2147483647, %v1747_v22  ;;  %v740_v29 = vor.u32 8388608, %v739_v39  ;;  %vm766_vm8 = vcmp.lt.s32.totalorder %v5814_v44, 3  ;;  %v6504_v27 = vpop.eup %4912 }
 0x1d6   : > { %v757_v26 = vor.u32 %v756_v50, %v755_v56  ;;  %v7514_v59 = vand.u32 2147483647, %v6039_v57  ;;  %v7515_v49 = vmov 0  ;;  %v1838_v36 = vsub.s32 0, %v6482_v25 }
 0x1d7   : > { %v585_v0 = vadd.s32 536870912, %v584_v19  ;;  %vm764_vm9 = vcmp.lt.s32.totalorder %v5814_v44, 1  ;;  %v778_v1 = vsel %vm766_vm8, %v5873_v13, %v6316_v40  ;;  %v1750_v4 = vcvt.s32.f32 %v1743_v46 }
 0x1d8   : > { %vm6487_vm2 = vcmp.le.f32.partialorder %v7514_v59, 0.7853982  ;;  %v772_v8 = vsel %vm764_vm9, %v751_v28, %v754_v5  ;;  %v774_v47 = vsel %vm766_vm8, %v757_v26, %v6067_v17  ;;  %v776_v34 = vsel %vm764_vm9, %v754_v5, %v757_v26 }
 0x1d9   : > { %v7516_v49 = vsel %vm6487_vm2, 4294967295, %v7515_v49  ;;  %v4610_v48 = vmin.u32 %v1838_v36, %v6482_v25  ;;  %v6507_v55 = vshrl.u32 %v585_v0, 30  ;;  %vm765_vm7 = vcmp.lt.s32.totalorder %v5814_v44, 2 }
 0x1da   : > { %v769_v13 = vsel %vm767_vm11, %v757_v26, 2102212464  ;;  %v1964_v40 = vsel %vm6457_vm6, %v6001_v38, %v1961_v24  ;;  %v748_v17 = vshrl.u32 %v7434_v37, %v7509_v54  ;;  %v779_v42 = vsel %vm765_vm7, %v776_v34, %v778_v1  ;;  %v7523_v1 = vld [vmem:[#allocation7_spill] sm:$0xff] }
 0x1db   : > { %v780_v45 = vshll.u32 %v740_v29, 8  ;;  %vm7379_vm4 = vcmp.lt.s32.totalorder %v6093_v63, 0  ;;  %v1751_v53 = vmul.f32 %v1750_v4, %v1748_v3  ;;  %v1840_v12 = vclz %v4610_v48 }
 0x1dc   : > { %v587_v41 = vshll.u32 %v6507_v55, 30  ;;  %v775_v52 = vsel %vm765_vm7, %v772_v8, %v774_v47  ;;  %v768_v62 = vsel %vm764_vm9, %v748_v17, %v751_v28  ;;  %v770_v24 = vsel %vm766_vm8, %v754_v5, %v769_v13  ;;  %v7527_v13 = vld [vmem:[#allocation46_spill] sm:$0xff]  ;;  %v7528_v17 = vld [vmem:[#allocation11_spill] sm:$0xff] }
 0x1dd   : > { %v6527_v37 = vmul.u32.u64.low %v780_v45, %v779_v42  ;;  %v6528_v54 = vmul.u32.u64.high %v780_v45, %v779_v42, %v6527_v37  ;;  %4914 = vcosq.f32 %v6446_v7  ;;  %v2065_v22 = vsel %vm7377_vm13, %v2064_v21, %v2063_v23 }
 0x1de   : > { %v4611_v35 = vadd.s32 4294967294, %v1840_v12  ;;  %v6533_v39 = vsub.s32 %v584_v19, %v587_v41  ;;  %4916 = vsinq.f32 %v6446_v7  ;;  %v7517_v46 = vand.u32 2147483647, %v6093_v63 }
 0x1df   : > { %v6537_v15 = vmul.u32.u64.low %v780_v45, %v775_v52  ;;  %v6538_v60 = vmul.u32.u64.high %v780_v45, %v775_v52, %v6537_v15  ;;  %4918 = vcosq.f32 %v1964_v40  ;;  %v7518_v30 = vmov 0 }
 0x1e0   : > { %vm6543_vm8 = vcmp.le.f32.partialorder %v7517_v46, 0.7853982  ;;  %vm4612_vm9 = vcmp.lt.s32.totalorder %v4611_v35, 0  ;;  %v590_v23 = vsub.s32 0, %v6533_v39  ;;  %v771_v51 = vsel %vm765_vm7, %v768_v62, %v770_v24 }
 0x1e1   : > { %v7519_v30 = vsel %vm6543_vm8, 4294967295, %v7518_v30  ;;  %v6553_v7 = vsel %vm6487_vm2, %v6039_v57, %v2065_v22  ;;  %v1752_v6 = vxor.u32 2147483648, %v1751_v53  ;;  %v1828_v32 = vadd.s32 %v6400_v43, %v6390_v18 }
 0x1e2   : > { %v1843_v28 = vsel %vm4612_vm9, 0, %v4611_v35  ;;  %v7520_v21 = vand.u32 2147483647, %v5309_v20  ;;  %v4562_v44 = vmin.u32 %v590_v23, %v6533_v39  ;;  %vm789_vm7 = vc.u32 %v6528_v54, %v6537_v15 }
 0x1e3   : > { %v1844_v56 = vsub.s32 32, %v1843_v28  ;;  %v1848_v50 = vsub.s32 4294967266, %v1843_v28  ;;  %4920 = vsinq.f32 %v1964_v40  ;;  %v610_v5 = vsub.s32 4, %v6507_v55 }
 0x1e4   : > { %vm6559_vm13 = vcmp.le.f32.partialorder %v7520_v21, 0.7853982  ;;  %v787_v3 = vmul.u32 %v780_v45, %v771_v51  ;;  %v790_v18 = vadd.s32 1, %v6538_v60  ;;  %v1845_v43 = vshll.u32 %v6482_v25, %v1843_v28  ;;  %v7529_v45 = vld [vmem:[#allocation29_spill] sm:$0xff] }
 0x1e5   : > { %v1846_v29 = vshrl.u32 %v1828_v32, %v1844_v56  ;;  %v1849_v26 = vadd.s32 127, %v1848_v50  ;;  %v592_v59 = vclz %v4562_v44  ;;  %4922 = vcosq.f32 %v6553_v7 }
 0x1e6   : > { %v1753_v36 = vsel %vm7379_vm4, %v1752_v6, %v1751_v53  ;;  %v791_v0 = vsel %vm789_vm7, %v790_v18, %v6538_v60  ;;  %v7524_v4 = vand.u32 2147483647, %v7523_v1  ;;  %v580_v40 = vadd.s32 %v6436_v10, %v6434_v61 }
 0x1e7   : > { %v1847_v47 = vor.u32 %v1846_v29, %v1845_v43  ;;  %v1850_v34 = vshll.u32 %v1849_v26, 23  ;;  %v4563_v48 = vadd.s32 4294967294, %v592_v59  ;;  %v792_v25 = vadd.s32 %v791_v0, %v787_v3  ;;  %v6588_v12 = vpop.eup %4914  ;;  %v7535_v43 = vld [vmem:[#allocation14_spill] sm:$0xff] }
 0x1e8   : > { %vm6575_vm9 = vcmp.le.f32.partialorder %v7524_v4, 0.7853982  ;;  %v506_v42 = vsub.s32 4, %v7528_v17  ;;  %vm7530_vm4 = vcmp.lt.s32.totalorder %v5309_v20, 0  ;;  %v6593_v24 = vpop.eup %4916  ;;  %v1756_v61 = vsel %vm6543_vm8, %v6093_v63, %v1753_v36 }
 0x1e9   : > { %v508_v53 = vsel %vm6575_vm9, %v7523_v1, %v7529_v45  ;;  %v1851_v41 = vor.u32 4788187, %v1850_v34  ;;  %vm4564_vm7 = vcmp.lt.s32.totalorder %v4563_v48, 0  ;;  %v611_v52 = vsel %vm7530_vm4, %v610_v5, %v6507_v55  ;;  %v6607_v55 = vpop.eup %4918 }
 0x1ea   : > { %v793_v62 = vadd.s32 536870912, %v792_v25  ;;  %v7531_v10 = vand.u32 2147483647, %v7527_v13  ;;  %v7532_v37 = vmov 0  ;;  %v595_v22 = vsel %vm4564_vm7, 0, %v4563_v48 }
 0x1eb   : > { %vm7534_vm6 = vcmp.lt.s32.totalorder %v7523_v1, 0  ;;  %4924 = vcosq.f32 %v508_v53  ;;  %v1852_v60 = vand.u32 2147483647, %v1851_v41  ;;  %v1854_v46 = vcvt.s32.f32 %v1847_v47  ;;  %v7540_v47 = vld [vmem:[#allocation49_spill] sm:$0xff]  ;;  %v7562_v41 = vld [vmem:[#allocation40_spill] sm:$0xff] }
 0x1ec   : > { %vm6600_vm11 = vcmp.le.f32.partialorder %v7531_v10, 0.7853982  ;;  %v507_v35 = vsel %vm7534_vm6, %v506_v42, %v7528_v17  ;;  %v596_v23 = vsub.s32 32, %v595_v22  ;;  %v600_v51 = vsub.s32 4294967266, %v595_v22 }
 0x1ed   : > { %v7533_v37 = vsel %vm6600_vm11, 4294967295, %v7532_v37  ;;  %v597_v6 = vshll.u32 %v6533_v39, %v595_v22  ;;  %v613_v32 = vsel %vm6559_vm13, 0, %v611_v52  ;;  %v794_v28 = vshrl.u32 %v793_v62, 30  ;;  %v6614_v5 = vpop.eup %4920  ;;  %v7539_v39 = vld [vmem:[#allocation22_spill] sm:$0xff] }
 0x1ee   : > { %4926 = vsinq.f32 %v508_v53  ;;  %v1855_v56 = vmul.f32 %v1854_v46, %v1852_v60  ;;  %v598_v50 = vshrl.u32 %v580_v40, %v596_v23  ;;  %v601_v21 = vadd.s32 127, %v600_v51 }
 0x1ef   : > { %v509_v44 = vsel %vm6575_vm9, 0, %v507_v35  ;;  %v795_v3 = vshll.u32 %v794_v28, 30  ;;  %v818_v18 = vsub.s32 4, %v794_v28  ;;  %v7536_v29 = vand.u32 2147483647, %v7535_v43  ;;  %v6627_v34 = vpop.eup %4922 }
 0x1f0   : > { %v714_v59 = vsub.s32 4, %v7539_v39  ;;  %v1856_v36 = vxor.u32 2147483648, %v1855_v56  ;;  %v599_v0 = vor.u32 %v598_v50, %v597_v6  ;;  %v602_v4 = vshll.u32 %v601_v21, 23 }
 0x1f1   : > { %vm6618_vm4 = vcmp.le.f32.partialorder %v7536_v29, 0.7853982  ;;  %4928 = vsinq.f32 %v6553_v7  ;;  %v6630_v48 = vsub.s32 %v792_v25, %v795_v3  ;;  %vm7541_vm6 = vcmp.lt.s32.totalorder %v7507_v9, 0 }
 0x1f2   : > { %v716_v8 = vsel %vm6618_vm4, %v7535_v43, %v7540_v47  ;;  %v819_v40 = vsel %vm7541_vm6, %v818_v18, %v794_v28  ;;  %v513_v17 = vadd.s32 3, %v509_v44  ;;  %4930 = vcosq.f32 %v1756_v61 }
 0x1f3   : > { %vm7542_vm9 = vcmp.lt.s32.totalorder %v7527_v13, 0  ;;  %v603_v45 = vor.u32 4788187, %v602_v4  ;;  %v617_v53 = vadd.s32 3, %v613_v32  ;;  %vm6638_vm7 = vcmp.le.f32.partialorder %v732_v58, 0.7853982 }
 0x1f4   : > { %v1857_v42 = vsel %vm7542_vm9, %v1856_v36, %v1855_v56  ;;  %v798_v7 = vsub.s32 0, %v6630_v48  ;;  %vm7545_vm8 = vcmp.lt.s32.totalorder %v7535_v43, 0  ;;  %4932 = vcosq.f32 %v716_v8 }
 0x1f5   : > { %v715_v25 = vsel %vm7545_vm8, %v714_v59, %v7539_v39  ;;  %v1860_v52 = vsel %vm6600_vm11, %v7527_v13, %v1857_v42  ;;  %v604_v62 = vand.u32 2147483647, %v603_v45  ;;  %v606_v10 = vcvt.s32.f32 %v599_v0  ;;  %v4925_v58 = vpop.eup %4924 }
 0x1f6   : > { %v821_v22 = vsel %vm6638_vm7, 0, %v819_v40  ;;  %4934 = vsinq.f32 %v1756_v61  ;;  %v4570_v35 = vmin.u32 %v798_v7, %v6630_v48  ;;  %v6652_v60 = vand.u32 3, %v613_v32 }
 0x1f7   : > { %v514_v46 = vand.u32 3, %v513_v17  ;;  %v607_v23 = vmul.f32 %v606_v10, %v604_v62  ;;  %v6654_v51 = vand.u32 3, %v617_v53  ;;  %v788_v6 = vadd.s32 %v6537_v15, %v6528_v54 }
 0x1f8   : > { %v717_v28 = vsel %vm6618_vm4, 0, %v715_v25  ;;  %v4927_v56 = vpop.eup %4926  ;;  %4936 = vcosq.f32 %v1860_v52  ;;  %v800_v50 = vclz %v4570_v35  ;;  %v825_v21 = vadd.s32 3, %v821_v22  ;;  %v7547_v25 = vld [vmem:[#allocation10_spill] sm:$0xff] }
 0x1f9   : > { %vm7385_vm8 = vweird.f32 %v7523_v1  ;;  %v608_v61 = vxor.u32 2147483648, %v607_v23  ;;  %v517_v3 = vxor.u32 2147483648, %v4927_v56  ;;  %v520_v32 = vxor.u32 2147483648, %v4925_v58 }
 0x1fa   : > { %4938 = vsinq.f32 %v716_v8  ;;  %v4571_v18 = vadd.s32 4294967294, %v800_v50  ;;  %vm516_vm6 = vcmp.eq.s32.totalorder %v514_v46, 0  ;;  %vm519_vm9 = vcmp.eq.s32.totalorder %v514_v46, 2 }
 0x1fb   : > { %v721_v29 = vadd.s32 3, %v717_v28  ;;  %vm7546_vm2 = vcmp.lt.s32.totalorder %v5309_v20, 0  ;;  %vm515_vm11 = vcmp.lt.s32.totalorder %v514_v46, 2  ;;  %v518_v15 = vsel %vm516_vm6, %v4925_v58, %v517_v3  ;;  %v6663_v39 = vpop.eup %4928 }
 0x1fc   : > { %v609_v54 = vsel %vm7546_vm2, %v608_v61, %v607_v23  ;;  %v521_v26 = vsel %vm519_vm9, %v520_v32, %v4927_v56  ;;  %4940 = vsinq.f32 %v1860_v52  ;;  %vm4572_vm4 = vcmp.lt.s32.totalorder %v4571_v18, 0  ;;  %v6668_v0 = vpop.eup %4930 }
 0x1fd   : > { %v612_v59 = vsel %vm6559_vm13, %v5309_v20, %v609_v54  ;;  %v2177_v36 = vand.u32 3, %v509_v44  ;;  %v803_v4 = vsel %vm4572_vm4, 0, %v4571_v18  ;;  %v6670_v47 = vand.u32 3, %v821_v22 }
 0x1fe   : > { %4942 = vcosq.f32 %v612_v59  ;;  %v522_v8 = vsel %vm515_vm11, %v518_v15, %v521_v26  ;;  %v4933_v40 = vpop.eup %4932  ;;  %v804_v17 = vsub.s32 32, %v803_v4  ;;  %v808_v42 = vsub.s32 4294967266, %v803_v4  ;;  %v7551_v26 = vld [vmem:[#allocation18_spill] sm:$0xff] }
 0x1ff   : > { %4944 = vsinq.f32 %v612_v59  ;;  %v722_v45 = vand.u32 3, %v721_v29  ;;  %v805_v53 = vshll.u32 %v6630_v48, %v803_v4  ;;  %v6673_v7 = vand.u32 3, %v825_v21 }
 0x200   : > { %v2383_v19 = vand.u32 3, %v717_v28  ;;  %v1026_v52 = vsub.s32 4, %v7547_v25  ;;  %v6676_v44 = vpop.eup %4934  ;;  %v806_v62 = vshrl.u32 %v788_v6, %v804_v17  ;;  %v809_v10 = vadd.s32 127, %v808_v42 }
 0x201   : > { %vm2179_vm13 = vcmp.eq.s32.totalorder %v2177_v36, 0  ;;  %vm2182_vm2 = vcmp.eq.s32.totalorder %v2177_v36, 2  ;;  %v6680_v22 = vsel %vm7385_vm8, nan, %v522_v8  ;;  %v728_v35 = vxor.u32 2147483648, %v4933_v40 }
 0x202   : > { %v2181_v46 = vsel %vm2179_vm13, %v4925_v58, %v517_v3  ;;  %v2184_v23 = vsel %vm2182_vm2, %v520_v32, %v4927_v56  ;;  %v6682_v50 = vpop.eup %4936  ;;  %vm623_vm11 = vcmp.eq.s32.totalorder %v6654_v51, 2  ;;  %v807_v48 = vor.u32 %v806_v62, %v805_v53  ;;  %v7548_v56 = vld [vmem:[#allocation6_spill] sm:$0xff] }
 0x203   : > { %v810_v28 = vshll.u32 %v809_v10, 23  ;;  %vm720_vm9 = vweird.f32 %v7535_v43  ;;  %vm724_vm4 = vcmp.eq.s32.totalorder %v722_v45, 0  ;;  %vm2178_vm15 = vcmp.lt.s32.totalorder %v2177_v36, 2 }
 0x204   : > { %v4939_v6 = vpop.eup %4938  ;;  %vm620_vm1 = vcmp.eq.s32.totalorder %v6654_v51, 0  ;;  %vm727_vm14 = vcmp.eq.s32.totalorder %v722_v45, 2  ;;  %v2185_v58 = vsel %vm2178_vm15, %v2181_v46, %v2184_v23  ;;  %vm2385_vm13 = vcmp.eq.s32.totalorder %v2383_v19, 0 }
 0x205   : > { %vm7549_vm2 = vcmp.lt.s32.totalorder %v7548_v56, 0  ;;  %v811_v61 = vor.u32 4788187, %v810_v28  ;;  %v814_v3 = vcvt.s32.f32 %v807_v48  ;;  %v725_v32 = vxor.u32 2147483648, %v4939_v6 }
 0x206   : > { %v1027_v21 = vsel %vm7549_vm2, %v1026_v52, %v7547_v25  ;;  %vm2388_vm6 = vcmp.eq.s32.totalorder %v2383_v19, 2  ;;  %v729_v18 = vsel %vm727_vm14, %v728_v35, %v4939_v6  ;;  %v1234_v59 = vsub.s32 4, %v7551_v26  ;;  %v6697_v36 = vpop.eup %4940  ;;  %v7553_v52 = vld [vmem:[#allocation12_spill] sm:$0xff] }
 0x207   : > { %v2390_v29 = vsel %vm2388_vm6, %v728_v35, %v4939_v6  ;;  %v6694_v15 = vsel %vm5665_vm12, 0, %v1027_v21  ;;  %vm619_vm15 = vcmp.lt.s32.totalorder %v6654_v51, 2  ;;  %v812_v4 = vand.u32 2147483647, %v811_v61  ;;  %v7555_v6 = vld [vmem:[#allocation32_spill] sm:$0xff]  ;;  %v7564_v21 = vld [vmem:[#allocation5_spill] sm:$0xff] }
 0x208   : > { %v726_v8 = vsel %vm724_vm4, %v4933_v40, %v725_v32  ;;  %v2387_v17 = vsel %vm2385_vm13, %v4933_v40, %v725_v32  ;;  %v1033_v42 = vadd.s32 3, %v6694_v15  ;;  %v4943_v53 = vpop.eup %4942  ;;  %vm2281_vm14 = vcmp.lt.s32.totalorder %v6652_v60, 2 }
 0x209   : > { %vm723_vm6 = vcmp.lt.s32.totalorder %v722_v45, 2  ;;  %vm7552_vm2 = vweird.f32 %v7523_v1  ;;  %vm2384_vm12 = vcmp.lt.s32.totalorder %v2383_v19, 2  ;;  %vm7554_vm8 = vcmp.lt.s32.totalorder %v7553_v52, 0  ;;  %v4945_v10 = vpop.eup %4944 }
 0x20a   : > { %v6705_v25 = vsel %vm7552_vm2, nan, %v2185_v58  ;;  %v1235_v62 = vsel %vm7554_vm8, %v1234_v59, %v7551_v26  ;;  %v624_v35 = vxor.u32 2147483648, %v4943_v53  ;;  %v815_v46 = vmul.f32 %v814_v3, %v812_v4  ;;  %v7557_v58 = vld [vmem:[#allocation26_spill] sm:$0xff] }
 0x20b   : > { %v730_v23 = vsel %vm723_vm6, %v726_v8, %v729_v18  ;;  %v2391_v40 = vsel %vm2384_vm12, %v2387_v17, %v2390_v29  ;;  %vm616_vm4 = vweird.f32 %v5309_v20  ;;  %v621_v48 = vxor.u32 2147483648, %v4945_v10 }
 0x20c   : > { %v1034_v28 = vand.u32 3, %v1033_v42  ;;  %v7391_v45 = vxor.u32 2147483648, %v7555_v6  ;;  %v6714_v1 = vsel %vm6005_vm10, 0, %v1235_v62  ;;  %v816_v19 = vxor.u32 2147483648, %v815_v46  ;;  %v7561_v62 = vld [vmem:[#allocation41_spill] sm:$0xff] }
 0x20d   : > { %v7389_v61 = vxor.u32 2147483648, %v7557_v58  ;;  %vm7390_vm8 = vweird.f32 %v7553_v52  ;;  %v1241_v32 = vadd.s32 3, %v6714_v1  ;;  %v625_v3 = vsel %vm623_vm11, %v624_v35, %v4945_v10 }
 0x20e   : > { %vm7558_vm13 = vcmp.eq.s32.totalorder %v6652_v60, 2  ;;  %v6725_v29 = vsel %vm720_vm9, nan, %v730_v23  ;;  %v6729_v54 = vsel %vm720_vm9, nan, %v2391_v40  ;;  %vm1032_vm10 = vweird.f32 %v7548_v56 }
 0x20f   : > { %v2287_v18 = vsel %vm7558_vm13, %v624_v35, %v4945_v10  ;;  %v622_v26 = vsel %vm620_vm1, %v4943_v53, %v621_v48  ;;  %vm7559_vm6 = vcmp.lt.s32.totalorder %v7507_v9, 0  ;;  %vm7560_vm11 = vcmp.eq.s32.totalorder %v6652_v60, 0 }
 0x210   : > { %v817_v59 = vsel %vm7559_vm6, %v816_v19, %v815_v46  ;;  %v2284_v4 = vsel %vm7560_vm11, %v4943_v53, %v621_v48  ;;  %vm1036_vm2 = vcmp.eq.s32.totalorder %v1034_v28, 0  ;;  %vm1035_vm12 = vcmp.lt.s32.totalorder %v1034_v28, 2  ;;  %v7563_v46 = vld [vmem:[#allocation8_spill] sm:$0xff] }
 0x211   : > { %v820_v8 = vsel %vm6638_vm7, %v7507_v9, %v817_v59  ;;  %v1038_v43 = vsel %vm1036_vm2, %v7557_v58, %v7391_v45  ;;  %vm1039_vm9 = vcmp.eq.s32.totalorder %v1034_v28, 2  ;;  %v1242_v42 = vand.u32 3, %v1241_v32 }
 0x212   : > { %4946 = vcosq.f32 %v820_v8  ;;  %v1041_v17 = vsel %vm1039_vm9, %v7389_v61, %v7555_v6  ;;  %v7388_v10 = vxor.u32 2147483648, %v7561_v62  ;;  %v626_v53 = vsel %vm619_vm15, %v622_v26, %v625_v3 }
 0x213   : > { %4948 = vsinq.f32 %v820_v8  ;;  %v7387_v35 = vxor.u32 2147483648, %v7562_v41  ;;  %v922_v23 = vsub.s32 4, %v7563_v46  ;;  %v2288_v40 = vsel %vm2281_vm14, %v2284_v4, %v2287_v18 }
 0x214   : > { %v1042_v48 = vsel %vm1035_vm12, %v1038_v43, %v1041_v17  ;;  %vm1244_vm1 = vcmp.eq.s32.totalorder %v1242_v42, 0  ;;  %vm1247_vm7 = vcmp.eq.s32.totalorder %v1242_v42, 2  ;;  %vm1243_vm13 = vcmp.lt.s32.totalorder %v1242_v42, 2  ;;  %v7567_v43 = vld [vmem:[#allocation15_spill] sm:$0xff] }
 0x215   : > { %v1246_v28 = vsel %vm1244_vm1, %v7562_v41, %v7388_v10  ;;  %v1249_v51 = vsel %vm1247_vm7, %v7387_v35, %v7561_v62  ;;  %vm7565_vm15 = vcmp.lt.s32.totalorder %v7564_v21, 0  ;;  %v6765_v60 = vsel %vm616_vm4, nan, %v626_v53  ;;  %v7568_v53 = vld [vmem:[#allocation25_spill] sm:$0xff]  ;;  %v7575_v10 = vld [vmem:[#allocation34_spill] sm:$0xff] }
 0x216   : > { %v923_v19 = vsel %vm7565_vm15, %v922_v23, %v7563_v46  ;;  %vm831_vm14 = vcmp.eq.s32.totalorder %v6673_v7, 2  ;;  %vm2491_vm6 = vcmp.eq.s32.totalorder %v6670_v47, 2  ;;  %v1250_v3 = vsel %vm1243_vm13, %v1246_v28, %v1249_v51  ;;  %v7569_v46 = vld [vmem:[#allocation23_spill] sm:$0xff] }
 0x217   : > { %v6773_v26 = vsel %vm5645_vm5, 0, %v923_v19  ;;  %vm828_vm11 = vcmp.eq.s32.totalorder %v6673_v7, 0  ;;  %v6778_v59 = vsel %vm616_vm4, nan, %v2288_v40  ;;  %vm2488_vm2 = vcmp.eq.s32.totalorder %v6670_v47, 0  ;;  %v7570_v40 = vld [vmem:[#allocation39_spill] sm:$0xff] }
 0x218   : > { %v6783_v4 = vsel %vm7390_vm8, nan, %v1250_v3  ;;  %v929_v8 = vadd.s32 3, %v6773_v26  ;;  %v1130_v17 = vsub.s32 4, %v7567_v43  ;;  %vm827_vm12 = vcmp.lt.s32.totalorder %v6673_v7, 2  ;;  %v7571_v3 = vld [vmem:[#allocation9_spill] sm:$0xff] }
 0x219   : > { %v6790_v42 = vsel %vm1032_vm10, nan, %v1042_v48  ;;  %v7396_v20 = vxor.u32 2147483648, %v7568_v53  ;;  %v7397_v23 = vxor.u32 2147483648, %v7569_v46  ;;  %v1442_v28 = vsub.s32 4, %v7570_v40 }
 0x21a   : > { %vm824_vm5 = vweird.f32 %v7507_v9  ;;  %v3751_v51 = vpack.c.bf16 %v6783_v4, %v6790_v42  ;;  %vm928_vm4 = vweird.f32 %v7564_v21  ;;  %v930_v19 = vand.u32 3, %v929_v8  ;;  %v7577_v42 = vld [vmem:[#allocation35_spill] sm:$0xff]  ;;  %v7597_v9 = vld [vmem:[#allocation16_spill] sm:$0xff] }
 0x21b   : > { %vm7572_vm9 = vcmp.lt.s32.totalorder %v7571_v3, 0  ;;  %vm2487_vm1 = vcmp.lt.s32.totalorder %v6670_v47, 2  ;;  %vm1136_vm7 = vweird.f32 %v7571_v3  ;;  %vm7576_vm13 = vcmp.lt.s32.totalorder %v5884_v31, 0  ;;  %v7588_v47 = vld [vmem:[#allocation50_spill] sm:$0xff] }
 0x21c   : > { %v1131_v18 = vsel %vm7572_vm9, %v1130_v17, %v7567_v43  ;;  %v1443_v4 = vsel %vm7576_vm13, %v1442_v28, %v7570_v40  ;;  %v1650_v8 = vsub.s32 4, %v7577_v42  ;;  %vm932_vm15 = vcmp.eq.s32.totalorder %v930_v19, 0  ;;  %v7578_v17 = vld [vmem:[#allocation33_spill] sm:$0xff]  ;;  %v4947_v32 = vpop.eup %4946 }
 0x21d   : > { %v6805_v35 = vsel %vm5751_vm3, 0, %v1131_v18  ;;  %vm935_vm8 = vcmp.eq.s32.totalorder %v930_v19, 2  ;;  %v934_v18 = vsel %vm932_vm15, %v7569_v46, %v7396_v20  ;;  %v6823_v40 = vsel %vm6395_vm0, 0, %v1443_v4  ;;  %v7580_v28 = vld [vmem:[#allocation21_spill] sm:$0xff] }
 0x21e   : > { %7574 = vst [vmem:[#allocation17_spill] sm:$0xff] %v6805_v35  ;;  %v1137_v43 = vadd.s32 3, %v6805_v35  ;;  %v937_v48 = vsel %vm935_vm8, %v7397_v23, %v7568_v53  ;;  %7579 = vst [vmem:[#allocation30_spill] sm:$0xff] %v6823_v40  ;;  %vm7581_vm3 = vcmp.lt.s32.totalorder %v7580_v28, 0  ;;  %v4949_v35 = vpop.eup %4948  ;;  %v832_v52 = vxor.u32 2147483648, %v4947_v32 }
 0x21f   : > { %v1651_v61 = vsel %vm7581_vm3, %v1650_v8, %v7577_v42  ;;  %vm931_vm9 = vcmp.lt.s32.totalorder %v930_v19, 2  ;;  %v1449_v41 = vadd.s32 3, %v6823_v40  ;;  %v829_v62 = vxor.u32 2147483648, %v4949_v35  ;;  %v7582_v8 = vld [vmem:[#allocation43_spill] sm:$0xff] }
 0x220   : > { %v1138_v45 = vand.u32 3, %v1137_v43  ;;  %v938_v20 = vsel %vm931_vm9, %v934_v18, %v937_v48  ;;  %vm1448_vm13 = vweird.f32 %v5884_v31  ;;  %v833_v4 = vsel %vm831_vm14, %v832_v52, %v4949_v35 }
 0x221   : > { %v2493_v42 = vsel %vm2491_vm6, %v832_v52, %v4949_v35  ;;  %vm7583_vm8 = vnez %v7582_v8  ;;  %v830_v43 = vsel %vm828_vm11, %v4947_v32, %v829_v62  ;;  %v2490_v18 = vsel %vm2488_vm2, %v4947_v32, %v829_v62 }
 0x222   : > { %vm1140_vm0 = vcmp.eq.s32.totalorder %v1138_v45, 0  ;;  %v6838_v19 = vsel %vm7583_vm8, 0, %v1651_v61  ;;  %v7584_v48 = vxor.u32 2147483648, %v7575_v10  ;;  %vm1143_vm15 = vcmp.eq.s32.totalorder %v1138_v45, 2 }
 0x223   : > { %v834_v23 = vsel %vm827_vm12, %v830_v43, %v833_v4  ;;  %vm1139_vm14 = vcmp.lt.s32.totalorder %v1138_v45, 2  ;;  %v7585_v52 = vxor.u32 2147483648, %v7578_v17  ;;  %v1450_v35 = vand.u32 3, %v1449_v41  ;;  %v7589_v43 = vld [vmem:[#allocation13_spill] sm:$0xff] }
 0x224   : > { %v1142_v2 = vsel %vm1140_vm0, %v7578_v17, %v7584_v48  ;;  %v835_v8 = vsel %vm824_vm5, nan, %v834_v23  ;;  %v939_v62 = vsel %vm928_vm4, nan, %v938_v20  ;;  %v1657_v40 = vadd.s32 3, %v6838_v19 }
 0x225   : > { %v1145_v61 = vsel %vm1143_vm15, %v7585_v52, %v7575_v10  ;;  %v2494_v48 = vsel %vm2487_vm1, %v2490_v18, %v2493_v42  ;;  %v3749_v7 = vpack.c.bf16 %v835_v8, %v6765_v60  ;;  %vm1452_vm6 = vcmp.eq.s32.totalorder %v1450_v35, 0  ;;  %v7590_v18 = vld [vmem:[#allocation36_spill] sm:$0xff] }
 0x226   : > { %v1146_v32 = vsel %vm1139_vm14, %v1142_v2, %v1145_v61  ;;  %vm1451_vm11 = vcmp.lt.s32.totalorder %v1450_v35, 2  ;;  %v7586_v41 = vxor.u32 2147483648, %v6593_v24  ;;  %vm1455_vm2 = vcmp.eq.s32.totalorder %v1450_v35, 2 }
 0x227   : > { %v1147_v45 = vsel %vm1136_vm7, nan, %v1146_v32  ;;  %v1658_v4 = vand.u32 3, %v1657_v40  ;;  %3908 = vmatprep.subr.bf16.mxu0 %v3749_v7  ;;  %v7587_v20 = vxor.u32 2147483648, %v6588_v12  ;;  %v7400_v42 = vxor.u32 2147483648, %v7588_v47  ;;  %v7592_v7 = vld [vmem:[#allocation27_spill] sm:$0xff] }
 0x228   : > { %v1454_v23 = vsel %vm1452_vm6, %v6588_v12, %v7586_v41  ;;  %v7399_v60 = vxor.u32 2147483648, %v7589_v43  ;;  %v1338_v52 = vsub.s32 4, %v7590_v18  ;;  %v7591_v61 = vpack.c.bf16 %v6725_v29, %v6680_v22 }
 0x229   : > { %v1457_v2 = vsel %vm1455_vm2, %v7587_v20, %v6593_v24  ;;  %vm1659_vm12 = vcmp.lt.s32.totalorder %v1658_v4, 2  ;;  %vm1660_vm1 = vcmp.eq.s32.totalorder %v1658_v4, 0  ;;  %vm1663_vm3 = vcmp.eq.s32.totalorder %v1658_v4, 2 }
 0x22a   : > { %3909 = vmatpush1.bf16.msra.mxu0 %v7591_v61  ;;  %v1458_v8 = vsel %vm1451_vm11, %v1454_v23, %v1457_v2  ;;  %v1662_v35 = vsel %vm1660_vm1, %v7589_v43, %v7400_v42  ;;  %v1665_v32 = vsel %vm1663_vm3, %v7399_v60, %v7588_v47  ;;  %vm7593_vm9 = vcmp.lt.s32.totalorder %v7592_v7, 0  ;;  %v7596_v61 = vld [vmem:[#allocation31_spill] sm:$0xff] }
 0x22b   : > { %3910 = vmatprep.subr.bf16.mxu0 %v3751_v51  ;;  %v1459_v40 = vsel %vm1448_vm13, nan, %v1458_v8  ;;  %v1339_v22 = vsel %vm7593_vm9, %v1338_v52, %v7590_v18  ;;  %v3750_v29 = vpack.c.bf16 %v1147_v45, %v939_v62  ;;  %vm1656_vm0 = vweird.f32 %v7580_v28  ;;  %v7594_v51 = vld [vmem:[#allocation45_spill] sm:$0xff] }
 0x22c   : > { %v1666_v41 = vsel %vm1659_vm12, %v1662_v35, %v1665_v32  ;;  %vm7595_vm8 = vnez %v7594_v51  ;;  %v6892_v4 = vsel %vm824_vm5, nan, %v2494_v48  ;;  %v1546_v8 = vsub.s32 4, %v7596_v61  ;;  %v7599_v35 = vld [vmem:[#allocation48_spill] sm:$0xff] }
 0x22d   : > { %v6888_v23 = vsel %vm7595_vm8, 0, %v1339_v22  ;;  %v1667_v20 = vsel %vm1656_vm0, nan, %v1666_v41  ;;  %vm7409_vm15 = vweird.f32 %v7592_v7  ;;  %v7401_v45 = vxor.u32 2147483648, %v6504_v27  ;;  %v7602_v41 = vld [vmem:[#allocation42_spill] sm:$0xff] }
 0x22e   : > { %v1345_v2 = vadd.s32 3, %v6888_v23  ;;  %3911 = vmatpush1.bf16.msra.mxu0 %v3750_v29  ;;  %v3753_v62 = vpack.c.bf16 %v1667_v20, %v1459_v40  ;;  %v7402_v18 = vxor.u32 2147483648, %v6368_v14  ;;  %vm7598_vm5 = vcmp.lt.s32.totalorder %v7597_v9, 0  ;;  %v7600_v29 = vld [vmem:[#allocation38_spill] sm:$0xff] }
 0x22f   : > { %v1547_v48 = vsel %vm7598_vm5, %v1546_v8, %v7596_v61  ;;  %vm7408_vm14 = vweird.f32 %v7597_v9  ;;  %v7403_v32 = vxor.u32 2147483648, %v7599_v35  ;;  %v1858_v22 = vsub.s32 4, %v6462_v11 }
 0x230   : > { %v1346_v52 = vand.u32 3, %v1345_v2  ;;  %3912 = vmatprep.subr.bf16.mxu0 %v3753_v62  ;;  %vm7601_vm6 = vnez %v7600_v29  ;;  %v7603_v2 = vld [vmem:[#allocation47_spill] sm:$0xff]  ;;  %vm7604_vm1 = vcmp.lt.s32.totalorder %v7527_v13, 0  ;;  %vm7407_vm3 = vweird.f32 %v7527_v13 }
 0x231   : > { %v6909_v40 = vsel %vm7601_vm6, 0, %v1547_v48  ;;  %v2066_v60 = vsub.s32 4, %v7603_v2  ;;  %v1859_v48 = vsel %vm7604_vm1, %v1858_v22, %v6462_v11  ;;  %vm7605_vm9 = vcmp.lt.s32.totalorder %v6039_v57, 0 }
 0x232   : > { %vm1347_vm11 = vcmp.lt.s32.totalorder %v1346_v52, 2  ;;  %vm1348_vm2 = vcmp.eq.s32.totalorder %v1346_v52, 0  ;;  %vm1351_vm12 = vcmp.eq.s32.totalorder %v1346_v52, 2  ;;  %v1553_v61 = vadd.s32 3, %v6909_v40 }
 0x233   : > { %v1350_v8 = vsel %vm1348_vm2, %v6368_v14, %v7401_v45  ;;  %v1353_v62 = vsel %vm1351_vm12, %v7402_v18, %v6504_v27  ;;  %v2067_v52 = vsel %vm7605_vm9, %v2066_v60, %v7603_v2  ;;  %vm7606_vm8 = vnez %v7533_v37 }
 0x234   : > { %v1354_v29 = vsel %vm1347_vm11, %v1350_v8, %v1353_v62  ;;  %v1554_v42 = vand.u32 3, %v1553_v61  ;;  %v6930_v20 = vsel %vm7606_vm8, 0, %v1859_v48  ;;  %vm7607_vm5 = vnez %v7516_v49 }
 0x235   : > { %v6934_v45 = vsel %vm7607_vm5, 0, %v2067_v52  ;;  %v1355_v18 = vsel %vm7409_vm15, nan, %v1354_v29  ;;  %v1865_v11 = vadd.s32 3, %v6930_v20  ;;  %v1872_v22 = vxor.u32 2147483648, %v6682_v50 }
 0x236   : > { %v2073_v51 = vadd.s32 3, %v6934_v45  ;;  %vm1555_vm6 = vcmp.lt.s32.totalorder %v1554_v42, 2  ;;  %vm1556_vm11 = vcmp.eq.s32.totalorder %v1554_v42, 0  ;;  %vm1559_vm2 = vcmp.eq.s32.totalorder %v1554_v42, 2 }
 0x237   : > { %vm7406_vm12 = vweird.f32 %v6039_v57  ;;  %v1558_v49 = vsel %vm1556_vm11, %v7602_v41, %v7403_v32  ;;  %v7608_v37 = vxor.u32 2147483648, %v7602_v41  ;;  %v1866_v2 = vand.u32 3, %v1865_v11 }
 0x238   : > { %v2074_v61 = vand.u32 3, %v2073_v51  ;;  %v7405_v62 = vxor.u32 2147483648, %v6663_v39  ;;  %v7404_v48 = vxor.u32 2147483648, %v6627_v34  ;;  %v1754_v52 = vsub.s32 4, %v6364_v33 }
 0x239   : > { %v1561_v60 = vsel %vm1559_vm2, %v7608_v37, %v7599_v35  ;;  %vm1867_vm1 = vcmp.lt.s32.totalorder %v1866_v2, 2  ;;  %vm1868_vm9 = vcmp.eq.s32.totalorder %v1866_v2, 0  ;;  %vm1871_vm8 = vcmp.eq.s32.totalorder %v1866_v2, 2 }
 0x23a   : > { %v1562_v8 = vsel %vm1555_vm6, %v1558_v49, %v1561_v60  ;;  %v7609_v32 = vxor.u32 2147483648, %v6697_v36  ;;  %v1873_v51 = vsel %vm1871_vm8, %v1872_v22, %v6697_v36  ;;  %vm2075_vm5 = vcmp.lt.s32.totalorder %v2074_v61, 2 }
 0x23b   : > { %v1563_v42 = vsel %vm7408_vm14, nan, %v1562_v8  ;;  %vm2076_vm6 = vcmp.eq.s32.totalorder %v2074_v61, 0  ;;  %vm2079_vm11 = vcmp.eq.s32.totalorder %v2074_v61, 2  ;;  %vm7610_vm2 = vcmp.lt.s32.totalorder %v6093_v63, 0 }
 0x23c   : > { %v3752_v29 = vpack.c.bf16 %v1563_v42, %v1355_v18  ;;  %v1870_v37 = vsel %vm1868_vm9, %v6682_v50, %v7609_v32  ;;  %v1755_v49 = vsel %vm7610_vm2, %v1754_v52, %v6364_v33  ;;  %v2078_v32 = vsel %vm2076_vm6, %v6627_v34, %v7405_v62 }
 0x23d   : > { %v1874_v11 = vsel %vm1867_vm1, %v1870_v37, %v1873_v51  ;;  %v2081_v60 = vsel %vm2079_vm11, %v7404_v48, %v6663_v39  ;;  %vm7611_vm1 = vnez %v7519_v30  ;;  %vm1760_vm9 = vweird.f32 %v6093_v63 }
 0x23e   : > { %3913 = vmatpush1.bf16.msra.mxu0 %v3752_v29  ;;  %v1875_v18 = vsel %vm7407_vm3, nan, %v1874_v11  ;;  %v6972_v2 = vsel %vm7611_vm1, 0, %v1755_v49  ;;  %v2082_v61 = vsel %vm2075_vm5, %v2078_v32, %v2081_v60  ;;  %v1765_v8 = vxor.u32 2147483648, %v6676_v44  ;;  %v7612_v29 = vld [vmem:[#allocation44_spill] sm:$0xff] }
 0x23f   : > { %v1761_v33 = vadd.s32 3, %v6972_v2  ;;  %v2083_v52 = vsel %vm7406_vm12, nan, %v2082_v61  ;;  %v1768_v42 = vxor.u32 2147483648, %v6668_v0  ;;  %v1962_v37 = vsub.s32 4, %v7612_v29 }
 0x240   : > { %v7411_v51 = vxor.u32 2147483648, %v6614_v5  ;;  %v3755_v11 = vpack.c.bf16 %v2083_v52, %v1875_v18  ;;  %v7410_v49 = vxor.u32 2147483648, %v6607_v55  ;;  %v3757_v32 = vpack.c.bf16 %v6892_v4, %v6778_v59 }
 0x241   : > { %v1762_v30 = vand.u32 3, %v1761_v33  ;;  %vm7613_vm8 = vcmp.lt.s32.totalorder %v6001_v38, 0  ;;  %vm1968_vm5 = vweird.f32 %v6001_v38  ;;  %v3756_v61 = vpack.c.bf16 %v6729_v54, %v6705_v25  ;;  %v4872_v38 = vld [vmem:[%s7266_s2 + $0x10] sm:$0xff]  }
 0x242   : > { %v1963_v60 = vsel %vm7613_vm8, %v1962_v37, %v7612_v29  ;;  %v2692_v48 = vand.u32 3, %v6694_v15  ;;  %v2898_v62 = vand.u32 3, %v6714_v1  ;;  %3914 = vmatprep.subr.bf16.mxu0 %v3755_v11  ;;  %vm7614_vm1 = vnez %v7512_v16 }
 0x243   : > { %vm1763_vm6 = vcmp.lt.s32.totalorder %v1762_v30, 2  ;;  %vm1764_vm11 = vcmp.eq.s32.totalorder %v1762_v30, 0  ;;  %vm1767_vm2 = vcmp.eq.s32.totalorder %v1762_v30, 2  ;;  %v6995_v59 = vsel %vm7614_vm1, 0, %v1963_v60 }
 0x244   : > { %v1766_v4 = vsel %vm1764_vm11, %v6668_v0, %v1765_v8  ;;  %v1769_v18 = vsel %vm1767_vm2, %v1768_v42, %v6676_v44  ;;  %v1969_v15 = vadd.s32 3, %v6995_v59  ;;  %vm2693_vm8 = vcmp.lt.s32.totalorder %v2692_v48, 2 }
 0x245   : > { %v1770_v1 = vsel %vm1763_vm6, %v1766_v4, %v1769_v18  ;;  %vm2694_vm12 = vcmp.eq.s32.totalorder %v2692_v48, 0  ;;  %vm2697_vm3 = vcmp.eq.s32.totalorder %v2692_v48, 2  ;;  %vm2899_vm14 = vcmp.lt.s32.totalorder %v2898_v62, 2 }
 0x246   : > { %v1771_v16 = vsel %vm1760_vm9, nan, %v1770_v1  ;;  %v1970_v33 = vand.u32 3, %v1969_v15  ;;  %v7615_v52 = vxor.u32 2147483648, %v7555_v6  ;;  %v7616_v37 = vxor.u32 2147483648, %v7557_v58  ;;  %v7619_v15 = vld [vmem:[#allocation40_spill] sm:$0xff] }
 0x247   : > { %vm2900_vm11 = vcmp.eq.s32.totalorder %v2898_v62, 0  ;;  %vm2903_vm2 = vcmp.eq.s32.totalorder %v2898_v62, 2  ;;  %v2589_v60 = vand.u32 3, %v6773_v26  ;;  %v7620_v26 = vxor.u32 2147483648, %v7619_v15 }
 0x248   : > { %v2696_v29 = vsel %vm2694_vm12, %v7557_v58, %v7615_v52  ;;  %v2699_v11 = vsel %vm2697_vm3, %v7616_v37, %v7555_v6  ;;  %vm1971_vm6 = vcmp.lt.s32.totalorder %v1970_v33, 2  ;;  %vm1972_vm1 = vcmp.eq.s32.totalorder %v1970_v33, 0  ;;  %v7617_v6 = vld [vmem:[#allocation41_spill] sm:$0xff]  ;;  %v7621_v37 = vld [vmem:[#allocation12_spill] sm:$0xff] }
 0x249   : > { %v2700_v30 = vsel %vm2693_vm8, %v2696_v29, %v2699_v11  ;;  %vm1975_vm15 = vcmp.eq.s32.totalorder %v1970_v33, 2  ;;  %v1974_v4 = vsel %vm1972_vm1, %v6607_v55, %v7411_v51  ;;  %v7618_v18 = vxor.u32 2147483648, %v7617_v6 }
 0x24a   : > { %v2701_v48 = vsel %vm1032_vm10, nan, %v2700_v30  ;;  %v1977_v58 = vsel %vm1975_vm15, %v7410_v49, %v6614_v5  ;;  %v2905_v52 = vsel %vm2903_vm2, %v7620_v26, %v7617_v6  ;;  %vm2590_vm10 = vcmp.lt.s32.totalorder %v2589_v60, 2 }
 0x24b   : > { %v2902_v1 = vsel %vm2900_vm11, %v7619_v15, %v7618_v18  ;;  %v1978_v33 = vsel %vm1971_vm6, %v1974_v4, %v1977_v58  ;;  %vm2591_vm3 = vcmp.eq.s32.totalorder %v2589_v60, 0  ;;  %vm7622_vm12 = vweird.f32 %v7621_v37  ;;  %v7625_v58 = vld [vmem:[#allocation17_spill] sm:$0xff] }
 0x24c   : > { %v2906_v56 = vsel %vm2899_vm14, %v2902_v1, %v2905_v52  ;;  %v1979_v29 = vsel %vm1968_vm5, nan, %v1978_v33  ;;  %v7623_v30 = vxor.u32 2147483648, %v7568_v53  ;;  %vm2594_vm15 = vcmp.eq.s32.totalorder %v2589_v60, 2  ;;  %v7626_v1 = vld [vmem:[#allocation30_spill] sm:$0xff] }
 0x24d   : > { %v2907_v11 = vsel %vm7622_vm12, nan, %v2906_v56  ;;  %v3754_v18 = vpack.c.bf16 %v1979_v29, %v1771_v16  ;;  %v7624_v4 = vxor.u32 2147483648, %v7569_v46  ;;  %v2795_v6 = vand.u32 3, %v7625_v58 }
 0x24e   : > { %v2593_v49 = vsel %vm2591_vm3, %v7569_v46, %v7623_v30  ;;  %v3759_v51 = vpack.c.bf16 %v2907_v11, %v2701_v48  ;;  %v3104_v26 = vand.u32 3, %v7626_v1  ;;  %v3310_v52 = vand.u32 3, %v6838_v19 }
 0x24f   : > { %v2596_v62 = vsel %vm2594_vm15, %v7624_v4, %v7568_v53  ;;  %v3001_v33 = vand.u32 3, %v6888_v23  ;;  %3915 = vmatpush1.bf16.msra.mxu0 %v3754_v18  ;;  %vm2796_vm14 = vcmp.lt.s32.totalorder %v2795_v6, 2  ;;  %vm2797_vm8 = vcmp.eq.s32.totalorder %v2795_v6, 0 }
 0x250   : > { %v2597_v15 = vsel %vm2590_vm10, %v2593_v49, %v2596_v62  ;;  %vm2800_vm11 = vcmp.eq.s32.totalorder %v2795_v6, 2  ;;  %3916 = vmatprep.subr.bf16.mxu0 %v3757_v32  ;;  %v7627_v46 = vxor.u32 2147483648, %v7575_v10  ;;  %v7628_v49 = vxor.u32 2147483648, %v7578_v17 }
 0x251   : > { %v2598_v56 = vsel %vm928_vm4, nan, %v2597_v15  ;;  %vm3105_vm2 = vcmp.lt.s32.totalorder %v3104_v26, 2  ;;  %vm3106_vm6 = vcmp.eq.s32.totalorder %v3104_v26, 0  ;;  %v7629_v23 = vxor.u32 2147483648, %v6593_v24 }
 0x252   : > { %v2799_v53 = vsel %vm2797_vm8, %v7578_v17, %v7627_v46  ;;  %v2802_v16 = vsel %vm2800_vm11, %v7628_v49, %v7575_v10  ;;  %vm3109_vm4 = vcmp.eq.s32.totalorder %v3104_v26, 2  ;;  %vm3311_vm1 = vcmp.lt.s32.totalorder %v3310_v52, 2  ;;  %v4871_v49 = vld [vmem:[%s7266_s2 + $0x8] sm:$0xff]  }
 0x253   : > { %v2803_v19 = vsel %vm2796_vm14, %v2799_v53, %v2802_v16  ;;  %v3108_v21 = vsel %vm3106_vm6, %v6588_v12, %v7629_v23  ;;  %v7630_v60 = vxor.u32 2147483648, %v6588_v12  ;;  %vm3312_vm10 = vcmp.eq.s32.totalorder %v3310_v52, 0  ;;  %3917 = vmatpush1.bf16.msra.mxu0 %v3756_v61  ;;  %v4875_v16 = vld [vmem:[%s7266_s2 + $0x28] sm:$0xff]   ;;  %v4877_v23 = vld [vmem:[%s7266_s2 + $0x38] sm:$0xff]  }
 0x254   : > { %v2804_v32 = vsel %vm1136_vm7, nan, %v2803_v19  ;;  %vm3315_vm3 = vcmp.eq.s32.totalorder %v3310_v52, 2  ;;  %v7631_v29 = vxor.u32 2147483648, %v7588_v47  ;;  %v7632_v3 = vxor.u32 2147483648, %v7589_v43  ;;  %3918 = vmatprep.subr.bf16.mxu0 %v3759_v51  ;;  %v4876_v19 = vld [vmem:[%s7266_s2 + $0x30] sm:$0xff]  }
 0x255   : > { %v3111_v48 = vsel %vm3109_vm4, %v7630_v60, %v6593_v24  ;;  %v3758_v10 = vpack.c.bf16 %v2804_v32, %v2598_v56  ;;  %vm3002_vm7 = vcmp.lt.s32.totalorder %v3001_v33, 2  ;;  %vm3003_vm12 = vcmp.eq.s32.totalorder %v3001_v33, 0 }
 0x256   : > { %v3112_v17 = vsel %vm3105_vm2, %v3108_v21, %v3111_v48  ;;  %v3314_v37 = vsel %vm3312_vm10, %v7589_v43, %v7631_v29  ;;  %v3317_v11 = vsel %vm3315_vm3, %v7632_v3, %v7588_v47  ;;  %v7633_v54 = vxor.u32 2147483648, %v6504_v27  ;;  %v3783_v21 = vpop.permute.xlu0 %3782 }
 0x257   : > { %v3113_v12 = vsel %vm1448_vm13, nan, %v3112_v17  ;;  %v3318_v24 = vsel %vm3311_vm1, %v3314_v37, %v3317_v11  ;;  %vm3006_vm15 = vcmp.eq.s32.totalorder %v3001_v33, 2  ;;  %v3207_v30 = vand.u32 3, %v6909_v40  ;;  %3919 = vmatpush1.bf16.msra.mxu0 %v3758_v10  ;;  %v3788_v10 = vpop.permute.xlu1 %3787 }
 0x258   : > { %v3319_v25 = vsel %vm1656_vm0, nan, %v3318_v24  ;;  %v3005_v61 = vsel %vm3003_vm12, %v6368_v14, %v7633_v54  ;;  %v7634_v47 = vxor.u32 2147483648, %v6368_v14  ;;  %v3516_v31 = vand.u32 3, %v6930_v20 }
 0x259   : > { %v3761_v18 = vpack.c.bf16 %v3319_v25, %v3113_v12  ;;  %v3722_v51 = vand.u32 3, %v6934_v45  ;;  %vm3208_vm13 = vcmp.lt.s32.totalorder %v3207_v30, 2  ;;  %vm3209_vm0 = vcmp.eq.s32.totalorder %v3207_v30, 0 }
 0x25a   : > { %v3008_v43 = vsel %vm3006_vm15, %v7634_v47, %v6504_v27  ;;  %vm3212_vm14 = vcmp.eq.s32.totalorder %v3207_v30, 2  ;;  %vm7635_vm8 = vweird.f32 %v7592_v7  ;;  %v7636_v40 = vxor.u32 2147483648, %v7599_v35  ;;  %v3793_v30 = vpop.permute.xlu0 %3792 }
 0x25b   : > { %v3009_v4 = vsel %vm3002_vm7, %v3005_v61, %v3008_v43  ;;  %3920 = vmatprep.subr.bf16.mxu0 %v3761_v18  ;;  %v7637_v14 = vxor.u32 2147483648, %v7602_v41  ;;  %vm3517_vm11 = vcmp.lt.s32.totalorder %v3516_v31, 2  ;;  %vm3518_vm2 = vcmp.eq.s32.totalorder %v3516_v31, 0 }
 0x25c   : > { %v3010_v28 = vsel %vm7635_vm8, nan, %v3009_v4  ;;  %v3211_v62 = vsel %vm3209_vm0, %v7602_v41, %v7636_v40  ;;  %vm3521_vm6 = vcmp.eq.s32.totalorder %v3516_v31, 2  ;;  %vm3723_vm4 = vcmp.lt.s32.totalorder %v3722_v51, 2 }
 0x25d   : > { %v3214_v27 = vsel %vm3212_vm14, %v7637_v14, %v7599_v35  ;;  %vm7638_vm1 = vweird.f32 %v7597_v9  ;;  %v7639_v58 = vxor.u32 2147483648, %v6697_v36  ;;  %v3523_v6 = vsel %vm3521_vm6, %v1872_v22, %v6697_v36 }
 0x25e   : > { %v3215_v20 = vsel %vm3208_vm13, %v3211_v62, %v3214_v27  ;;  %vm3724_vm10 = vcmp.eq.s32.totalorder %v3722_v51, 0  ;;  %v7640_v35 = vxor.u32 2147483648, %v6663_v39  ;;  %vm3727_vm3 = vcmp.eq.s32.totalorder %v3722_v51, 2  ;;  %v3798_v51 = vpop.permute.xlu1 %3797 }
 0x25f   : > { %v3216_v45 = vsel %vm7638_vm1, nan, %v3215_v20  ;;  %v3520_v7 = vsel %vm3518_vm2, %v6682_v50, %v7639_v58  ;;  %vm7641_vm7 = vweird.f32 %v7527_v13  ;;  %v7642_v26 = vxor.u32 2147483648, %v6627_v34 }
 0x260   : > { %v3760_v15 = vpack.c.bf16 %v3216_v45, %v3010_v28  ;;  %v3524_v41 = vsel %vm3517_vm11, %v3520_v7, %v3523_v6  ;;  %v3726_v1 = vsel %vm3724_vm10, %v6627_v34, %v7640_v35  ;;  %v3413_v33 = vand.u32 3, %v6972_v2  ;;  %v3803_v6 = vpop.permute.xlu0 %3802 }
 0x261   : > { %v3525_v9 = vsel %vm7641_vm7, nan, %v3524_v41  ;;  %v3729_v52 = vsel %vm3727_vm3, %v7642_v26, %v6663_v39  ;;  %v3619_v50 = vand.u32 3, %v6995_v59  ;;  %vm7643_vm12 = vweird.f32 %v6039_v57 }
 0x262   : > { %3921 = vmatpush1.bf16.msra.mxu0 %v3760_v15  ;;  %v3730_v36 = vsel %vm3723_vm4, %v3726_v1, %v3729_v52  ;;  %vm3415_vm15 = vcmp.eq.s32.totalorder %v3413_v33, 0  ;;  %vm3418_vm13 = vcmp.eq.s32.totalorder %v3413_v33, 2  ;;  %vm3414_vm0 = vcmp.lt.s32.totalorder %v3413_v33, 2 }
 0x263   : > { %v3731_v22 = vsel %vm7643_vm12, nan, %v3730_v36  ;;  %v3417_v13 = vsel %vm3415_vm15, %v6668_v0, %v1765_v8  ;;  %v3420_v34 = vsel %vm3418_vm13, %v1768_v42, %v6676_v44  ;;  %vm3621_vm14 = vcmp.eq.s32.totalorder %v3619_v50, 0  ;;  %v4870_v42 = vld [vmem:[%s7266_s2] sm:$0xff]  }
 0x264   : > { %v3763_v56 = vpack.c.bf16 %v3731_v22, %v3525_v9  ;;  %v3421_v39 = vsel %vm3414_vm0, %v3417_v13, %v3420_v34  ;;  %vm3624_vm8 = vcmp.eq.s32.totalorder %v3619_v50, 2  ;;  %vm3620_vm11 = vcmp.lt.s32.totalorder %v3619_v50, 2  ;;  %v3808_v9 = vpop.permute.xlu1 %3807 }
 0x265   : > { %v3422_v57 = vsel %vm1760_vm9, nan, %v3421_v39  ;;  %v7644_v2 = vxor.u32 2147483648, %v6614_v5  ;;  %v7645_v46 = vxor.u32 2147483648, %v6607_v55  ;;  %v7646_v63 = vmov 0  }
 0x266   : > { %3922 = vmatprep.subr.bf16.mxu0 %v3763_v56 }
 0x267   : > { %v3623_v59 = vsel %vm3621_vm14, %v6607_v55, %v7644_v2  ;;  %v3626_v8 = vsel %vm3624_vm8, %v7645_v46, %v6614_v5  ;;  %v4873_v55 = vld [vmem:[%s7266_s2 + $0x18] sm:$0xff]   ;;  %v4874_v5 = vld [vmem:[%s7266_s2 + $0x20] sm:$0xff]  }
 0x268   : > { %v3627_v53 = vsel %vm3620_vm11, %v3623_v59, %v3626_v8 }
 0x269   : > { %v3628_v0 = vsel %vm1968_vm5, nan, %v3627_v53  ;;  %v3818_v53 = vpop.permute.xlu1 %3817 }
 0x26a   : > { %v3762_v44 = vpack.c.bf16 %v3628_v0, %v3422_v57  ;;  %v3813_v57 = vpop.permute.xlu0 %3812 }
 0x26c   : > { %3923 = vmatpush1.bf16.msra.mxu0 %v3762_v44 }
 0x26f   : > { %3941 = vmatmul.mubr.bf16.vlgmr.msra.gmra.mrb[0].mxu0 %v4870_v42 }
 0x270   : > { %3950 = vmatprep.mubr.bf16.mxu0 %v7646_v63 }
 0x277   : > { %3951 = vmatmul.mubr.bf16.gmra.mrb[4].mxu0 %v4871_v49 }
 0x278   : > { %3960 = vmatprep.mubr.bf16.mxu0 %v7646_v63 }
 0x27f   : > { %3961 = vmatmul.mubr.bf16.gmra.mrb[8].mxu0 %v4872_v38 }
 0x280   : > { %3970 = vmatprep.mubr.bf16.mxu0 %v7646_v63 }
 0x287   : > { %3971 = vmatmul.mubr.bf16.gmra.mrb[12].mxu0 %v4873_v55 }
 0x288   : > { %3980 = vmatprep.mubr.bf16.mxu0 %v7646_v63 }
 0x28f   : > { %3981 = vmatmul.mubr.bf16.gmra.mrb[16].mxu0 %v4874_v5 }
 0x290   : > { %3990 = vmatprep.mubr.bf16.mxu0 %v7646_v63 }
 0x297   : > { %3991 = vmatmul.mubr.bf16.gmra.mrb[20].mxu0 %v4875_v16 }
 0x298   : > { %4000 = vmatprep.mubr.bf16.mxu0 %v7646_v63 }
 0x29f   : > { %4001 = vmatmul.mubr.bf16.gmra.mrb[24].mxu0 %v4876_v19 }
 0x2a0   : > { %4010 = vmatprep.mubr.bf16.mxu0 %v7646_v63 }
 0x2a7   : > { %4011 = vmatmul.mubr.bf16.gmra.mrb[28].mxu0 %v4877_v23 }
 0x342   : > { %v3942_v32 = vpop.f32.mrb[0].mxu0 }
 0x343   : > { %v3943_v60 = vadd.f32 %v3942_v32, %v3783_v21  ;;  %v3944_v48 = vpop.f32.mrb[1].mxu0 }
 0x344   : > { %v3945_v17 = vadd.f32 %v3944_v48, %v3783_v21  ;;  %v3946_v29 = vpop.f32.mrb[2].mxu0  ;;  %v3823_v21 = vpop.permute.xlu0 %3822 }
 0x345   : > { %v3947_v37 = vadd.f32 %v3946_v29, %v3788_v10  ;;  %v3948_v3 = vpop.f32.mrb[3].mxu0  ;;  %v4021_v12 = vmax.f32 %v3943_v60, 0.0 }
 0x346   : > { %v3949_v11 = vadd.f32 %v3948_v3, %v3788_v10  ;;  %v4022_v25 = vmax.f32 %v3945_v17, 0.0  ;;  %v3828_v17 = vpop.permute.xlu1 %3827 }
 0x347   : > { %v4023_v24 = vmax.f32 %v3947_v37, 0.0 }
 0x348   : > { %v4024_v54 = vmax.f32 %v3949_v11, 0.0 }
 0x349   : > { %v4069_v61 = vpack.c.bf16 %v4023_v24, %v4021_v12 }
 0x34a   : > { %v3952_v18 = vpop.f32.mrb[4].mxu0  ;;  %v4070_v47 = vpack.c.bf16 %v4024_v54, %v4022_v25 }
 0x34b   : > { %v3953_v43 = vadd.f32 %v3952_v18, %v3793_v30  ;;  %v3954_v31 = vpop.f32.mrb[5].mxu0  ;;  %v3833_v18 = vpop.permute.xlu0 %3832 }
 0x34c   : > { %v3955_v4 = vadd.f32 %v3954_v31, %v3793_v30  ;;  %v3956_v28 = vpop.f32.mrb[6].mxu0  ;;  %4229 = vmatprep.subr.bf16.mxu1 %v4070_v47 }
 0x34d   : > { %v3957_v40 = vadd.f32 %v3956_v28, %v3798_v51  ;;  %v3958_v62 = vpop.f32.mrb[7].mxu0  ;;  %4230 = vmatpush1.bf16.msra.mxu1 %v4069_v61  ;;  %v4025_v27 = vmax.f32 %v3953_v43, 0.0 }
 0x34e   : > { %v3959_v14 = vadd.f32 %v3958_v62, %v3798_v51  ;;  %v4026_v45 = vmax.f32 %v3955_v4, 0.0  ;;  %v3838_v4 = vpop.permute.xlu1 %3837 }
 0x34f   : > { %v4027_v20 = vmax.f32 %v3957_v40, 0.0 }
 0x350   : > { %v4028_v58 = vmax.f32 %v3959_v14, 0.0 }
 0x351   : > { %v4071_v7 = vpack.c.bf16 %v4027_v20, %v4025_v27 }
 0x352   : > { %v4072_v15 = vpack.c.bf16 %v4028_v58, %v4026_v45  ;;  %v3962_v41 = vpop.f32.mrb[8].mxu0 }
 0x353   : > { %v3963_v35 = vadd.f32 %v3962_v41, %v3803_v6  ;;  %v3964_v1 = vpop.f32.mrb[9].mxu0 }
 0x354   : > { %v3965_v26 = vadd.f32 %v3964_v1, %v3803_v6  ;;  %v3966_v52 = vpop.f32.mrb[10].mxu0  ;;  %4231 = vmatprep.subr.bf16.mxu1 %v4072_v15  ;;  %v3843_v15 = vpop.permute.xlu0 %3842 }
 0x355   : > { %v3967_v33 = vadd.f32 %v3966_v52, %v3808_v9  ;;  %v3968_v50 = vpop.f32.mrb[11].mxu0  ;;  %4232 = vmatpush1.bf16.msra.mxu1 %v4071_v7  ;;  %v4029_v22 = vmax.f32 %v3963_v35, 0.0 }
 0x356   : > { %v3969_v36 = vadd.f32 %v3968_v50, %v3808_v9  ;;  %v4030_v13 = vmax.f32 %v3965_v26, 0.0  ;;  %v3848_v26 = vpop.permute.xlu1 %3847 }
 0x357   : > { %v4031_v56 = vmax.f32 %v3967_v33, 0.0 }
 0x358   : > { %v4032_v34 = vmax.f32 %v3969_v36, 0.0 }
 0x359   : > { %v4073_v39 = vpack.c.bf16 %v4031_v56, %v4029_v22 }
 0x35a   : > { %v4074_v2 = vpack.c.bf16 %v4032_v34, %v4030_v13  ;;  %v3972_v59 = vpop.f32.mrb[12].mxu0 }
 0x35b   : > { %v3973_v46 = vadd.f32 %v3972_v59, %v3813_v57  ;;  %v3974_v8 = vpop.f32.mrb[13].mxu0 }
 0x35c   : > { %v3975_v0 = vadd.f32 %v3974_v8, %v3813_v57  ;;  %v3976_v44 = vpop.f32.mrb[14].mxu0  ;;  %4233 = vmatprep.subr.bf16.mxu1 %v4074_v2  ;;  %v3853_v2 = vpop.permute.xlu0 %3852 }
 0x35d   : > { %v3977_v42 = vadd.f32 %v3976_v44, %v3818_v53  ;;  %v3978_v49 = vpop.f32.mrb[15].mxu0  ;;  %4234 = vmatpush1.bf16.msra.mxu1 %v4073_v39  ;;  %v4033_v55 = vmax.f32 %v3973_v46, 0.0 }
 0x35e   : > { %v3979_v38 = vadd.f32 %v3978_v49, %v3818_v53  ;;  %v4034_v16 = vmax.f32 %v3975_v0, 0.0  ;;  %v3858_v0 = vpop.permute.xlu1 %3857 }
 0x35f   : > { %v4035_v5 = vmax.f32 %v3977_v42, 0.0 }
 0x360   : > { %v4036_v19 = vmax.f32 %v3979_v38, 0.0 }
 0x361   : > { %v4075_v23 = vpack.c.bf16 %v4035_v5, %v4033_v55 }
 0x362   : > { %v4076_v32 = vpack.c.bf16 %v4036_v19, %v4034_v16  ;;  %v3982_v60 = vpop.f32.mrb[16].mxu0 }
 0x363   : > { %v3983_v48 = vadd.f32 %v3982_v60, %v3823_v21  ;;  %v3984_v10 = vpop.f32.mrb[17].mxu0  ;;  %v4878_v60 = vld [vmem:[%s7268_s4] sm:$0xff]  }
 0x364   : > { %v3985_v29 = vadd.f32 %v3984_v10, %v3823_v21  ;;  %v3986_v37 = vpop.f32.mrb[18].mxu0  ;;  %4235 = vmatprep.subr.bf16.mxu1 %v4076_v32  ;;  %v4880_v10 = vld [vmem:[%s7268_s4 + $0x10] sm:$0xff]  }
 0x365   : > { %v3987_v3 = vadd.f32 %v3986_v37, %v3828_v17  ;;  %v3988_v11 = vpop.f32.mrb[19].mxu0  ;;  %4236 = vmatpush1.bf16.msra.mxu1 %v4075_v23  ;;  %v4037_v24 = vmax.f32 %v3983_v48, 0.0  ;;  %v4879_v48 = vld [vmem:[%s7268_s4 + $0x8] sm:$0xff]  }
 0x366   : > { %v3989_v12 = vadd.f32 %v3988_v11, %v3828_v17  ;;  %v4038_v54 = vmax.f32 %v3985_v29, 0.0  ;;  %v4881_v17 = vld [vmem:[%s7268_s4 + $0x18] sm:$0xff]   ;;  %v4882_v29 = vld [vmem:[%s7268_s4 + $0x20] sm:$0xff]   ;;  %v4883_v37 = vld [vmem:[%s7268_s4 + $0x28] sm:$0xff]  }
 0x367   : > { %v4039_v25 = vmax.f32 %v3987_v3, 0.0  ;;  %v4884_v3 = vld [vmem:[%s7268_s4 + $0x30] sm:$0xff]   ;;  %v4885_v11 = vld [vmem:[%s7268_s4 + $0x38] sm:$0xff]  }
 0x368   : > { %v4040_v61 = vmax.f32 %v3989_v12, 0.0  ;;  %v4104_v12 = vpop.permute.xlu0 %4103 }
 0x369   : > { %v4077_v30 = vpack.c.bf16 %v4039_v25, %v4037_v24 }
 0x36a   : > { %v4078_v47 = vpack.c.bf16 %v4040_v61, %v4038_v54  ;;  %v3992_v43 = vpop.f32.mrb[20].mxu0  ;;  %v4109_v61 = vpop.permute.xlu1 %4108 }
 0x36b   : > { %v3993_v31 = vadd.f32 %v3992_v43, %v3833_v18  ;;  %v3994_v51 = vpop.f32.mrb[21].mxu0 }
 0x36c   : > { %v3995_v28 = vadd.f32 %v3994_v51, %v3833_v18  ;;  %v3996_v40 = vpop.f32.mrb[22].mxu0  ;;  %4237 = vmatprep.subr.bf16.mxu1 %v4078_v47 }
 0x36d   : > { %v3997_v62 = vadd.f32 %v3996_v40, %v3838_v4  ;;  %v3998_v14 = vpop.f32.mrb[23].mxu0  ;;  %4238 = vmatpush1.bf16.msra.mxu1 %v4077_v30  ;;  %v4041_v20 = vmax.f32 %v3993_v31, 0.0 }
 0x36e   : > { %v3999_v27 = vadd.f32 %v3998_v14, %v3838_v4  ;;  %v4042_v58 = vmax.f32 %v3995_v28, 0.0  ;;  %v4114_v4 = vpop.permute.xlu0 %4113  ;;  %v4119_v14 = vpop.permute.xlu1 %4118 }
 0x36f   : > { %v4043_v45 = vmax.f32 %v3997_v62, 0.0 }
 0x370   : > { %v4044_v7 = vmax.f32 %v3999_v27, 0.0 }
 0x371   : > { %v4079_v6 = vpack.c.bf16 %v4043_v45, %v4041_v20 }
 0x372   : > { %v4080_v41 = vpack.c.bf16 %v4044_v7, %v4042_v58  ;;  %v4002_v35 = vpop.f32.mrb[24].mxu0 }
 0x373   : > { %v4003_v1 = vadd.f32 %v4002_v35, %v3843_v15  ;;  %v4004_v9 = vpop.f32.mrb[25].mxu0 }
 0x374   : > { %v4005_v52 = vadd.f32 %v4004_v9, %v3843_v15  ;;  %v4006_v33 = vpop.f32.mrb[26].mxu0  ;;  %4239 = vmatprep.subr.bf16.mxu1 %v4080_v41  ;;  %v4124_v41 = vpop.permute.xlu0 %4123 }
 0x375   : > { %v4007_v50 = vadd.f32 %v4006_v33, %v3848_v26  ;;  %v4008_v36 = vpop.f32.mrb[27].mxu0  ;;  %4240 = vmatpush1.bf16.msra.mxu1 %v4079_v6  ;;  %v4045_v56 = vmax.f32 %v4003_v1, 0.0 }
 0x376   : > { %v4009_v22 = vadd.f32 %v4008_v36, %v3848_v26  ;;  %v4046_v34 = vmax.f32 %v4005_v52, 0.0  ;;  %v4129_v26 = vpop.permute.xlu1 %4128 }
 0x377   : > { %v4047_v13 = vmax.f32 %v4007_v50, 0.0 }
 0x378   : > { %v4048_v39 = vmax.f32 %v4009_v22, 0.0 }
 0x379   : > { %v4081_v57 = vpack.c.bf16 %v4047_v13, %v4045_v56 }
 0x37a   : > { %v4082_v59 = vpack.c.bf16 %v4048_v39, %v4046_v34  ;;  %v4012_v46 = vpop.f32.mrb[28].mxu0  ;;  %v4134_v34 = vpop.permute.xlu0 %4133 }
 0x37b   : > { %v4013_v8 = vadd.f32 %v4012_v46, %v3853_v2  ;;  %v4014_v53 = vpop.f32.mrb[29].mxu0 }
 0x37c   : > { %v4015_v44 = vadd.f32 %v4014_v53, %v3853_v2  ;;  %v4016_v42 = vpop.f32.mrb[30].mxu0  ;;  %4241 = vmatprep.subr.bf16.mxu1 %v4082_v59  ;;  %v4139_v59 = vpop.permute.xlu1 %4138 }
 0x37d   : > { %v4017_v49 = vadd.f32 %v4016_v42, %v3858_v0  ;;  %v4018_v38 = vpop.f32.mrb[31].mxu0  ;;  %4242 = vmatpush1.bf16.msra.mxu1 %v4081_v57  ;;  %v4049_v5 = vmax.f32 %v4013_v8, 0.0 }
 0x37e   : > { %v4019_v55 = vadd.f32 %v4018_v38, %v3858_v0  ;;  %v4050_v19 = vmax.f32 %v4015_v44, 0.0  ;;  %v4144_v38 = vpop.permute.xlu0 %4143 }
 0x37f   : > { %v4051_v16 = vmax.f32 %v4017_v49, 0.0 }
 0x380   : > { %v4052_v23 = vmax.f32 %v4019_v55, 0.0 }
 0x381   : > { %v4083_v21 = vpack.c.bf16 %v4051_v16, %v4049_v5 }
 0x382   : > { %v4084_v32 = vpack.c.bf16 %v4052_v23, %v4050_v19  ;;  %v4149_v19 = vpop.permute.xlu1 %4148 }
 0x384   : > { %4243 = vmatprep.subr.bf16.mxu1 %v4084_v32 }
 0x385   : > { %4244 = vmatpush1.bf16.msra.mxu1 %v4083_v21 }
 0x388   : > { %4262 = vmatmul.mubr.bf16.vlgmr.msra.gmra.mrb[0].mxu1 %v4878_v60 }
 0x389   : > { %4271 = vmatprep.mubr.bf16.mxu1 %v7646_v63 }
 0x390   : > { %4272 = vmatmul.mubr.bf16.gmra.mrb[4].mxu1 %v4879_v48 }
 0x391   : > { %4281 = vmatprep.mubr.bf16.mxu1 %v7646_v63 }
 0x398   : > { %4282 = vmatmul.mubr.bf16.gmra.mrb[8].mxu1 %v4880_v10 }
 0x399   : > { %4291 = vmatprep.mubr.bf16.mxu1 %v7646_v63 }
 0x3a0   : > { %4292 = vmatmul.mubr.bf16.gmra.mrb[12].mxu1 %v4881_v17 }
 0x3a1   : > { %4301 = vmatprep.mubr.bf16.mxu1 %v7646_v63 }
 0x3a8   : > { %4302 = vmatmul.mubr.bf16.gmra.mrb[16].mxu1 %v4882_v29  ;;  %v4154_v29 = vpop.permute.xlu0 %4153 }
 0x3a9   : > { %4311 = vmatprep.mubr.bf16.mxu1 %v7646_v63 }
 0x3b0   : > { %4312 = vmatmul.mubr.bf16.gmra.mrb[20].mxu1 %v4883_v37 }
 0x3b1   : > { %4321 = vmatprep.mubr.bf16.mxu1 %v7646_v63 }
 0x3b8   : > { %4322 = vmatmul.mubr.bf16.gmra.mrb[24].mxu1 %v4884_v3 }
 0x3b9   : > { %4331 = vmatprep.mubr.bf16.mxu1 %v7646_v63 }
 0x3c0   : > { %4332 = vmatmul.mubr.bf16.gmra.mrb[28].mxu1 %v4885_v11 }
 0x45b   : > { %v4263_v24 = vpop.f32.mrb[0].mxu1 }
 0x45c   : > { %v4264_v25 = vadd.f32 %v4263_v24, %v4104_v12  ;;  %v4265_v54 = vpop.f32.mrb[1].mxu1 }
 0x45d   : > { %v4266_v30 = vadd.f32 %v4265_v54, %v4104_v12  ;;  %v4267_v18 = vpop.f32.mrb[2].mxu1  ;;  %v4159_v12 = vpop.permute.xlu1 %4158 }
 0x45e   : > { %v4268_v47 = vadd.f32 %v4267_v18, %v4109_v61  ;;  %v4269_v43 = vpop.f32.mrb[3].mxu1 }
 0x45f   : > { %v4723_v31 = vpack.c.bf16 %v4266_v30, %v4264_v25  ;;  %v4270_v51 = vadd.f32 %v4269_v43, %v4109_v61  ;;  %v4164_v43 = vpop.permute.xlu0 %4163 }
 0x461   : > { %4438 = vst [vmem:[%s7189_s18] sm:$0xff] %v4723_v31  ;;  %v4724_v63 = vpack.c.bf16 %v4270_v51, %v4268_v47 }
 0x463   : > { %4439 = vst [vmem:[%s7189_s18 + $0x8] sm:$0xff] %v4724_v63  ;;  %v4273_v28 = vpop.f32.mrb[4].mxu1 }
 0x464   : > { %v4274_v40 = vadd.f32 %v4273_v28, %v4114_v4  ;;  %v4275_v62 = vpop.f32.mrb[5].mxu1 }
 0x465   : > { %v4276_v27 = vadd.f32 %v4275_v62, %v4114_v4  ;;  %v4277_v20 = vpop.f32.mrb[6].mxu1  ;;  %v4169_v4 = vpop.permute.xlu1 %4168 }
 0x466   : > { %v4278_v45 = vadd.f32 %v4277_v20, %v4119_v14  ;;  %v4279_v58 = vpop.f32.mrb[7].mxu1 }
 0x467   : > { %v4725_v7 = vpack.c.bf16 %v4276_v27, %v4274_v40  ;;  %v4280_v6 = vadd.f32 %v4279_v58, %v4119_v14  ;;  %v4174_v58 = vpop.permute.xlu0 %4173 }
 0x469   : > { %4440 = vst [vmem:[%s7189_s18 + $0x10] sm:$0xff] %v4725_v7  ;;  %v4726_v15 = vpack.c.bf16 %v4280_v6, %v4278_v45 }
 0x46b   : > { %4441 = vst [vmem:[%s7189_s18 + $0x18] sm:$0xff] %v4726_v15  ;;  %v4283_v35 = vpop.f32.mrb[8].mxu1 }
 0x46c   : > { %v4284_v1 = vadd.f32 %v4283_v35, %v4124_v41  ;;  %v4285_v9 = vpop.f32.mrb[9].mxu1 }
 0x46d   : > { %v4286_v52 = vadd.f32 %v4285_v9, %v4124_v41  ;;  %v4287_v33 = vpop.f32.mrb[10].mxu1  ;;  %v4179_v41 = vpop.permute.xlu1 %4178 }
 0x46e   : > { %v4288_v50 = vadd.f32 %v4287_v33, %v4129_v26  ;;  %v4289_v36 = vpop.f32.mrb[11].mxu1 }
 0x46f   : > { %v4727_v22 = vpack.c.bf16 %v4286_v52, %v4284_v1  ;;  %v4290_v56 = vadd.f32 %v4289_v36, %v4129_v26 }
 0x471   : > { %4442 = vst [vmem:[%s7189_s18 + $0x20] sm:$0xff] %v4727_v22  ;;  %v4728_v13 = vpack.c.bf16 %v4290_v56, %v4288_v50 }
 0x473   : > { %4443 = vst [vmem:[%s7189_s18 + $0x28] sm:$0xff] %v4728_v13  ;;  %v4293_v39 = vpop.f32.mrb[12].mxu1 }
 0x474   : > { %v4294_v57 = vadd.f32 %v4293_v39, %v4134_v34  ;;  %v4295_v2 = vpop.f32.mrb[13].mxu1 }
 0x475   : > { %v4296_v46 = vadd.f32 %v4295_v2, %v4134_v34  ;;  %v4297_v8 = vpop.f32.mrb[14].mxu1 }
 0x476   : > { %v4298_v53 = vadd.f32 %v4297_v8, %v4139_v59  ;;  %v4299_v0 = vpop.f32.mrb[15].mxu1 }
 0x477   : > { %v4729_v44 = vpack.c.bf16 %v4296_v46, %v4294_v57  ;;  %v4300_v42 = vadd.f32 %v4299_v0, %v4139_v59 }
 0x479   : > { %4444 = vst [vmem:[%s7189_s18 + $0x30] sm:$0xff] %v4729_v44  ;;  %v4730_v49 = vpack.c.bf16 %v4300_v42, %v4298_v53 }
 0x47b   : > { %4445 = vst [vmem:[%s7189_s18 + $0x38] sm:$0xff] %v4730_v49  ;;  %v4303_v55 = vpop.f32.mrb[16].mxu1 }
 0x47c   : > { %v4304_v5 = vadd.f32 %v4303_v55, %v4144_v38  ;;  %v4305_v16 = vpop.f32.mrb[17].mxu1 }
 0x47d   : > { %v4306_v23 = vadd.f32 %v4305_v16, %v4144_v38  ;;  %v4307_v21 = vpop.f32.mrb[18].mxu1 }
 0x47e   : > { %v4308_v32 = vadd.f32 %v4307_v21, %v4149_v19  ;;  %v4309_v60 = vpop.f32.mrb[19].mxu1 }
 0x47f   : > { %v4731_v48 = vpack.c.bf16 %v4306_v23, %v4304_v5  ;;  %v4310_v10 = vadd.f32 %v4309_v60, %v4149_v19 }
 0x481   : > { %4446 = vst [vmem:[%s7189_s18 + $0x40] sm:$0xff] %v4731_v48  ;;  %v4732_v17 = vpack.c.bf16 %v4310_v10, %v4308_v32 }
 0x483   : > { %4447 = vst [vmem:[%s7189_s18 + $0x48] sm:$0xff] %v4732_v17  ;;  %v4313_v37 = vpop.f32.mrb[20].mxu1 }
 0x484   : > { %v4314_v3 = vadd.f32 %v4313_v37, %v4154_v29  ;;  %v4315_v11 = vpop.f32.mrb[21].mxu1 }
 0x485   : > { %v4316_v24 = vadd.f32 %v4315_v11, %v4154_v29  ;;  %v4317_v25 = vpop.f32.mrb[22].mxu1 }
 0x486   : > { %v4318_v54 = vadd.f32 %v4317_v25, %v4159_v12  ;;  %v4319_v61 = vpop.f32.mrb[23].mxu1 }
 0x487   : > { %v4733_v30 = vpack.c.bf16 %v4316_v24, %v4314_v3  ;;  %v4320_v18 = vadd.f32 %v4319_v61, %v4159_v12 }
 0x489   : > { %4448 = vst [vmem:[%s7189_s18 + $0x50] sm:$0xff] %v4733_v30  ;;  %v4734_v47 = vpack.c.bf16 %v4320_v18, %v4318_v54 }
 0x48b   : > { %4449 = vst [vmem:[%s7189_s18 + $0x58] sm:$0xff] %v4734_v47  ;;  %v4323_v31 = vpop.f32.mrb[24].mxu1 }
 0x48c   : > { %v4324_v51 = vadd.f32 %v4323_v31, %v4164_v43  ;;  %v4325_v63 = vpop.f32.mrb[25].mxu1 }
 0x48d   : > { %v4326_v28 = vadd.f32 %v4325_v63, %v4164_v43  ;;  %v4327_v40 = vpop.f32.mrb[26].mxu1 }
 0x48e   : > { %v4328_v62 = vadd.f32 %v4327_v40, %v4169_v4  ;;  %v4329_v14 = vpop.f32.mrb[27].mxu1 }
 0x48f   : > { %v4735_v27 = vpack.c.bf16 %v4326_v28, %v4324_v51  ;;  %v4330_v20 = vadd.f32 %v4329_v14, %v4169_v4 }
 0x491   : > { %4450 = vst [vmem:[%s7189_s18 + $0x60] sm:$0xff] %v4735_v27  ;;  %v4736_v45 = vpack.c.bf16 %v4330_v20, %v4328_v62 }
 0x493   : > { %4451 = vst [vmem:[%s7189_s18 + $0x68] sm:$0xff] %v4736_v45  ;;  %v4333_v7 = vpop.f32.mrb[28].mxu1 }
 0x494   : > { %v4334_v6 = vadd.f32 %v4333_v7, %v4174_v58  ;;  %v4335_v15 = vpop.f32.mrb[29].mxu1 }
 0x495   : > { %v4336_v35 = vadd.f32 %v4335_v15, %v4174_v58  ;;  %v4337_v1 = vpop.f32.mrb[30].mxu1 }
 0x496   : > { %v4338_v9 = vadd.f32 %v4337_v1, %v4179_v41  ;;  %v4339_v26 = vpop.f32.mrb[31].mxu1 }
 0x497   : > { %v4737_v52 = vpack.c.bf16 %v4336_v35, %v4334_v6  ;;  %v4340_v33 = vadd.f32 %v4339_v26, %v4179_v41 }
 0x499   : > { %4452 = vst [vmem:[%s7189_s18 + $0x70] sm:$0xff] %v4737_v52  ;;  %v4738_v50 = vpack.c.bf16 %v4340_v33, %v4338_v9 }
 0x49b   : > { %4453 = vst [vmem:[%s7189_s18 + $0x78] sm:$0xff] %v4738_v50 }
 0x49c   : > { %4964 = shalt.err (!%p4961_p5)
}
 0x49d   : > { %s4965_s14 = scalar_lea.hbm %s7210_s30, 2048  ;;  %s4969_s17 = scalar_lea.hbm %s7270_s6, 4096 }
 0x49e   : > { %p4966_p6 = scmp.ne.s32.totalorder %s7210_s30, %s4965_s14  ;;  %p4970_p10 = scmp.lt.u32.totalorder %s7210_s30, %s7270_s6 }
 0x49f   : > { %p4971_p11 = scmp.lt.u32.totalorder %s4969_s17, %s4965_s14  ;;  %p4973_p13 = scmp.lt.u32.totalorder %s4965_s14, %s7210_s30 }
 0x4a0   : > { %p4967_p7 = pnand %p4966_p6, %p5116_p4 }
 0x4a1   : > { %p4972_p12 = por %p4971_p11, %p4970_p10 }
 0x4a2   : > { %p4968_p9 = pneg %p4967_p7 }
 0x4a3   : > { %p4974_p0 = por %p4973_p13, %p4972_p12 }
 0x4a5   : > { %p4975_p1 = pnand %p4974_p0, %p4968_p9 }
 0x4a7   : > { %4978 = shalt.err (!%p4975_p1)
}
 0x4a8   : > { %s5039_s27 = smov 128   ;;  %s5040_s28 = smov 8  }
 0x4a9   : > { %4804 = dma.vmem_to_hbm [thread:$0]  (%p5116_p4), %s7212_s20, 2048, %s7210_s30, %s7218_s24, %s5039_s27, %s5039_s27, %s5040_s28  }
 0x4aa PF: > { %p4810_p2 = scmp.ge.s32.totalorder %s5029_s26, 2  ;;  %s4485_s8 = sand.u32 1, %s5009_s21  }
 0x4ab   : > { %s4486_s11 = scalar_lea.sflag [#allocation3], %s4485_s8 }
 0x4ac   : > { %p4807_p3 = pnand %p4810_p2, %p5123_p8 }
 0x4ae   : > { %5004 = dma.done.wait (!%p4807_p3), %s4486_s11, 2048  }
 0x4af   : > { %5006 = vsyncadd (!%p4807_p3), %s4486_s11, 4294965248  ;;  %s19_s26 = sadd.s32 1, %s5029_s26   ;;  %s7647_s21 = smov %s5013_s22 }
 0x4b0   : > { %p16_p5 = scmp.ge.s32.totalorder %s19_s26, 4   ;;  %s7648_s22 = smov %s5017_s23 }
 0x4b1   : > { %s7649_s23 = smov %s5129_s10  ;;  %s7650_s24 = smov %s5025_s25 }
 0x4b2   : > { %s7651_s25 = smov %s7653_s29  ;;  %18 = sbr.rel (!%p16_p5) target bundleno = 4 (0x4), region = 79 }
 0x4b9   :  { %4491 = vsyncpa [#allocation3], 1 }
 0x4ba   :  { %4493 = vsyncpa [#allocation3 + $0x1], 1 }

</bundles_post_ra>
